<compile_context>
chip_gen: v6e
topology: v6e:2x2x1
jax: 0.10.0
libtpu: 0.0.40
codegen_flags: <defaults>
</compile_context>

<pallas_src>
import functools

import jax
import jax.numpy as jnp
from jax import lax
from jax.experimental import pallas as pl
from jax.experimental.pallas import tpu as pltpu


def _round_up(x, m):
    return -(-x // m) * m


def _vmem_budget_and_limit():
    """Per-generation VMEM working-set budget and scoped-VMEM limit to request."""
    try:
        kind = jax.devices()[0].device_kind.lower()
    except Exception:  # pragma: no cover - defensive
        kind = ""
    if "v7" in kind:                       # v7x: 64 MiB physical VMEM per TC
        return 40 << 20, 48 << 20
    return 80 << 20, 96 << 20              # v4 / v5e / v6e: 128 MiB physical


def _vmem_estimate(Cp, CL, mxu_bytes, single_dot):
    """Rough per-grid-step VMEM working set (bytes) for TB sizing."""
    f32b = 4
    io = 2 * 2 * Cp * CL * f32b                      # double-buffered in/out blocks
    vals = Cp * CL * (5 * f32b + 2 * mxu_bytes)      # x, y1, res, out, acc + taps
    scratch = 9 * Cp * CL * mxu_bytes if single_dot else 0
    weights = 2 * 9 * Cp * Cp * mxu_bytes            # single-buffered w1 + w2
    return io + vals + scratch + weights + (2 << 20)


def _pick_batch_block(B, Cp, SP, mxu_bytes, single_dot, budget):
    """Largest TB dividing B that fits the VMEM budget, keeping grid >= 2."""
    cap = max(1, B // 2)   # grid >= 2 -> megacore sharding + DMA/compute overlap
    best = 1
    for tb in range(1, cap + 1):
        if B % tb:
            continue
        if _vmem_estimate(Cp, _round_up(tb * SP, 128), mxu_bytes,
                          single_dot) <= budget:
            best = tb
    return best


def _basic_block_kernel(x_ref, w1_ref, w2_ref, s1_ref, b1_ref, s2_ref, b2_ref,
                        mask_ref, o_ref, *scratch, Wp, mxu_dtype, single_dot,
                        use_roll):
    """One batch chunk in the channel-major wide-spatial layout.

    x_ref   : (Cp, CL)   zero-padded input, lane = b*SP + r*Wp + c
    w1/w2   : (Cp, 9*Cp) [single_dot] or (9, Cp, Cp) [9 accumulating dots]
    s*/b*   : (Cp, 1)    folded eval-mode BN scale / shift
    mask_ref: (1, CL)    1.0 on valid output lanes, 0.0 on junk/pad lanes
    o_ref   : (Cp, CL)   lane-dense output slab (junk lanes discarded outside)
    scratch : ((9*Cp, CL) im2col buffer in mxu_dtype,) only when single_dot
    """
    Cp, N = x_ref.shape
    offs = [kh * Wp + kw for kh in range(3) for kw in range(3)]
    p_ref = scratch[0] if single_dot else None

    def shift(v, d):
        # result[:, j] = v[:, (j + d) % N].  Rotation wrap-around only ever
        # feeds junk output columns or reads masked-zero lanes (see wrapper).
        if d % N == 0:
            return v
        if use_roll:
            return pltpu.roll(v, (-d) % N, axis=1)     # XLU lane rotate
        k = d % N                                      # slice+concat fallback
        return jnp.concatenate([v[:, k:], v[:, :k]], axis=1)

    def conv3x3(src_f32, w_ref, delta):
        if single_dot:
            # Tiny-Cp path: one fused MXU dot, K = 9*Cp.
            for t, off in enumerate(offs):
                p_ref[t * Cp:(t + 1) * Cp, :] = (
                    shift(src_f32, off + delta).astype(mxu_dtype))
            return jnp.dot(w_ref[...], p_ref[...],
                           preferred_element_type=jnp.float32)
        # Main path: 9 accumulating dots, no im2col materialization.
        acc = None
        for t, off in enumerate(offs):
            tap = shift(src_f32, off + delta).astype(mxu_dtype)
            r = jnp.dot(w_ref[t], tap, preferred_element_type=jnp.float32)
            acc = r if acc is None else acc + r
        return acc

    x = x_ref[...]                                     # (Cp, N) f32

    # ---- conv1 -> bn1 -> relu; junk lanes zeroed (they act as conv2 padding).
    acc1 = conv3x3(x, w1_ref, 0)
    y1 = jnp.maximum(acc1 * s1_ref[...] + b1_ref[...], 0.0) * mask_ref[...]

    # ---- conv2 (taps re-centered by -(Wp+1)) -> bn2 + residual + relu (f32).
    acc2 = conv3x3(y1, w2_ref, -(Wp + 1))
    residual = shift(x, Wp + 1)                        # center tap of the input
    out = jnp.maximum(acc2 * s2_ref[...] + b2_ref[...] + residual, 0.0)
    o_ref[...] = out.astype(o_ref.dtype)               # full-width lane-dense store


def basic_block_pallas(x_nchw, w1, g1, be1, m1, v1, w2, g2, be2, m2, v2,
                       eps=1e-5, mxu_dtype=jnp.bfloat16, batch_block=None):
    """BasicBlock forward.  x_nchw: (B, C, H, W) f32; conv weights OIHW.

    MXU operands default to bfloat16 on all generations (f32 accumulate and f32
    epilogue); pass mxu_dtype=jnp.float32 for an exact path."""
    B, C, H, W = x_nchw.shape
    assert w1.shape == (C, C, 3, 3) and w2.shape == (C, C, 3, 3), \
        "identity residual requires inplanes == planes (no downsample)"

    f32 = jnp.float32
    Cp = max(8, _round_up(C, 8))           # sublane-aligned channel pad
    Hp, Wp = H + 2, W + 2
    SP = Hp * Wp                           # inter-image lane stride (per chunk)
    Lw = (H - 1) * Wp + W                  # last valid output lane + 1 per image
    single_dot = Cp < 32                   # tiny-Cp: keep single fused dot
    mxu_bytes = jnp.dtype(mxu_dtype).itemsize

    budget, limit_cap = _vmem_budget_and_limit()
    TB = (_pick_batch_block(B, Cp, SP, mxu_bytes, single_dot, budget)
          if batch_block is None else batch_block)
    assert B % TB == 0
    nchunks = B // TB
    CL = _round_up(TB * SP, 128)           # lane padding per CHUNK, not per image

    est = _vmem_estimate(Cp, CL, mxu_bytes, single_dot)
    vmem_limit = limit_cap if est > (12 << 20) else None

    # ---- input: NCHW -> per-chunk channel-major wide layout (Cp, nchunks*CL) --
    xp = jnp.pad(x_nchw.astype(f32), ((0, 0), (0, Cp - C), (1, 1), (1, 1)))
    xp = xp.reshape(nchunks, TB, Cp, SP).transpose(0, 2, 1, 3)
    xp = xp.reshape(nchunks, Cp, TB * SP)
    xp = jnp.pad(xp, ((0, 0), (0, 0), (0, CL - TB * SP)))
    xw = jnp.transpose(xp, (1, 0, 2)).reshape(Cp, nchunks * CL)

    # ---- weights ------------------------------------------------------------
    def prep_w(w):
        if single_dot:                     # (Cp, 9*Cp), col = (kh*3+kw)*Cp + ci
            wt = jnp.transpose(w.astype(f32), (0, 2, 3, 1))
            wt = jnp.pad(wt, ((0, Cp - C), (0, 0), (0, 0), (0, Cp - C)))
            return wt.reshape(Cp, 9 * Cp).astype(mxu_dtype)
        wt = jnp.transpose(w.astype(f32), (2, 3, 0, 1))          # (kh,kw,O,I)
        wt = jnp.pad(wt, ((0, 0), (0, 0), (0, Cp - C), (0, Cp - C)))
        return wt.reshape(9, Cp, Cp).astype(mxu_dtype)

    w1r, w2r = prep_w(w1), prep_w(w2)

    # ---- fold eval-mode BN into per-channel scale/shift (padded channels = 0) -
    def fold(g, be, m, v):
        s = (g / jnp.sqrt(v + eps)).astype(f32)
        b = (be - m * s).astype(f32)
        return (jnp.pad(s, (0, Cp - C)).reshape(Cp, 1),
                jnp.pad(b, (0, Cp - C)).reshape(Cp, 1))

    s1, b1 = fold(g1, be1, m1, v1)
    s2, b2 = fold(g2, be2, m2, v2)

    # ---- valid-lane mask over the wide per-chunk layout -----------------------
    lidx = jnp.arange(CL, dtype=jnp.int32)
    pin = lidx % SP
    mask = ((lidx < TB * SP) & (pin < Lw) & (pin % Wp < W)).astype(f32)
    mask = mask.reshape(1, CL)

    w_shape = (Cp, 9 * Cp) if single_dot else (9, Cp, Cp)
    w_idx = (lambda i: (0, 0)) if single_dot else (lambda i: (0, 0, 0))

    def build(use_buf1, use_roll):
        kernel = functools.partial(
            _basic_block_kernel, Wp=Wp, mxu_dtype=mxu_dtype,
            single_dot=single_dot, use_roll=use_roll)

        def inv(shape, idx):
            # grid-invariant operand -> single-buffered when supported
            if use_buf1:
                return pl.BlockSpec(shape, idx, pipeline_mode=pl.Buffered(1))
            return pl.BlockSpec(shape, idx)

        in_specs = [
            pl.BlockSpec((Cp, CL), lambda i: (0, i)),
            inv(w_shape, w_idx),
            inv(w_shape, w_idx),
            inv((Cp, 1), lambda i: (0, 0)),
            inv((Cp, 1), lambda i: (0, 0)),
            inv((Cp, 1), lambda i: (0, 0)),
            inv((Cp, 1), lambda i: (0, 0)),
            inv((1, CL), lambda i: (0, 0)),
        ]
        scratch = ([pltpu.VMEM((9 * Cp, CL), mxu_dtype)] if single_dot else [])
        return pl.pallas_call(
            kernel,
            out_shape=jax.ShapeDtypeStruct((Cp, nchunks * CL), f32),
            grid_spec=pltpu.PrefetchScalarGridSpec(
                num_scalar_prefetch=0,
                grid=(nchunks,),
                in_specs=in_specs,
                out_specs=pl.BlockSpec((Cp, CL), lambda i: (0, i)),
                scratch_shapes=scratch,
            ),
            compiler_params=pltpu.CompilerParams(
                dimension_semantics=("parallel",),
                vmem_limit_bytes=vmem_limit,
            ),
        )

    args = (xw, w1r, w2r, s1, b1, s2, b2, mask)
    out_wide = None
    last_exc = None
    # Capability fallbacks: drop pl.Buffered(1) and/or pltpu.roll if this JAX
    # build rejects them (slice+concat shifting is the functional equivalent).
    for use_buf1, use_roll in ((True, True), (False, True),
                               (True, False), (False, False)):
        try:
            out_wide = build(use_buf1, use_roll)(*args)
            break
        except Exception as exc:  # pragma: no cover - capability fallback
            last_exc = exc
    if out_wide is None:
        raise last_exc

    # ---- wide layout (Cp, nchunks*CL) -> NCHW, drop channel / spatial padding -
    o = out_wide.reshape(Cp, nchunks, CL)[:, :, :TB * SP]
    o = o.reshape(Cp, nchunks, TB, SP).transpose(1, 2, 0, 3)
    o = o.reshape(B, Cp, Hp, Wp)
    return o[:, :C, :H, :W]


def basic_block_ref(x, w1, g1, be1, m1, v1, w2, g2, be2, m2, v2, eps=1e-5):
    """Pure-JAX NCHW reference (eval-mode BN)."""
    dn = ("NCHW", "OIHW", "NCHW")

    def bn(y, g, b, m, v):
        g = g.reshape(1, -1, 1, 1); b = b.reshape(1, -1, 1, 1)
        m = m.reshape(1, -1, 1, 1); v = v.reshape(1, -1, 1, 1)
        return g * (y - m) / jnp.sqrt(v + eps) + b

    out = lax.conv_general_dilated(x, w1, (1, 1), ((1, 1), (1, 1)),
                                   dimension_numbers=dn)
    out = jnp.maximum(bn(out, g1, be1, m1, v1), 0.0)
    out = lax.conv_general_dilated(out, w2, (1, 1), ((1, 1), (1, 1)),
                                   dimension_numbers=dn)
    out = bn(out, g2, be2, m2, v2) + x
    return jnp.maximum(out, 0.0)


if __name__ == "__main__":
    def make_params(key, C):
        ks = jax.random.split(key, 10)
        w1 = jax.random.normal(ks[0], (C, C, 3, 3), jnp.float32) * 0.2
        w2 = jax.random.normal(ks[1], (C, C, 3, 3), jnp.float32) * 0.2
        g1 = 1.0 + 0.1 * jax.random.normal(ks[2], (C,), jnp.float32)
        be1 = 0.1 * jax.random.normal(ks[3], (C,), jnp.float32)
        m1 = 0.1 * jax.random.normal(ks[4], (C,), jnp.float32)
        v1 = jnp.abs(jax.random.normal(ks[5], (C,), jnp.float32)) + 0.5
        g2 = 1.0 + 0.1 * jax.random.normal(ks[6], (C,), jnp.float32)
        be2 = 0.1 * jax.random.normal(ks[7], (C,), jnp.float32)
        m2 = 0.1 * jax.random.normal(ks[8], (C,), jnp.float32)
        v2 = jnp.abs(jax.random.normal(ks[9], (C,), jnp.float32)) + 0.5
        return (w1, g1, be1, m1, v1, w2, g2, be2, m2, v2)

    key = jax.random.PRNGKey(0)
    k_small, k_big, kx1, kx2 = jax.random.split(key, 4)

    # --- case 1: C=4 (Cp=8 < 32 -> single fused im2col dot path) -------------
    B, C, H, W = 2, 4, 16, 16
    x = jax.random.normal(kx1, (B, C, H, W), jnp.float32)
    params = make_params(k_small, C)
    ref = basic_block_ref(x, *params)

    out_f32 = jax.block_until_ready(
        basic_block_pallas(x, *params, mxu_dtype=jnp.float32))
    assert out_f32.shape == (B, C, H, W)
    err = float(jnp.max(jnp.abs(out_f32 - ref)))
    assert err < 2e-3, f"f32 single-dot path: max abs err {err}"

    out_bf16 = jax.block_until_ready(basic_block_pallas(x, *params))  # bf16 default
    err = float(jnp.max(jnp.abs(out_bf16 - ref)))
    assert err < 2e-1, f"bf16 single-dot path: max abs err {err}"

    # --- case 2: C=32 (Cp=32 -> 9 accumulating MXU dots, no im2col scratch) --
    B2, C2, H2, W2 = 2, 32, 8, 8
    x2 = jax.random.normal(kx2, (B2, C2, H2, W2), jnp.float32)
    params2 = make_params(k_big, C2)
    ref2 = basic_block_ref(x2, *params2)

    out2_f32 = jax.block_until_ready(
        basic_block_pallas(x2, *params2, mxu_dtype=jnp.float32))
    err = float(jnp.max(jnp.abs(out2_f32 - ref2)))
    assert err < 1e-2, f"f32 9-dot path: max abs err {err}"

    out2_bf16 = jax.block_until_ready(basic_block_pallas(x2, *params2))
    err = float(jnp.max(jnp.abs(out2_bf16 - ref2)))
    assert err < 8e-1, f"bf16 9-dot path: max abs err {err}"

    print("KERNEL_OK")
</pallas_src>

<mosaic_0001>
module attributes {stable_mosaic.version = 11 : i64} {
  func.func @_basic_block_kernel(%arg0: i32, %arg1: memref<8x384xf32, #tpu.memory_space<vmem>>, %arg2: memref<8x72xf32, #tpu.memory_space<vmem>>, %arg3: memref<8x72xf32, #tpu.memory_space<vmem>>, %arg4: memref<8x1xf32, #tpu.memory_space<vmem>>, %arg5: memref<8x1xf32, #tpu.memory_space<vmem>>, %arg6: memref<8x1xf32, #tpu.memory_space<vmem>>, %arg7: memref<8x1xf32, #tpu.memory_space<vmem>>, %arg8: memref<1x384xf32, #tpu.memory_space<vmem>>, %arg9: memref<8x384xf32, #tpu.memory_space<vmem>>, %arg10: memref<72x384xf32, #tpu.memory_space<vmem>>) attributes {dimension_semantics = [#tpu.dimension_semantics<parallel>], iteration_bounds = array<i64: 2>, scalar_prefetch = 0 : i64, scratch_operands = 1 : i64, tpu.core_type = #tpu.core_type<tc>, window_params = [{transform_indices = @transform_0, window_bounds = array<i64: 8, 384>}, {pipeline_mode = #tpu.pipeline_mode<synchronous>, transform_indices = @transform_1, window_bounds = array<i64: 8, 72>}, {pipeline_mode = #tpu.pipeline_mode<synchronous>, transform_indices = @transform_2, window_bounds = array<i64: 8, 72>}, {pipeline_mode = #tpu.pipeline_mode<synchronous>, transform_indices = @transform_3, window_bounds = array<i64: 8, 1>}, {pipeline_mode = #tpu.pipeline_mode<synchronous>, transform_indices = @transform_4, window_bounds = array<i64: 8, 1>}, {pipeline_mode = #tpu.pipeline_mode<synchronous>, transform_indices = @transform_5, window_bounds = array<i64: 8, 1>}, {pipeline_mode = #tpu.pipeline_mode<synchronous>, transform_indices = @transform_6, window_bounds = array<i64: 8, 1>}, {pipeline_mode = #tpu.pipeline_mode<synchronous>, transform_indices = @transform_7, window_bounds = array<i64: 1, 384>}, {transform_indices = @transform_8, window_bounds = array<i64: 8, 384>}]} {
    %c0 = arith.constant 0 : index
    %c0_0 = arith.constant 0 : index
    %0 = vector.load %arg1[%c0, %c0_0] : memref<8x384xf32, #tpu.memory_space<vmem>>, vector<8x384xf32>
    %c0_1 = arith.constant 0 : index
    %c0_2 = arith.constant 0 : index
    %1 = vector.load %arg10[%c0_1, %c0_2] : memref<72x384xf32, #tpu.memory_space<vmem>>, vector<8x384xf32>
    tpu.vector_store %arg10[%c0_1, %c0_2], %0 {strides = array<i32>} : memref<72x384xf32, #tpu.memory_space<vmem>>, vector<8x384xf32>,
    %c383_i32 = arith.constant 383 : i32
    %2 = tpu.dynamic_rotate %0 by %c383_i32 dim 1 : vector<8x384xf32>, i32 -> vector<8x384xf32>
    %c8 = arith.constant 8 : index
    %c0_3 = arith.constant 0 : index
    %3 = vector.load %arg10[%c8, %c0_3] : memref<72x384xf32, #tpu.memory_space<vmem>>, vector<8x384xf32>
    tpu.vector_store %arg10[%c8, %c0_3], %2 {strides = array<i32>} : memref<72x384xf32, #tpu.memory_space<vmem>>, vector<8x384xf32>,
    %c382_i32 = arith.constant 382 : i32
    %4 = tpu.dynamic_rotate %0 by %c382_i32 dim 1 : vector<8x384xf32>, i32 -> vector<8x384xf32>
    %c16 = arith.constant 16 : index
    %c0_4 = arith.constant 0 : index
    %5 = vector.load %arg10[%c16, %c0_4] : memref<72x384xf32, #tpu.memory_space<vmem>>, vector<8x384xf32>
    tpu.vector_store %arg10[%c16, %c0_4], %4 {strides = array<i32>} : memref<72x384xf32, #tpu.memory_space<vmem>>, vector<8x384xf32>,
    %c366_i32 = arith.constant 366 : i32
    %6 = tpu.dynamic_rotate %0 by %c366_i32 dim 1 : vector<8x384xf32>, i32 -> vector<8x384xf32>
    %c24 = arith.constant 24 : index
    %c0_5 = arith.constant 0 : index
    %7 = vector.load %arg10[%c24, %c0_5] : memref<72x384xf32, #tpu.memory_space<vmem>>, vector<8x384xf32>
    tpu.vector_store %arg10[%c24, %c0_5], %6 {strides = array<i32>} : memref<72x384xf32, #tpu.memory_space<vmem>>, vector<8x384xf32>,
    %c365_i32 = arith.constant 365 : i32
    %8 = tpu.dynamic_rotate %0 by %c365_i32 dim 1 : vector<8x384xf32>, i32 -> vector<8x384xf32>
    %c32 = arith.constant 32 : index
    %c0_6 = arith.constant 0 : index
    %9 = vector.load %arg10[%c32, %c0_6] : memref<72x384xf32, #tpu.memory_space<vmem>>, vector<8x384xf32>
    tpu.vector_store %arg10[%c32, %c0_6], %8 {strides = array<i32>} : memref<72x384xf32, #tpu.memory_space<vmem>>, vector<8x384xf32>,
    %c364_i32 = arith.constant 364 : i32
    %10 = tpu.dynamic_rotate %0 by %c364_i32 dim 1 : vector<8x384xf32>, i32 -> vector<8x384xf32>
    %c40 = arith.constant 40 : index
    %c0_7 = arith.constant 0 : index
    %11 = vector.load %arg10[%c40, %c0_7] : memref<72x384xf32, #tpu.memory_space<vmem>>, vector<8x384xf32>
    tpu.vector_store %arg10[%c40, %c0_7], %10 {strides = array<i32>} : memref<72x384xf32, #tpu.memory_space<vmem>>, vector<8x384xf32>,
    %c348_i32 = arith.constant 348 : i32
    %12 = tpu.dynamic_rotate %0 by %c348_i32 dim 1 : vector<8x384xf32>, i32 -> vector<8x384xf32>
    %c48 = arith.constant 48 : index
    %c0_8 = arith.constant 0 : index
    %13 = vector.load %arg10[%c48, %c0_8] : memref<72x384xf32, #tpu.memory_space<vmem>>, vector<8x384xf32>
    tpu.vector_store %arg10[%c48, %c0_8], %12 {strides = array<i32>} : memref<72x384xf32, #tpu.memory_space<vmem>>, vector<8x384xf32>,
    %c347_i32 = arith.constant 347 : i32
    %14 = tpu.dynamic_rotate %0 by %c347_i32 dim 1 : vector<8x384xf32>, i32 -> vector<8x384xf32>
    %c56 = arith.constant 56 : index
    %c0_9 = arith.constant 0 : index
    %15 = vector.load %arg10[%c56, %c0_9] : memref<72x384xf32, #tpu.memory_space<vmem>>, vector<8x384xf32>
    tpu.vector_store %arg10[%c56, %c0_9], %14 {strides = array<i32>} : memref<72x384xf32, #tpu.memory_space<vmem>>, vector<8x384xf32>,
    %c346_i32 = arith.constant 346 : i32
    %16 = tpu.dynamic_rotate %0 by %c346_i32 dim 1 : vector<8x384xf32>, i32 -> vector<8x384xf32>
    %c64 = arith.constant 64 : index
    %c0_10 = arith.constant 0 : index
    %17 = vector.load %arg10[%c64, %c0_10] : memref<72x384xf32, #tpu.memory_space<vmem>>, vector<8x384xf32>
    tpu.vector_store %arg10[%c64, %c0_10], %16 {strides = array<i32>} : memref<72x384xf32, #tpu.memory_space<vmem>>, vector<8x384xf32>,
    %c0_11 = arith.constant 0 : index
    %c0_12 = arith.constant 0 : index
    %18 = vector.load %arg2[%c0_11, %c0_12] : memref<8x72xf32, #tpu.memory_space<vmem>>, vector<8x72xf32>
    %c0_13 = arith.constant 0 : index
    %c0_14 = arith.constant 0 : index
    %19 = vector.load %arg10[%c0_13, %c0_14] : memref<72x384xf32, #tpu.memory_space<vmem>>, vector<72x384xf32>
    %cst = arith.constant dense<0.000000e+00> : vector<8x384xf32>
    %20 = tpu.matmul %18, %19, %cst {dimension_numbers = #tpu.dot_dimension_numbers<[1], [0], [0], [1], [0, 0, 1, 1], [], []>} : vector<8x72xf32>, vector<72x384xf32>, vector<8x384xf32> -> vector<8x384xf32>
    %c0_15 = arith.constant 0 : index
    %c0_16 = arith.constant 0 : index
    %21 = vector.load %arg4[%c0_15, %c0_16] : memref<8x1xf32, #tpu.memory_space<vmem>>, vector<8x1xf32>
    %22 = vector.broadcast %21 : vector<8x1xf32> to vector<8x384xf32>
    %23 = arith.mulf %20, %22 : vector<8x384xf32>
    %c0_17 = arith.constant 0 : index
    %c0_18 = arith.constant 0 : index
    %24 = vector.load %arg5[%c0_17, %c0_18] : memref<8x1xf32, #tpu.memory_space<vmem>>, vector<8x1xf32>
    %25 = vector.broadcast %24 : vector<8x1xf32> to vector<8x384xf32>
    %26 = arith.addf %23, %25 : vector<8x384xf32>
    %cst_19 = arith.constant 0.000000e+00 : f32
    %27 = vector.broadcast %cst_19 : f32 to vector<8x384xf32>
    %28 = arith.maximumf %26, %27 : vector<8x384xf32>
    %c0_20 = arith.constant 0 : index
    %c0_21 = arith.constant 0 : index
    %29 = vector.load %arg8[%c0_20, %c0_21] : memref<1x384xf32, #tpu.memory_space<vmem>>, vector<1x384xf32>
    %30 = vector.broadcast %29 : vector<1x384xf32> to vector<8x384xf32>
    %31 = arith.mulf %28, %30 : vector<8x384xf32>
    %c19_i32 = arith.constant 19 : i32
    %32 = tpu.dynamic_rotate %31 by %c19_i32 dim 1 : vector<8x384xf32>, i32 -> vector<8x384xf32>
    %c0_22 = arith.constant 0 : index
    %c0_23 = arith.constant 0 : index
    %33 = vector.load %arg10[%c0_22, %c0_23] : memref<72x384xf32, #tpu.memory_space<vmem>>, vector<8x384xf32>
    tpu.vector_store %arg10[%c0_22, %c0_23], %32 {strides = array<i32>} : memref<72x384xf32, #tpu.memory_space<vmem>>, vector<8x384xf32>,
    %c18_i32 = arith.constant 18 : i32
    %34 = tpu.dynamic_rotate %31 by %c18_i32 dim 1 : vector<8x384xf32>, i32 -> vector<8x384xf32>
    %c8_24 = arith.constant 8 : index
    %c0_25 = arith.constant 0 : index
    %35 = vector.load %arg10[%c8_24, %c0_25] : memref<72x384xf32, #tpu.memory_space<vmem>>, vector<8x384xf32>
    tpu.vector_store %arg10[%c8_24, %c0_25], %34 {strides = array<i32>} : memref<72x384xf32, #tpu.memory_space<vmem>>, vector<8x384xf32>,
    %c17_i32 = arith.constant 17 : i32
    %36 = tpu.dynamic_rotate %31 by %c17_i32 dim 1 : vector<8x384xf32>, i32 -> vector<8x384xf32>
    %c16_26 = arith.constant 16 : index
    %c0_27 = arith.constant 0 : index
    %37 = vector.load %arg10[%c16_26, %c0_27] : memref<72x384xf32, #tpu.memory_space<vmem>>, vector<8x384xf32>
    tpu.vector_store %arg10[%c16_26, %c0_27], %36 {strides = array<i32>} : memref<72x384xf32, #tpu.memory_space<vmem>>, vector<8x384xf32>,
    %c1_i32 = arith.constant 1 : i32
    %38 = tpu.dynamic_rotate %31 by %c1_i32 dim 1 : vector<8x384xf32>, i32 -> vector<8x384xf32>
    %c24_28 = arith.constant 24 : index
    %c0_29 = arith.constant 0 : index
    %39 = vector.load %arg10[%c24_28, %c0_29] : memref<72x384xf32, #tpu.memory_space<vmem>>, vector<8x384xf32>
    tpu.vector_store %arg10[%c24_28, %c0_29], %38 {strides = array<i32>} : memref<72x384xf32, #tpu.memory_space<vmem>>, vector<8x384xf32>,
    %c32_30 = arith.constant 32 : index
    %c0_31 = arith.constant 0 : index
    %40 = vector.load %arg10[%c32_30, %c0_31] : memref<72x384xf32, #tpu.memory_space<vmem>>, vector<8x384xf32>
    tpu.vector_store %arg10[%c32_30, %c0_31], %31 {strides = array<i32>} : memref<72x384xf32, #tpu.memory_space<vmem>>, vector<8x384xf32>,
    %c383_i32_32 = arith.constant 383 : i32
    %41 = tpu.dynamic_rotate %31 by %c383_i32_32 dim 1 : vector<8x384xf32>, i32 -> vector<8x384xf32>
    %c40_33 = arith.constant 40 : index
    %c0_34 = arith.constant 0 : index
    %42 = vector.load %arg10[%c40_33, %c0_34] : memref<72x384xf32, #tpu.memory_space<vmem>>, vector<8x384xf32>
    tpu.vector_store %arg10[%c40_33, %c0_34], %41 {strides = array<i32>} : memref<72x384xf32, #tpu.memory_space<vmem>>, vector<8x384xf32>,
    %c367_i32 = arith.constant 367 : i32
    %43 = tpu.dynamic_rotate %31 by %c367_i32 dim 1 : vector<8x384xf32>, i32 -> vector<8x384xf32>
    %c48_35 = arith.constant 48 : index
    %c0_36 = arith.constant 0 : index
    %44 = vector.load %arg10[%c48_35, %c0_36] : memref<72x384xf32, #tpu.memory_space<vmem>>, vector<8x384xf32>
    tpu.vector_store %arg10[%c48_35, %c0_36], %43 {strides = array<i32>} : memref<72x384xf32, #tpu.memory_space<vmem>>, vector<8x384xf32>,
    %c366_i32_37 = arith.constant 366 : i32
    %45 = tpu.dynamic_rotate %31 by %c366_i32_37 dim 1 : vector<8x384xf32>, i32 -> vector<8x384xf32>
    %c56_38 = arith.constant 56 : index
    %c0_39 = arith.constant 0 : index
    %46 = vector.load %arg10[%c56_38, %c0_39] : memref<72x384xf32, #tpu.memory_space<vmem>>, vector<8x384xf32>
    tpu.vector_store %arg10[%c56_38, %c0_39], %45 {strides = array<i32>} : memref<72x384xf32, #tpu.memory_space<vmem>>, vector<8x384xf32>,
    %c365_i32_40 = arith.constant 365 : i32
    %47 = tpu.dynamic_rotate %31 by %c365_i32_40 dim 1 : vector<8x384xf32>, i32 -> vector<8x384xf32>
    %c64_41 = arith.constant 64 : index
    %c0_42 = arith.constant 0 : index
    %48 = vector.load %arg10[%c64_41, %c0_42] : memref<72x384xf32, #tpu.memory_space<vmem>>, vector<8x384xf32>
    tpu.vector_store %arg10[%c64_41, %c0_42], %47 {strides = array<i32>} : memref<72x384xf32, #tpu.memory_space<vmem>>, vector<8x384xf32>,
    %c0_43 = arith.constant 0 : index
    %c0_44 = arith.constant 0 : index
    %49 = vector.load %arg3[%c0_43, %c0_44] : memref<8x72xf32, #tpu.memory_space<vmem>>, vector<8x72xf32>
    %c0_45 = arith.constant 0 : index
    %c0_46 = arith.constant 0 : index
    %50 = vector.load %arg10[%c0_45, %c0_46] : memref<72x384xf32, #tpu.memory_space<vmem>>, vector<72x384xf32>
    %cst_47 = arith.constant dense<0.000000e+00> : vector<8x384xf32>
    %51 = tpu.matmul %49, %50, %cst_47 {dimension_numbers = #tpu.dot_dimension_numbers<[1], [0], [0], [1], [0, 0, 1, 1], [], []>} : vector<8x72xf32>, vector<72x384xf32>, vector<8x384xf32> -> vector<8x384xf32>
    %c365_i32_48 = arith.constant 365 : i32
    %52 = tpu.dynamic_rotate %0 by %c365_i32_48 dim 1 : vector<8x384xf32>, i32 -> vector<8x384xf32>
    %c0_49 = arith.constant 0 : index
    %c0_50 = arith.constant 0 : index
    %53 = vector.load %arg6[%c0_49, %c0_50] : memref<8x1xf32, #tpu.memory_space<vmem>>, vector<8x1xf32>
    %54 = vector.broadcast %53 : vector<8x1xf32> to vector<8x384xf32>
    %55 = arith.mulf %51, %54 : vector<8x384xf32>
    %c0_51 = arith.constant 0 : index
    %c0_52 = arith.constant 0 : index
    %56 = vector.load %arg7[%c0_51, %c0_52] : memref<8x1xf32, #tpu.memory_space<vmem>>, vector<8x1xf32>
    %57 = vector.broadcast %56 : vector<8x1xf32> to vector<8x384xf32>
    %58 = arith.addf %55, %57 : vector<8x384xf32>
    %59 = arith.addf %58, %52 : vector<8x384xf32>
    %cst_53 = arith.constant 0.000000e+00 : f32
    %60 = vector.broadcast %cst_53 : f32 to vector<8x384xf32>
    %61 = arith.maximumf %59, %60 : vector<8x384xf32>
    %c0_54 = arith.constant 0 : index
    %c0_55 = arith.constant 0 : index
    %62 = vector.load %arg9[%c0_54, %c0_55] : memref<8x384xf32, #tpu.memory_space<vmem>>, vector<8x384xf32>
    tpu.vector_store %arg9[%c0_54, %c0_55], %61 {strides = array<i32>} : memref<8x384xf32, #tpu.memory_space<vmem>>, vector<8x384xf32>,
    return
  }
  func.func @transform_0(%arg0: i32) -> (i32, i32) {
    %c0_i32 = arith.constant 0 : i32
    %c0_i32_0 = arith.constant 0 : i32
    return %c0_i32, %arg0 : i32, i32
  }
  func.func @transform_1(%arg0: i32) -> (i32, i32) {
    %c0_i32 = arith.constant 0 : i32
    %c0_i32_0 = arith.constant 0 : i32
    %c0_i32_1 = arith.constant 0 : i32
    return %c0_i32, %c0_i32_0 : i32, i32
  }
  func.func @transform_2(%arg0: i32) -> (i32, i32) {
    %c0_i32 = arith.constant 0 : i32
    %c0_i32_0 = arith.constant 0 : i32
    %c0_i32_1 = arith.constant 0 : i32
    return %c0_i32, %c0_i32_0 : i32, i32
  }
  func.func @transform_3(%arg0: i32) -> (i32, i32) {
    %c0_i32 = arith.constant 0 : i32
    %c0_i32_0 = arith.constant 0 : i32
    %c0_i32_1 = arith.constant 0 : i32
    return %c0_i32, %c0_i32_0 : i32, i32
  }
  func.func @transform_4(%arg0: i32) -> (i32, i32) {
    %c0_i32 = arith.constant 0 : i32
    %c0_i32_0 = arith.constant 0 : i32
    %c0_i32_1 = arith.constant 0 : i32
    return %c0_i32, %c0_i32_0 : i32, i32
  }
  func.func @transform_5(%arg0: i32) -> (i32, i32) {
    %c0_i32 = arith.constant 0 : i32
    %c0_i32_0 = arith.constant 0 : i32
    %c0_i32_1 = arith.constant 0 : i32
    return %c0_i32, %c0_i32_0 : i32, i32
  }
  func.func @transform_6(%arg0: i32) -> (i32, i32) {
    %c0_i32 = arith.constant 0 : i32
    %c0_i32_0 = arith.constant 0 : i32
    %c0_i32_1 = arith.constant 0 : i32
    return %c0_i32, %c0_i32_0 : i32, i32
  }
  func.func @transform_7(%arg0: i32) -> (i32, i32) {
    %c0_i32 = arith.constant 0 : i32
    %c0_i32_0 = arith.constant 0 : i32
    %c0_i32_1 = arith.constant 0 : i32
    return %c0_i32, %c0_i32_0 : i32, i32
  }
  func.func @transform_8(%arg0: i32) -> (i32, i32) {
    %c0_i32 = arith.constant 0 : i32
    %c0_i32_0 = arith.constant 0 : i32
    return %c0_i32, %arg0 : i32, i32
  }
}

module attributes {stable_mosaic.version = 11 : i64} {
  func.func @_basic_block_kernel(%arg0: i32, %arg1: memref<8x384xf32, #tpu.memory_space<vmem>>, %arg2: memref<8x72xf32, #tpu.memory_space<vmem>>, %arg3: memref<8x72xf32, #tpu.memory_space<vmem>>, %arg4: memref<8x1xf32, #tpu.memory_space<vmem>>, %arg5: memref<8x1xf32, #tpu.memory_space<vmem>>, %arg6: memref<8x1xf32, #tpu.memory_space<vmem>>, %arg7: memref<8x1xf32, #tpu.memory_space<vmem>>, %arg8: memref<1x384xf32, #tpu.memory_space<vmem>>, %arg9: memref<8x384xf32, #tpu.memory_space<vmem>>, %arg10: memref<72x384xf32, #tpu.memory_space<vmem>>) attributes {dimension_semantics = [#tpu.dimension_semantics<parallel>], iteration_bounds = array<i64: 2>, scalar_prefetch = 0 : i64, scratch_operands = 1 : i64, tpu.core_type = #tpu.core_type<tc>, window_params = [{transform_indices = @transform_0, window_bounds = array<i64: 8, 384>}, {pipeline_mode = #tpu.pipeline_mode<synchronous>, transform_indices = @transform_1, window_bounds = array<i64: 8, 72>}, {pipeline_mode = #tpu.pipeline_mode<synchronous>, transform_indices = @transform_2, window_bounds = array<i64: 8, 72>}, {pipeline_mode = #tpu.pipeline_mode<synchronous>, transform_indices = @transform_3, window_bounds = array<i64: 8, 1>}, {pipeline_mode = #tpu.pipeline_mode<synchronous>, transform_indices = @transform_4, window_bounds = array<i64: 8, 1>}, {pipeline_mode = #tpu.pipeline_mode<synchronous>, transform_indices = @transform_5, window_bounds = array<i64: 8, 1>}, {pipeline_mode = #tpu.pipeline_mode<synchronous>, transform_indices = @transform_6, window_bounds = array<i64: 8, 1>}, {pipeline_mode = #tpu.pipeline_mode<synchronous>, transform_indices = @transform_7, window_bounds = array<i64: 1, 384>}, {transform_indices = @transform_8, window_bounds = array<i64: 8, 384>}]} {
    %c0 = arith.constant 0 : index
    %c0_0 = arith.constant 0 : index
    %0 = vector.load %arg1[%c0, %c0_0] : memref<8x384xf32, #tpu.memory_space<vmem>>, vector<8x384xf32>
    %c0_1 = arith.constant 0 : index
    %c0_2 = arith.constant 0 : index
    %1 = vector.load %arg10[%c0_1, %c0_2] : memref<72x384xf32, #tpu.memory_space<vmem>>, vector<8x384xf32>
    tpu.vector_store %arg10[%c0_1, %c0_2], %0 {strides = array<i32>} : memref<72x384xf32, #tpu.memory_space<vmem>>, vector<8x384xf32>,
    %c383_i32 = arith.constant 383 : i32
    %2 = tpu.dynamic_rotate %0 by %c383_i32 dim 1 : vector<8x384xf32>, i32 -> vector<8x384xf32>
    %c8 = arith.constant 8 : index
    %c0_3 = arith.constant 0 : index
    %3 = vector.load %arg10[%c8, %c0_3] : memref<72x384xf32, #tpu.memory_space<vmem>>, vector<8x384xf32>
    tpu.vector_store %arg10[%c8, %c0_3], %2 {strides = array<i32>} : memref<72x384xf32, #tpu.memory_space<vmem>>, vector<8x384xf32>,
    %c382_i32 = arith.constant 382 : i32
    %4 = tpu.dynamic_rotate %0 by %c382_i32 dim 1 : vector<8x384xf32>, i32 -> vector<8x384xf32>
    %c16 = arith.constant 16 : index
    %c0_4 = arith.constant 0 : index
    %5 = vector.load %arg10[%c16, %c0_4] : memref<72x384xf32, #tpu.memory_space<vmem>>, vector<8x384xf32>
    tpu.vector_store %arg10[%c16, %c0_4], %4 {strides = array<i32>} : memref<72x384xf32, #tpu.memory_space<vmem>>, vector<8x384xf32>,
    %c366_i32 = arith.constant 366 : i32
    %6 = tpu.dynamic_rotate %0 by %c366_i32 dim 1 : vector<8x384xf32>, i32 -> vector<8x384xf32>
    %c24 = arith.constant 24 : index
    %c0_5 = arith.constant 0 : index
    %7 = vector.load %arg10[%c24, %c0_5] : memref<72x384xf32, #tpu.memory_space<vmem>>, vector<8x384xf32>
    tpu.vector_store %arg10[%c24, %c0_5], %6 {strides = array<i32>} : memref<72x384xf32, #tpu.memory_space<vmem>>, vector<8x384xf32>,
    %c365_i32 = arith.constant 365 : i32
    %8 = tpu.dynamic_rotate %0 by %c365_i32 dim 1 : vector<8x384xf32>, i32 -> vector<8x384xf32>
    %c32 = arith.constant 32 : index
    %c0_6 = arith.constant 0 : index
    %9 = vector.load %arg10[%c32, %c0_6] : memref<72x384xf32, #tpu.memory_space<vmem>>, vector<8x384xf32>
    tpu.vector_store %arg10[%c32, %c0_6], %8 {strides = array<i32>} : memref<72x384xf32, #tpu.memory_space<vmem>>, vector<8x384xf32>,
    %c364_i32 = arith.constant 364 : i32
    %10 = tpu.dynamic_rotate %0 by %c364_i32 dim 1 : vector<8x384xf32>, i32 -> vector<8x384xf32>
    %c40 = arith.constant 40 : index
    %c0_7 = arith.constant 0 : index
    %11 = vector.load %arg10[%c40, %c0_7] : memref<72x384xf32, #tpu.memory_space<vmem>>, vector<8x384xf32>
    tpu.vector_store %arg10[%c40, %c0_7], %10 {strides = array<i32>} : memref<72x384xf32, #tpu.memory_space<vmem>>, vector<8x384xf32>,
    %c348_i32 = arith.constant 348 : i32
    %12 = tpu.dynamic_rotate %0 by %c348_i32 dim 1 : vector<8x384xf32>, i32 -> vector<8x384xf32>
    %c48 = arith.constant 48 : index
    %c0_8 = arith.constant 0 : index
    %13 = vector.load %arg10[%c48, %c0_8] : memref<72x384xf32, #tpu.memory_space<vmem>>, vector<8x384xf32>
    tpu.vector_store %arg10[%c48, %c0_8], %12 {strides = array<i32>} : memref<72x384xf32, #tpu.memory_space<vmem>>, vector<8x384xf32>,
    %c347_i32 = arith.constant 347 : i32
    %14 = tpu.dynamic_rotate %0 by %c347_i32 dim 1 : vector<8x384xf32>, i32 -> vector<8x384xf32>
    %c56 = arith.constant 56 : index
    %c0_9 = arith.constant 0 : index
    %15 = vector.load %arg10[%c56, %c0_9] : memref<72x384xf32, #tpu.memory_space<vmem>>, vector<8x384xf32>
    tpu.vector_store %arg10[%c56, %c0_9], %14 {strides = array<i32>} : memref<72x384xf32, #tpu.memory_space<vmem>>, vector<8x384xf32>,
    %c346_i32 = arith.constant 346 : i32
    %16 = tpu.dynamic_rotate %0 by %c346_i32 dim 1 : vector<8x384xf32>, i32 -> vector<8x384xf32>
    %c64 = arith.constant 64 : index
    %c0_10 = arith.constant 0 : index
    %17 = vector.load %arg10[%c64, %c0_10] : memref<72x384xf32, #tpu.memory_space<vmem>>, vector<8x384xf32>
    tpu.vector_store %arg10[%c64, %c0_10], %16 {strides = array<i32>} : memref<72x384xf32, #tpu.memory_space<vmem>>, vector<8x384xf32>,
    %c0_11 = arith.constant 0 : index
    %c0_12 = arith.constant 0 : index
    %18 = vector.load %arg2[%c0_11, %c0_12] : memref<8x72xf32, #tpu.memory_space<vmem>>, vector<8x72xf32>
    %c0_13 = arith.constant 0 : index
    %c0_14 = arith.constant 0 : index
    %19 = vector.load %arg10[%c0_13, %c0_14] : memref<72x384xf32, #tpu.memory_space<vmem>>, vector<72x384xf32>
    %cst = arith.constant dense<0.000000e+00> : vector<8x384xf32>
    %20 = tpu.matmul %18, %19, %cst {dimension_numbers = #tpu.dot_dimension_numbers<[1], [0], [0], [1], [0, 0, 1, 1], [], []>} : vector<8x72xf32>, vector<72x384xf32>, vector<8x384xf32> -> vector<8x384xf32>
    %c0_15 = arith.constant 0 : index
    %c0_16 = arith.constant 0 : index
    %21 = vector.load %arg4[%c0_15, %c0_16] : memref<8x1xf32, #tpu.memory_space<vmem>>, vector<8x1xf32>
    %22 = vector.broadcast %21 : vector<8x1xf32> to vector<8x384xf32>
    %23 = arith.mulf %20, %22 : vector<8x384xf32>
    %c0_17 = arith.constant 0 : index
    %c0_18 = arith.constant 0 : index
    %24 = vector.load %arg5[%c0_17, %c0_18] : memref<8x1xf32, #tpu.memory_space<vmem>>, vector<8x1xf32>
    %25 = vector.broadcast %24 : vector<8x1xf32> to vector<8x384xf32>
    %26 = arith.addf %23, %25 : vector<8x384xf32>
    %cst_19 = arith.constant 0.000000e+00 : f32
    %27 = vector.broadcast %cst_19 : f32 to vector<8x384xf32>
    %28 = arith.maximumf %26, %27 : vector<8x384xf32>
    %c0_20 = arith.constant 0 : index
    %c0_21 = arith.constant 0 : index
    %29 = vector.load %arg8[%c0_20, %c0_21] : memref<1x384xf32, #tpu.memory_space<vmem>>, vector<1x384xf32>
    %30 = vector.broadcast %29 : vector<1x384xf32> to vector<8x384xf32>
    %31 = arith.mulf %28, %30 : vector<8x384xf32>
    %c19_i32 = arith.constant 19 : i32
    %32 = tpu.dynamic_rotate %31 by %c19_i32 dim 1 : vector<8x384xf32>, i32 -> vector<8x384xf32>
    %c0_22 = arith.constant 0 : index
    %c0_23 = arith.constant 0 : index
    %33 = vector.load %arg10[%c0_22, %c0_23] : memref<72x384xf32, #tpu.memory_space<vmem>>, vector<8x384xf32>
    tpu.vector_store %arg10[%c0_22, %c0_23], %32 {strides = array<i32>} : memref<72x384xf32, #tpu.memory_space<vmem>>, vector<8x384xf32>,
    %c18_i32 = arith.constant 18 : i32
    %34 = tpu.dynamic_rotate %31 by %c18_i32 dim 1 : vector<8x384xf32>, i32 -> vector<8x384xf32>
    %c8_24 = arith.constant 8 : index
    %c0_25 = arith.constant 0 : index
    %35 = vector.load %arg10[%c8_24, %c0_25] : memref<72x384xf32, #tpu.memory_space<vmem>>, vector<8x384xf32>
    tpu.vector_store %arg10[%c8_24, %c0_25], %34 {strides = array<i32>} : memref<72x384xf32, #tpu.memory_space<vmem>>, vector<8x384xf32>,
    %c17_i32 = arith.constant 17 : i32
    %36 = tpu.dynamic_rotate %31 by %c17_i32 dim 1 : vector<8x384xf32>, i32 -> vector<8x384xf32>
    %c16_26 = arith.constant 16 : index
    %c0_27 = arith.constant 0 : index
    %37 = vector.load %arg10[%c16_26, %c0_27] : memref<72x384xf32, #tpu.memory_space<vmem>>, vector<8x384xf32>
    tpu.vector_store %arg10[%c16_26, %c0_27], %36 {strides = array<i32>} : memref<72x384xf32, #tpu.memory_space<vmem>>, vector<8x384xf32>,
    %c1_i32 = arith.constant 1 : i32
    %38 = tpu.dynamic_rotate %31 by %c1_i32 dim 1 : vector<8x384xf32>, i32 -> vector<8x384xf32>
    %c24_28 = arith.constant 24 : index
    %c0_29 = arith.constant 0 : index
    %39 = vector.load %arg10[%c24_28, %c0_29] : memref<72x384xf32, #tpu.memory_space<vmem>>, vector<8x384xf32>
    tpu.vector_store %arg10[%c24_28, %c0_29], %38 {strides = array<i32>} : memref<72x384xf32, #tpu.memory_space<vmem>>, vector<8x384xf32>,
    %c32_30 = arith.constant 32 : index
    %c0_31 = arith.constant 0 : index
    %40 = vector.load %arg10[%c32_30, %c0_31] : memref<72x384xf32, #tpu.memory_space<vmem>>, vector<8x384xf32>
    tpu.vector_store %arg10[%c32_30, %c0_31], %31 {strides = array<i32>} : memref<72x384xf32, #tpu.memory_space<vmem>>, vector<8x384xf32>,
    %c383_i32_32 = arith.constant 383 : i32
    %41 = tpu.dynamic_rotate %31 by %c383_i32_32 dim 1 : vector<8x384xf32>, i32 -> vector<8x384xf32>
    %c40_33 = arith.constant 40 : index
    %c0_34 = arith.constant 0 : index
    %42 = vector.load %arg10[%c40_33, %c0_34] : memref<72x384xf32, #tpu.memory_space<vmem>>, vector<8x384xf32>
    tpu.vector_store %arg10[%c40_33, %c0_34], %41 {strides = array<i32>} : memref<72x384xf32, #tpu.memory_space<vmem>>, vector<8x384xf32>,
    %c367_i32 = arith.constant 367 : i32
    %43 = tpu.dynamic_rotate %31 by %c367_i32 dim 1 : vector<8x384xf32>, i32 -> vector<8x384xf32>
    %c48_35 = arith.constant 48 : index
    %c0_36 = arith.constant 0 : index
    %44 = vector.load %arg10[%c48_35, %c0_36] : memref<72x384xf32, #tpu.memory_space<vmem>>, vector<8x384xf32>
    tpu.vector_store %arg10[%c48_35, %c0_36], %43 {strides = array<i32>} : memref<72x384xf32, #tpu.memory_space<vmem>>, vector<8x384xf32>,
    %c366_i32_37 = arith.constant 366 : i32
    %45 = tpu.dynamic_rotate %31 by %c366_i32_37 dim 1 : vector<8x384xf32>, i32 -> vector<8x384xf32>
    %c56_38 = arith.constant 56 : index
    %c0_39 = arith.constant 0 : index
    %46 = vector.load %arg10[%c56_38, %c0_39] : memref<72x384xf32, #tpu.memory_space<vmem>>, vector<8x384xf32>
    tpu.vector_store %arg10[%c56_38, %c0_39], %45 {strides = array<i32>} : memref<72x384xf32, #tpu.memory_space<vmem>>, vector<8x384xf32>,
    %c365_i32_40 = arith.constant 365 : i32
    %47 = tpu.dynamic_rotate %31 by %c365_i32_40 dim 1 : vector<8x384xf32>, i32 -> vector<8x384xf32>
    %c64_41 = arith.constant 64 : index
    %c0_42 = arith.constant 0 : index
    %48 = vector.load %arg10[%c64_41, %c0_42] : memref<72x384xf32, #tpu.memory_space<vmem>>, vector<8x384xf32>
    tpu.vector_store %arg10[%c64_41, %c0_42], %47 {strides = array<i32>} : memref<72x384xf32, #tpu.memory_space<vmem>>, vector<8x384xf32>,
    %c0_43 = arith.constant 0 : index
    %c0_44 = arith.constant 0 : index
    %49 = vector.load %arg3[%c0_43, %c0_44] : memref<8x72xf32, #tpu.memory_space<vmem>>, vector<8x72xf32>
    %c0_45 = arith.constant 0 : index
    %c0_46 = arith.constant 0 : index
    %50 = vector.load %arg10[%c0_45, %c0_46] : memref<72x384xf32, #tpu.memory_space<vmem>>, vector<72x384xf32>
    %cst_47 = arith.constant dense<0.000000e+00> : vector<8x384xf32>
    %51 = tpu.matmul %49, %50, %cst_47 {dimension_numbers = #tpu.dot_dimension_numbers<[1], [0], [0], [1], [0, 0, 1, 1], [], []>} : vector<8x72xf32>, vector<72x384xf32>, vector<8x384xf32> -> vector<8x384xf32>
    %c365_i32_48 = arith.constant 365 : i32
    %52 = tpu.dynamic_rotate %0 by %c365_i32_48 dim 1 : vector<8x384xf32>, i32 -> vector<8x384xf32>
    %c0_49 = arith.constant 0 : index
    %c0_50 = arith.constant 0 : index
    %53 = vector.load %arg6[%c0_49, %c0_50] : memref<8x1xf32, #tpu.memory_space<vmem>>, vector<8x1xf32>
    %54 = vector.broadcast %53 : vector<8x1xf32> to vector<8x384xf32>
    %55 = arith.mulf %51, %54 : vector<8x384xf32>
    %c0_51 = arith.constant 0 : index
    %c0_52 = arith.constant 0 : index
    %56 = vector.load %arg7[%c0_51, %c0_52] : memref<8x1xf32, #tpu.memory_space<vmem>>, vector<8x1xf32>
    %57 = vector.broadcast %56 : vector<8x1xf32> to vector<8x384xf32>
    %58 = arith.addf %55, %57 : vector<8x384xf32>
    %59 = arith.addf %58, %52 : vector<8x384xf32>
    %cst_53 = arith.constant 0.000000e+00 : f32
    %60 = vector.broadcast %cst_53 : f32 to vector<8x384xf32>
    %61 = arith.maximumf %59, %60 : vector<8x384xf32>
    %c0_54 = arith.constant 0 : index
    %c0_55 = arith.constant 0 : index
    %62 = vector.load %arg9[%c0_54, %c0_55] : memref<8x384xf32, #tpu.memory_space<vmem>>, vector<8x384xf32>
    tpu.vector_store %arg9[%c0_54, %c0_55], %61 {strides = array<i32>} : memref<8x384xf32, #tpu.memory_space<vmem>>, vector<8x384xf32>,
    return
  }
  func.func @transform_0(%arg0: i32) -> (i32, i32) {
    %c0_i32 = arith.constant 0 : i32
    %c0_i32_0 = arith.constant 0 : i32
    return %c0_i32, %arg0 : i32, i32
  }
  func.func @transform_1(%arg0: i32) -> (i32, i32) {
    %c0_i32 = arith.constant 0 : i32
    %c0_i32_0 = arith.constant 0 : i32
    %c0_i32_1 = arith.constant 0 : i32
    return %c0_i32, %c0_i32_0 : i32, i32
  }
  func.func @transform_2(%arg0: i32) -> (i32, i32) {
    %c0_i32 = arith.constant 0 : i32
    %c0_i32_0 = arith.constant 0 : i32
    %c0_i32_1 = arith.constant 0 : i32
    return %c0_i32, %c0_i32_0 : i32, i32
  }
  func.func @transform_3(%arg0: i32) -> (i32, i32) {
    %c0_i32 = arith.constant 0 : i32
    %c0_i32_0 = arith.constant 0 : i32
    %c0_i32_1 = arith.constant 0 : i32
    return %c0_i32, %c0_i32_0 : i32, i32
  }
  func.func @transform_4(%arg0: i32) -> (i32, i32) {
    %c0_i32 = arith.constant 0 : i32
    %c0_i32_0 = arith.constant 0 : i32
    %c0_i32_1 = arith.constant 0 : i32
    return %c0_i32, %c0_i32_0 : i32, i32
  }
  func.func @transform_5(%arg0: i32) -> (i32, i32) {
    %c0_i32 = arith.constant 0 : i32
    %c0_i32_0 = arith.constant 0 : i32
    %c0_i32_1 = arith.constant 0 : i32
    return %c0_i32, %c0_i32_0 : i32, i32
  }
  func.func @transform_6(%arg0: i32) -> (i32, i32) {
    %c0_i32 = arith.constant 0 : i32
    %c0_i32_0 = arith.constant 0 : i32
    %c0_i32_1 = arith.constant 0 : i32
    return %c0_i32, %c0_i32_0 : i32, i32
  }
  func.func @transform_7(%arg0: i32) -> (i32, i32) {
    %c0_i32 = arith.constant 0 : i32
    %c0_i32_0 = arith.constant 0 : i32
    %c0_i32_1 = arith.constant 0 : i32
    return %c0_i32, %c0_i32_0 : i32, i32
  }
  func.func @transform_8(%arg0: i32) -> (i32, i32) {
    %c0_i32 = arith.constant 0 : i32
    %c0_i32_0 = arith.constant 0 : i32
    return %c0_i32, %arg0 : i32, i32
  }
}

module attributes {stable_mosaic.version = 11 : i64} {
  func.func @_basic_block_kernel(%arg0: i32, %arg1: memref<8x384xf32, #tpu.memory_space<vmem>>, %arg2: memref<8x72xf32, #tpu.memory_space<vmem>>, %arg3: memref<8x72xf32, #tpu.memory_space<vmem>>, %arg4: memref<8x1xf32, #tpu.memory_space<vmem>>, %arg5: memref<8x1xf32, #tpu.memory_space<vmem>>, %arg6: memref<8x1xf32, #tpu.memory_space<vmem>>, %arg7: memref<8x1xf32, #tpu.memory_space<vmem>>, %arg8: memref<1x384xf32, #tpu.memory_space<vmem>>, %arg9: memref<8x384xf32, #tpu.memory_space<vmem>>, %arg10: memref<72x384xf32, #tpu.memory_space<vmem>>) attributes {dimension_semantics = [#tpu.dimension_semantics<parallel>], iteration_bounds = array<i64: 2>, scalar_prefetch = 0 : i64, scratch_operands = 1 : i64, tpu.core_type = #tpu.core_type<tc>, window_params = [{transform_indices = @transform_0, window_bounds = array<i64: 8, 384>}, {pipeline_mode = #tpu.pipeline_mode<synchronous>, transform_indices = @transform_1, window_bounds = array<i64: 8, 72>}, {pipeline_mode = #tpu.pipeline_mode<synchronous>, transform_indices = @transform_2, window_bounds = array<i64: 8, 72>}, {pipeline_mode = #tpu.pipeline_mode<synchronous>, transform_indices = @transform_3, window_bounds = array<i64: 8, 1>}, {pipeline_mode = #tpu.pipeline_mode<synchronous>, transform_indices = @transform_4, window_bounds = array<i64: 8, 1>}, {pipeline_mode = #tpu.pipeline_mode<synchronous>, transform_indices = @transform_5, window_bounds = array<i64: 8, 1>}, {pipeline_mode = #tpu.pipeline_mode<synchronous>, transform_indices = @transform_6, window_bounds = array<i64: 8, 1>}, {pipeline_mode = #tpu.pipeline_mode<synchronous>, transform_indices = @transform_7, window_bounds = array<i64: 1, 384>}, {transform_indices = @transform_8, window_bounds = array<i64: 8, 384>}]} {
    %c0 = arith.constant 0 : index
    %c0_0 = arith.constant 0 : index
    %0 = vector.load %arg1[%c0, %c0_0] : memref<8x384xf32, #tpu.memory_space<vmem>>, vector<8x384xf32>
    %c0_1 = arith.constant 0 : index
    %c0_2 = arith.constant 0 : index
    %1 = vector.load %arg10[%c0_1, %c0_2] : memref<72x384xf32, #tpu.memory_space<vmem>>, vector<8x384xf32>
    tpu.vector_store %arg10[%c0_1, %c0_2], %0 {strides = array<i32>} : memref<72x384xf32, #tpu.memory_space<vmem>>, vector<8x384xf32>,
    %2 = vector.extract_strided_slice %0 {offsets = [0, 1], sizes = [8, 383], strides = [1, 1]} : vector<8x384xf32> to vector<8x383xf32>
    %3 = vector.extract_strided_slice %0 {offsets = [0, 0], sizes = [8, 1], strides = [1, 1]} : vector<8x384xf32> to vector<8x1xf32>
    %4 = tpu.concatenate %2, %3 in 1 : vector<8x383xf32>, vector<8x1xf32> -> vector<8x384xf32>
    %c8 = arith.constant 8 : index
    %c0_3 = arith.constant 0 : index
    %5 = vector.load %arg10[%c8, %c0_3] : memref<72x384xf32, #tpu.memory_space<vmem>>, vector<8x384xf32>
    tpu.vector_store %arg10[%c8, %c0_3], %4 {strides = array<i32>} : memref<72x384xf32, #tpu.memory_space<vmem>>, vector<8x384xf32>,
    %6 = vector.extract_strided_slice %0 {offsets = [0, 2], sizes = [8, 382], strides = [1, 1]} : vector<8x384xf32> to vector<8x382xf32>
    %7 = vector.extract_strided_slice %0 {offsets = [0, 0], sizes = [8, 2], strides = [1, 1]} : vector<8x384xf32> to vector<8x2xf32>
    %8 = tpu.concatenate %6, %7 in 1 : vector<8x382xf32>, vector<8x2xf32> -> vector<8x384xf32>
    %c16 = arith.constant 16 : index
    %c0_4 = arith.constant 0 : index
    %9 = vector.load %arg10[%c16, %c0_4] : memref<72x384xf32, #tpu.memory_space<vmem>>, vector<8x384xf32>
    tpu.vector_store %arg10[%c16, %c0_4], %8 {strides = array<i32>} : memref<72x384xf32, #tpu.memory_space<vmem>>, vector<8x384xf32>,
    %10 = vector.extract_strided_slice %0 {offsets = [0, 18], sizes = [8, 366], strides = [1, 1]} : vector<8x384xf32> to vector<8x366xf32>
    %11 = vector.extract_strided_slice %0 {offsets = [0, 0], sizes = [8, 18], strides = [1, 1]} : vector<8x384xf32> to vector<8x18xf32>
    %12 = tpu.concatenate %10, %11 in 1 : vector<8x366xf32>, vector<8x18xf32> -> vector<8x384xf32>
    %c24 = arith.constant 24 : index
    %c0_5 = arith.constant 0 : index
    %13 = vector.load %arg10[%c24, %c0_5] : memref<72x384xf32, #tpu.memory_space<vmem>>, vector<8x384xf32>
    tpu.vector_store %arg10[%c24, %c0_5], %12 {strides = array<i32>} : memref<72x384xf32, #tpu.memory_space<vmem>>, vector<8x384xf32>,
    %14 = vector.extract_strided_slice %0 {offsets = [0, 19], sizes = [8, 365], strides = [1, 1]} : vector<8x384xf32> to vector<8x365xf32>
    %15 = vector.extract_strided_slice %0 {offsets = [0, 0], sizes = [8, 19], strides = [1, 1]} : vector<8x384xf32> to vector<8x19xf32>
    %16 = tpu.concatenate %14, %15 in 1 : vector<8x365xf32>, vector<8x19xf32> -> vector<8x384xf32>
    %c32 = arith.constant 32 : index
    %c0_6 = arith.constant 0 : index
    %17 = vector.load %arg10[%c32, %c0_6] : memref<72x384xf32, #tpu.memory_space<vmem>>, vector<8x384xf32>
    tpu.vector_store %arg10[%c32, %c0_6], %16 {strides = array<i32>} : memref<72x384xf32, #tpu.memory_space<vmem>>, vector<8x384xf32>,
    %18 = vector.extract_strided_slice %0 {offsets = [0, 20], sizes = [8, 364], strides = [1, 1]} : vector<8x384xf32> to vector<8x364xf32>
    %19 = vector.extract_strided_slice %0 {offsets = [0, 0], sizes = [8, 20], strides = [1, 1]} : vector<8x384xf32> to vector<8x20xf32>
    %20 = tpu.concatenate %18, %19 in 1 : vector<8x364xf32>, vector<8x20xf32> -> vector<8x384xf32>
    %c40 = arith.constant 40 : index
    %c0_7 = arith.constant 0 : index
    %21 = vector.load %arg10[%c40, %c0_7] : memref<72x384xf32, #tpu.memory_space<vmem>>, vector<8x384xf32>
    tpu.vector_store %arg10[%c40, %c0_7], %20 {strides = array<i32>} : memref<72x384xf32, #tpu.memory_space<vmem>>, vector<8x384xf32>,
    %22 = vector.extract_strided_slice %0 {offsets = [0, 36], sizes = [8, 348], strides = [1, 1]} : vector<8x384xf32> to vector<8x348xf32>
    %23 = vector.extract_strided_slice %0 {offsets = [0, 0], sizes = [8, 36], strides = [1, 1]} : vector<8x384xf32> to vector<8x36xf32>
    %24 = tpu.concatenate %22, %23 in 1 : vector<8x348xf32>, vector<8x36xf32> -> vector<8x384xf32>
    %c48 = arith.constant 48 : index
    %c0_8 = arith.constant 0 : index
    %25 = vector.load %arg10[%c48, %c0_8] : memref<72x384xf32, #tpu.memory_space<vmem>>, vector<8x384xf32>
    tpu.vector_store %arg10[%c48, %c0_8], %24 {strides = array<i32>} : memref<72x384xf32, #tpu.memory_space<vmem>>, vector<8x384xf32>,
    %26 = vector.extract_strided_slice %0 {offsets = [0, 37], sizes = [8, 347], strides = [1, 1]} : vector<8x384xf32> to vector<8x347xf32>
    %27 = vector.extract_strided_slice %0 {offsets = [0, 0], sizes = [8, 37], strides = [1, 1]} : vector<8x384xf32> to vector<8x37xf32>
    %28 = tpu.concatenate %26, %27 in 1 : vector<8x347xf32>, vector<8x37xf32> -> vector<8x384xf32>
    %c56 = arith.constant 56 : index
    %c0_9 = arith.constant 0 : index
    %29 = vector.load %arg10[%c56, %c0_9] : memref<72x384xf32, #tpu.memory_space<vmem>>, vector<8x384xf32>
    tpu.vector_store %arg10[%c56, %c0_9], %28 {strides = array<i32>} : memref<72x384xf32, #tpu.memory_space<vmem>>, vector<8x384xf32>,
    %30 = vector.extract_strided_slice %0 {offsets = [0, 38], sizes = [8, 346], strides = [1, 1]} : vector<8x384xf32> to vector<8x346xf32>
    %31 = vector.extract_strided_slice %0 {offsets = [0, 0], sizes = [8, 38], strides = [1, 1]} : vector<8x384xf32> to vector<8x38xf32>
    %32 = tpu.concatenate %30, %31 in 1 : vector<8x346xf32>, vector<8x38xf32> -> vector<8x384xf32>
    %c64 = arith.constant 64 : index
    %c0_10 = arith.constant 0 : index
    %33 = vector.load %arg10[%c64, %c0_10] : memref<72x384xf32, #tpu.memory_space<vmem>>, vector<8x384xf32>
    tpu.vector_store %arg10[%c64, %c0_10], %32 {strides = array<i32>} : memref<72x384xf32, #tpu.memory_space<vmem>>, vector<8x384xf32>,
    %c0_11 = arith.constant 0 : index
    %c0_12 = arith.constant 0 : index
    %34 = vector.load %arg2[%c0_11, %c0_12] : memref<8x72xf32, #tpu.memory_space<vmem>>, vector<8x72xf32>
    %c0_13 = arith.constant 0 : index
    %c0_14 = arith.constant 0 : index
    %35 = vector.load %arg10[%c0_13, %c0_14] : memref<72x384xf32, #tpu.memory_space<vmem>>, vector<72x384xf32>
    %cst = arith.constant dense<0.000000e+00> : vector<8x384xf32>
    %36 = tpu.matmul %34, %35, %cst {dimension_numbers = #tpu.dot_dimension_numbers<[1], [0], [0], [1], [0, 0, 1, 1], [], []>} : vector<8x72xf32>, vector<72x384xf32>, vector<8x384xf32> -> vector<8x384xf32>
    %c0_15 = arith.constant 0 : index
    %c0_16 = arith.constant 0 : index
    %37 = vector.load %arg4[%c0_15, %c0_16] : memref<8x1xf32, #tpu.memory_space<vmem>>, vector<8x1xf32>
    %38 = vector.broadcast %37 : vector<8x1xf32> to vector<8x384xf32>
    %39 = arith.mulf %36, %38 : vector<8x384xf32>
    %c0_17 = arith.constant 0 : index
    %c0_18 = arith.constant 0 : index
    %40 = vector.load %arg5[%c0_17, %c0_18] : memref<8x1xf32, #tpu.memory_space<vmem>>, vector<8x1xf32>
    %41 = vector.broadcast %40 : vector<8x1xf32> to vector<8x384xf32>
    %42 = arith.addf %39, %41 : vector<8x384xf32>
    %cst_19 = arith.constant 0.000000e+00 : f32
    %43 = vector.broadcast %cst_19 : f32 to vector<8x384xf32>
    %44 = arith.maximumf %42, %43 : vector<8x384xf32>
    %c0_20 = arith.constant 0 : index
    %c0_21 = arith.constant 0 : index
    %45 = vector.load %arg8[%c0_20, %c0_21] : memref<1x384xf32, #tpu.memory_space<vmem>>, vector<1x384xf32>
    %46 = vector.broadcast %45 : vector<1x384xf32> to vector<8x384xf32>
    %47 = arith.mulf %44, %46 : vector<8x384xf32>
    %48 = vector.extract_strided_slice %47 {offsets = [0, 365], sizes = [8, 19], strides = [1, 1]} : vector<8x384xf32> to vector<8x19xf32>
    %49 = vector.extract_strided_slice %47 {offsets = [0, 0], sizes = [8, 365], strides = [1, 1]} : vector<8x384xf32> to vector<8x365xf32>
    %50 = tpu.concatenate %48, %49 in 1 : vector<8x19xf32>, vector<8x365xf32> -> vector<8x384xf32>
    %c0_22 = arith.constant 0 : index
    %c0_23 = arith.constant 0 : index
    %51 = vector.load %arg10[%c0_22, %c0_23] : memref<72x384xf32, #tpu.memory_space<vmem>>, vector<8x384xf32>
    tpu.vector_store %arg10[%c0_22, %c0_23], %50 {strides = array<i32>} : memref<72x384xf32, #tpu.memory_space<vmem>>, vector<8x384xf32>,
    %52 = vector.extract_strided_slice %47 {offsets = [0, 366], sizes = [8, 18], strides = [1, 1]} : vector<8x384xf32> to vector<8x18xf32>
    %53 = vector.extract_strided_slice %47 {offsets = [0, 0], sizes = [8, 366], strides = [1, 1]} : vector<8x384xf32> to vector<8x366xf32>
    %54 = tpu.concatenate %52, %53 in 1 : vector<8x18xf32>, vector<8x366xf32> -> vector<8x384xf32>
    %c8_24 = arith.constant 8 : index
    %c0_25 = arith.constant 0 : index
    %55 = vector.load %arg10[%c8_24, %c0_25] : memref<72x384xf32, #tpu.memory_space<vmem>>, vector<8x384xf32>
    tpu.vector_store %arg10[%c8_24, %c0_25], %54 {strides = array<i32>} : memref<72x384xf32, #tpu.memory_space<vmem>>, vector<8x384xf32>,
    %56 = vector.extract_strided_slice %47 {offsets = [0, 367], sizes = [8, 17], strides = [1, 1]} : vector<8x384xf32> to vector<8x17xf32>
    %57 = vector.extract_strided_slice %47 {offsets = [0, 0], sizes = [8, 367], strides = [1, 1]} : vector<8x384xf32> to vector<8x367xf32>
    %58 = tpu.concatenate %56, %57 in 1 : vector<8x17xf32>, vector<8x367xf32> -> vector<8x384xf32>
    %c16_26 = arith.constant 16 : index
    %c0_27 = arith.constant 0 : index
    %59 = vector.load %arg10[%c16_26, %c0_27] : memref<72x384xf32, #tpu.memory_space<vmem>>, vector<8x384xf32>
    tpu.vector_store %arg10[%c16_26, %c0_27], %58 {strides = array<i32>} : memref<72x384xf32, #tpu.memory_space<vmem>>, vector<8x384xf32>,
    %60 = vector.extract_strided_slice %47 {offsets = [0, 383], sizes = [8, 1], strides = [1, 1]} : vector<8x384xf32> to vector<8x1xf32>
    %61 = vector.extract_strided_slice %47 {offsets = [0, 0], sizes = [8, 383], strides = [1, 1]} : vector<8x384xf32> to vector<8x383xf32>
    %62 = tpu.concatenate %60, %61 in 1 : vector<8x1xf32>, vector<8x383xf32> -> vector<8x384xf32>
    %c24_28 = arith.constant 24 : index
    %c0_29 = arith.constant 0 : index
    %63 = vector.load %arg10[%c24_28, %c0_29] : memref<72x384xf32, #tpu.memory_space<vmem>>, vector<8x384xf32>
    tpu.vector_store %arg10[%c24_28, %c0_29], %62 {strides = array<i32>} : memref<72x384xf32, #tpu.memory_space<vmem>>, vector<8x384xf32>,
    %c32_30 = arith.constant 32 : index
    %c0_31 = arith.constant 0 : index
    %64 = vector.load %arg10[%c32_30, %c0_31] : memref<72x384xf32, #tpu.memory_space<vmem>>, vector<8x384xf32>
    tpu.vector_store %arg10[%c32_30, %c0_31], %47 {strides = array<i32>} : memref<72x384xf32, #tpu.memory_space<vmem>>, vector<8x384xf32>,
    %65 = vector.extract_strided_slice %47 {offsets = [0, 1], sizes = [8, 383], strides = [1, 1]} : vector<8x384xf32> to vector<8x383xf32>
    %66 = vector.extract_strided_slice %47 {offsets = [0, 0], sizes = [8, 1], strides = [1, 1]} : vector<8x384xf32> to vector<8x1xf32>
    %67 = tpu.concatenate %65, %66 in 1 : vector<8x383xf32>, vector<8x1xf32> -> vector<8x384xf32>
    %c40_32 = arith.constant 40 : index
    %c0_33 = arith.constant 0 : index
    %68 = vector.load %arg10[%c40_32, %c0_33] : memref<72x384xf32, #tpu.memory_space<vmem>>, vector<8x384xf32>
    tpu.vector_store %arg10[%c40_32, %c0_33], %67 {strides = array<i32>} : memref<72x384xf32, #tpu.memory_space<vmem>>, vector<8x384xf32>,
    %69 = vector.extract_strided_slice %47 {offsets = [0, 17], sizes = [8, 367], strides = [1, 1]} : vector<8x384xf32> to vector<8x367xf32>
    %70 = vector.extract_strided_slice %47 {offsets = [0, 0], sizes = [8, 17], strides = [1, 1]} : vector<8x384xf32> to vector<8x17xf32>
    %71 = tpu.concatenate %69, %70 in 1 : vector<8x367xf32>, vector<8x17xf32> -> vector<8x384xf32>
    %c48_34 = arith.constant 48 : index
    %c0_35 = arith.constant 0 : index
    %72 = vector.load %arg10[%c48_34, %c0_35] : memref<72x384xf32, #tpu.memory_space<vmem>>, vector<8x384xf32>
    tpu.vector_store %arg10[%c48_34, %c0_35], %71 {strides = array<i32>} : memref<72x384xf32, #tpu.memory_space<vmem>>, vector<8x384xf32>,
    %73 = vector.extract_strided_slice %47 {offsets = [0, 18], sizes = [8, 366], strides = [1, 1]} : vector<8x384xf32> to vector<8x366xf32>
    %74 = vector.extract_strided_slice %47 {offsets = [0, 0], sizes = [8, 18], strides = [1, 1]} : vector<8x384xf32> to vector<8x18xf32>
    %75 = tpu.concatenate %73, %74 in 1 : vector<8x366xf32>, vector<8x18xf32> -> vector<8x384xf32>
    %c56_36 = arith.constant 56 : index
    %c0_37 = arith.constant 0 : index
    %76 = vector.load %arg10[%c56_36, %c0_37] : memref<72x384xf32, #tpu.memory_space<vmem>>, vector<8x384xf32>
    tpu.vector_store %arg10[%c56_36, %c0_37], %75 {strides = array<i32>} : memref<72x384xf32, #tpu.memory_space<vmem>>, vector<8x384xf32>,
    %77 = vector.extract_strided_slice %47 {offsets = [0, 19], sizes = [8, 365], strides = [1, 1]} : vector<8x384xf32> to vector<8x365xf32>
    %78 = vector.extract_strided_slice %47 {offsets = [0, 0], sizes = [8, 19], strides = [1, 1]} : vector<8x384xf32> to vector<8x19xf32>
    %79 = tpu.concatenate %77, %78 in 1 : vector<8x365xf32>, vector<8x19xf32> -> vector<8x384xf32>
    %c64_38 = arith.constant 64 : index
    %c0_39 = arith.constant 0 : index
    %80 = vector.load %arg10[%c64_38, %c0_39] : memref<72x384xf32, #tpu.memory_space<vmem>>, vector<8x384xf32>
    tpu.vector_store %arg10[%c64_38, %c0_39], %79 {strides = array<i32>} : memref<72x384xf32, #tpu.memory_space<vmem>>, vector<8x384xf32>,
    %c0_40 = arith.constant 0 : index
    %c0_41 = arith.constant 0 : index
    %81 = vector.load %arg3[%c0_40, %c0_41] : memref<8x72xf32, #tpu.memory_space<vmem>>, vector<8x72xf32>
    %c0_42 = arith.constant 0 : index
    %c0_43 = arith.constant 0 : index
    %82 = vector.load %arg10[%c0_42, %c0_43] : memref<72x384xf32, #tpu.memory_space<vmem>>, vector<72x384xf32>
    %cst_44 = arith.constant dense<0.000000e+00> : vector<8x384xf32>
    %83 = tpu.matmul %81, %82, %cst_44 {dimension_numbers = #tpu.dot_dimension_numbers<[1], [0], [0], [1], [0, 0, 1, 1], [], []>} : vector<8x72xf32>, vector<72x384xf32>, vector<8x384xf32> -> vector<8x384xf32>
    %84 = vector.extract_strided_slice %0 {offsets = [0, 19], sizes = [8, 365], strides = [1, 1]} : vector<8x384xf32> to vector<8x365xf32>
    %85 = vector.extract_strided_slice %0 {offsets = [0, 0], sizes = [8, 19], strides = [1, 1]} : vector<8x384xf32> to vector<8x19xf32>
    %86 = tpu.concatenate %84, %85 in 1 : vector<8x365xf32>, vector<8x19xf32> -> vector<8x384xf32>
    %c0_45 = arith.constant 0 : index
    %c0_46 = arith.constant 0 : index
    %87 = vector.load %arg6[%c0_45, %c0_46] : memref<8x1xf32, #tpu.memory_space<vmem>>, vector<8x1xf32>
    %88 = vector.broadcast %87 : vector<8x1xf32> to vector<8x384xf32>
    %89 = arith.mulf %83, %88 : vector<8x384xf32>
    %c0_47 = arith.constant 0 : index
    %c0_48 = arith.constant 0 : index
    %90 = vector.load %arg7[%c0_47, %c0_48] : memref<8x1xf32, #tpu.memory_space<vmem>>, vector<8x1xf32>
    %91 = vector.broadcast %90 : vector<8x1xf32> to vector<8x384xf32>
    %92 = arith.addf %89, %91 : vector<8x384xf32>
    %93 = arith.addf %92, %86 : vector<8x384xf32>
    %cst_49 = arith.constant 0.000000e+00 : f32
    %94 = vector.broadcast %cst_49 : f32 to vector<8x384xf32>
    %95 = arith.maximumf %93, %94 : vector<8x384xf32>
    %c0_50 = arith.constant 0 : index
    %c0_51 = arith.constant 0 : index
    %96 = vector.load %arg9[%c0_50, %c0_51] : memref<8x384xf32, #tpu.memory_space<vmem>>, vector<8x384xf32>
    tpu.vector_store %arg9[%c0_50, %c0_51], %95 {strides = array<i32>} : memref<8x384xf32, #tpu.memory_space<vmem>>, vector<8x384xf32>,
    return
  }
  func.func @transform_0(%arg0: i32) -> (i32, i32) {
    %c0_i32 = arith.constant 0 : i32
    %c0_i32_0 = arith.constant 0 : i32
    return %c0_i32, %arg0 : i32, i32
  }
  func.func @transform_1(%arg0: i32) -> (i32, i32) {
    %c0_i32 = arith.constant 0 : i32
    %c0_i32_0 = arith.constant 0 : i32
    %c0_i32_1 = arith.constant 0 : i32
    return %c0_i32, %c0_i32_0 : i32, i32
  }
  func.func @transform_2(%arg0: i32) -> (i32, i32) {
    %c0_i32 = arith.constant 0 : i32
    %c0_i32_0 = arith.constant 0 : i32
    %c0_i32_1 = arith.constant 0 : i32
    return %c0_i32, %c0_i32_0 : i32, i32
  }
  func.func @transform_3(%arg0: i32) -> (i32, i32) {
    %c0_i32 = arith.constant 0 : i32
    %c0_i32_0 = arith.constant 0 : i32
    %c0_i32_1 = arith.constant 0 : i32
    return %c0_i32, %c0_i32_0 : i32, i32
  }
  func.func @transform_4(%arg0: i32) -> (i32, i32) {
    %c0_i32 = arith.constant 0 : i32
    %c0_i32_0 = arith.constant 0 : i32
    %c0_i32_1 = arith.constant 0 : i32
    return %c0_i32, %c0_i32_0 : i32, i32
  }
  func.func @transform_5(%arg0: i32) -> (i32, i32) {
    %c0_i32 = arith.constant 0 : i32
    %c0_i32_0 = arith.constant 0 : i32
    %c0_i32_1 = arith.constant 0 : i32
    return %c0_i32, %c0_i32_0 : i32, i32
  }
  func.func @transform_6(%arg0: i32) -> (i32, i32) {
    %c0_i32 = arith.constant 0 : i32
    %c0_i32_0 = arith.constant 0 : i32
    %c0_i32_1 = arith.constant 0 : i32
    return %c0_i32, %c0_i32_0 : i32, i32
  }
  func.func @transform_7(%arg0: i32) -> (i32, i32) {
    %c0_i32 = arith.constant 0 : i32
    %c0_i32_0 = arith.constant 0 : i32
    %c0_i32_1 = arith.constant 0 : i32
    return %c0_i32, %c0_i32_0 : i32, i32
  }
  func.func @transform_8(%arg0: i32) -> (i32, i32) {
    %c0_i32 = arith.constant 0 : i32
    %c0_i32_0 = arith.constant 0 : i32
    return %c0_i32, %arg0 : i32, i32
  }
}

module attributes {stable_mosaic.version = 11 : i64} {
  func.func @_basic_block_kernel(%arg0: i32, %arg1: memref<8x384xf32, #tpu.memory_space<vmem>>, %arg2: memref<8x72xf32, #tpu.memory_space<vmem>>, %arg3: memref<8x72xf32, #tpu.memory_space<vmem>>, %arg4: memref<8x1xf32, #tpu.memory_space<vmem>>, %arg5: memref<8x1xf32, #tpu.memory_space<vmem>>, %arg6: memref<8x1xf32, #tpu.memory_space<vmem>>, %arg7: memref<8x1xf32, #tpu.memory_space<vmem>>, %arg8: memref<1x384xf32, #tpu.memory_space<vmem>>, %arg9: memref<8x384xf32, #tpu.memory_space<vmem>>, %arg10: memref<72x384xf32, #tpu.memory_space<vmem>>) attributes {dimension_semantics = [#tpu.dimension_semantics<parallel>], iteration_bounds = array<i64: 2>, scalar_prefetch = 0 : i64, scratch_operands = 1 : i64, tpu.core_type = #tpu.core_type<tc>, window_params = [{transform_indices = @transform_0, window_bounds = array<i64: 8, 384>}, {pipeline_mode = #tpu.pipeline_mode<synchronous>, transform_indices = @transform_1, window_bounds = array<i64: 8, 72>}, {pipeline_mode = #tpu.pipeline_mode<synchronous>, transform_indices = @transform_2, window_bounds = array<i64: 8, 72>}, {pipeline_mode = #tpu.pipeline_mode<synchronous>, transform_indices = @transform_3, window_bounds = array<i64: 8, 1>}, {pipeline_mode = #tpu.pipeline_mode<synchronous>, transform_indices = @transform_4, window_bounds = array<i64: 8, 1>}, {pipeline_mode = #tpu.pipeline_mode<synchronous>, transform_indices = @transform_5, window_bounds = array<i64: 8, 1>}, {pipeline_mode = #tpu.pipeline_mode<synchronous>, transform_indices = @transform_6, window_bounds = array<i64: 8, 1>}, {pipeline_mode = #tpu.pipeline_mode<synchronous>, transform_indices = @transform_7, window_bounds = array<i64: 1, 384>}, {transform_indices = @transform_8, window_bounds = array<i64: 8, 384>}]} {
    %c0 = arith.constant 0 : index
    %c0_0 = arith.constant 0 : index
    %0 = vector.load %arg1[%c0, %c0_0] : memref<8x384xf32, #tpu.memory_space<vmem>>, vector<8x384xf32>
    %c0_1 = arith.constant 0 : index
    %c0_2 = arith.constant 0 : index
    %1 = vector.load %arg10[%c0_1, %c0_2] : memref<72x384xf32, #tpu.memory_space<vmem>>, vector<8x384xf32>
    tpu.vector_store %arg10[%c0_1, %c0_2], %0 {strides = array<i32>} : memref<72x384xf32, #tpu.memory_space<vmem>>, vector<8x384xf32>,
    %2 = vector.extract_strided_slice %0 {offsets = [0, 1], sizes = [8, 383], strides = [1, 1]} : vector<8x384xf32> to vector<8x383xf32>
    %3 = vector.extract_strided_slice %0 {offsets = [0, 0], sizes = [8, 1], strides = [1, 1]} : vector<8x384xf32> to vector<8x1xf32>
    %4 = tpu.concatenate %2, %3 in 1 : vector<8x383xf32>, vector<8x1xf32> -> vector<8x384xf32>
    %c8 = arith.constant 8 : index
    %c0_3 = arith.constant 0 : index
    %5 = vector.load %arg10[%c8, %c0_3] : memref<72x384xf32, #tpu.memory_space<vmem>>, vector<8x384xf32>
    tpu.vector_store %arg10[%c8, %c0_3], %4 {strides = array<i32>} : memref<72x384xf32, #tpu.memory_space<vmem>>, vector<8x384xf32>,
    %6 = vector.extract_strided_slice %0 {offsets = [0, 2], sizes = [8, 382], strides = [1, 1]} : vector<8x384xf32> to vector<8x382xf32>
    %7 = vector.extract_strided_slice %0 {offsets = [0, 0], sizes = [8, 2], strides = [1, 1]} : vector<8x384xf32> to vector<8x2xf32>
    %8 = tpu.concatenate %6, %7 in 1 : vector<8x382xf32>, vector<8x2xf32> -> vector<8x384xf32>
    %c16 = arith.constant 16 : index
    %c0_4 = arith.constant 0 : index
    %9 = vector.load %arg10[%c16, %c0_4] : memref<72x384xf32, #tpu.memory_space<vmem>>, vector<8x384xf32>
    tpu.vector_store %arg10[%c16, %c0_4], %8 {strides = array<i32>} : memref<72x384xf32, #tpu.memory_space<vmem>>, vector<8x384xf32>,
    %10 = vector.extract_strided_slice %0 {offsets = [0, 18], sizes = [8, 366], strides = [1, 1]} : vector<8x384xf32> to vector<8x366xf32>
    %11 = vector.extract_strided_slice %0 {offsets = [0, 0], sizes = [8, 18], strides = [1, 1]} : vector<8x384xf32> to vector<8x18xf32>
    %12 = tpu.concatenate %10, %11 in 1 : vector<8x366xf32>, vector<8x18xf32> -> vector<8x384xf32>
    %c24 = arith.constant 24 : index
    %c0_5 = arith.constant 0 : index
    %13 = vector.load %arg10[%c24, %c0_5] : memref<72x384xf32, #tpu.memory_space<vmem>>, vector<8x384xf32>
    tpu.vector_store %arg10[%c24, %c0_5], %12 {strides = array<i32>} : memref<72x384xf32, #tpu.memory_space<vmem>>, vector<8x384xf32>,
    %14 = vector.extract_strided_slice %0 {offsets = [0, 19], sizes = [8, 365], strides = [1, 1]} : vector<8x384xf32> to vector<8x365xf32>
    %15 = vector.extract_strided_slice %0 {offsets = [0, 0], sizes = [8, 19], strides = [1, 1]} : vector<8x384xf32> to vector<8x19xf32>
    %16 = tpu.concatenate %14, %15 in 1 : vector<8x365xf32>, vector<8x19xf32> -> vector<8x384xf32>
    %c32 = arith.constant 32 : index
    %c0_6 = arith.constant 0 : index
    %17 = vector.load %arg10[%c32, %c0_6] : memref<72x384xf32, #tpu.memory_space<vmem>>, vector<8x384xf32>
    tpu.vector_store %arg10[%c32, %c0_6], %16 {strides = array<i32>} : memref<72x384xf32, #tpu.memory_space<vmem>>, vector<8x384xf32>,
    %18 = vector.extract_strided_slice %0 {offsets = [0, 20], sizes = [8, 364], strides = [1, 1]} : vector<8x384xf32> to vector<8x364xf32>
    %19 = vector.extract_strided_slice %0 {offsets = [0, 0], sizes = [8, 20], strides = [1, 1]} : vector<8x384xf32> to vector<8x20xf32>
    %20 = tpu.concatenate %18, %19 in 1 : vector<8x364xf32>, vector<8x20xf32> -> vector<8x384xf32>
    %c40 = arith.constant 40 : index
    %c0_7 = arith.constant 0 : index
    %21 = vector.load %arg10[%c40, %c0_7] : memref<72x384xf32, #tpu.memory_space<vmem>>, vector<8x384xf32>
    tpu.vector_store %arg10[%c40, %c0_7], %20 {strides = array<i32>} : memref<72x384xf32, #tpu.memory_space<vmem>>, vector<8x384xf32>,
    %22 = vector.extract_strided_slice %0 {offsets = [0, 36], sizes = [8, 348], strides = [1, 1]} : vector<8x384xf32> to vector<8x348xf32>
    %23 = vector.extract_strided_slice %0 {offsets = [0, 0], sizes = [8, 36], strides = [1, 1]} : vector<8x384xf32> to vector<8x36xf32>
    %24 = tpu.concatenate %22, %23 in 1 : vector<8x348xf32>, vector<8x36xf32> -> vector<8x384xf32>
    %c48 = arith.constant 48 : index
    %c0_8 = arith.constant 0 : index
    %25 = vector.load %arg10[%c48, %c0_8] : memref<72x384xf32, #tpu.memory_space<vmem>>, vector<8x384xf32>
    tpu.vector_store %arg10[%c48, %c0_8], %24 {strides = array<i32>} : memref<72x384xf32, #tpu.memory_space<vmem>>, vector<8x384xf32>,
    %26 = vector.extract_strided_slice %0 {offsets = [0, 37], sizes = [8, 347], strides = [1, 1]} : vector<8x384xf32> to vector<8x347xf32>
    %27 = vector.extract_strided_slice %0 {offsets = [0, 0], sizes = [8, 37], strides = [1, 1]} : vector<8x384xf32> to vector<8x37xf32>
    %28 = tpu.concatenate %26, %27 in 1 : vector<8x347xf32>, vector<8x37xf32> -> vector<8x384xf32>
    %c56 = arith.constant 56 : index
    %c0_9 = arith.constant 0 : index
    %29 = vector.load %arg10[%c56, %c0_9] : memref<72x384xf32, #tpu.memory_space<vmem>>, vector<8x384xf32>
    tpu.vector_store %arg10[%c56, %c0_9], %28 {strides = array<i32>} : memref<72x384xf32, #tpu.memory_space<vmem>>, vector<8x384xf32>,
    %30 = vector.extract_strided_slice %0 {offsets = [0, 38], sizes = [8, 346], strides = [1, 1]} : vector<8x384xf32> to vector<8x346xf32>
    %31 = vector.extract_strided_slice %0 {offsets = [0, 0], sizes = [8, 38], strides = [1, 1]} : vector<8x384xf32> to vector<8x38xf32>
    %32 = tpu.concatenate %30, %31 in 1 : vector<8x346xf32>, vector<8x38xf32> -> vector<8x384xf32>
    %c64 = arith.constant 64 : index
    %c0_10 = arith.constant 0 : index
    %33 = vector.load %arg10[%c64, %c0_10] : memref<72x384xf32, #tpu.memory_space<vmem>>, vector<8x384xf32>
    tpu.vector_store %arg10[%c64, %c0_10], %32 {strides = array<i32>} : memref<72x384xf32, #tpu.memory_space<vmem>>, vector<8x384xf32>,
    %c0_11 = arith.constant 0 : index
    %c0_12 = arith.constant 0 : index
    %34 = vector.load %arg2[%c0_11, %c0_12] : memref<8x72xf32, #tpu.memory_space<vmem>>, vector<8x72xf32>
    %c0_13 = arith.constant 0 : index
    %c0_14 = arith.constant 0 : index
    %35 = vector.load %arg10[%c0_13, %c0_14] : memref<72x384xf32, #tpu.memory_space<vmem>>, vector<72x384xf32>
    %cst = arith.constant dense<0.000000e+00> : vector<8x384xf32>
    %36 = tpu.matmul %34, %35, %cst {dimension_numbers = #tpu.dot_dimension_numbers<[1], [0], [0], [1], [0, 0, 1, 1], [], []>} : vector<8x72xf32>, vector<72x384xf32>, vector<8x384xf32> -> vector<8x384xf32>
    %c0_15 = arith.constant 0 : index
    %c0_16 = arith.constant 0 : index
    %37 = vector.load %arg4[%c0_15, %c0_16] : memref<8x1xf32, #tpu.memory_space<vmem>>, vector<8x1xf32>
    %38 = vector.broadcast %37 : vector<8x1xf32> to vector<8x384xf32>
    %39 = arith.mulf %36, %38 : vector<8x384xf32>
    %c0_17 = arith.constant 0 : index
    %c0_18 = arith.constant 0 : index
    %40 = vector.load %arg5[%c0_17, %c0_18] : memref<8x1xf32, #tpu.memory_space<vmem>>, vector<8x1xf32>
    %41 = vector.broadcast %40 : vector<8x1xf32> to vector<8x384xf32>
    %42 = arith.addf %39, %41 : vector<8x384xf32>
    %cst_19 = arith.constant 0.000000e+00 : f32
    %43 = vector.broadcast %cst_19 : f32 to vector<8x384xf32>
    %44 = arith.maximumf %42, %43 : vector<8x384xf32>
    %c0_20 = arith.constant 0 : index
    %c0_21 = arith.constant 0 : index
    %45 = vector.load %arg8[%c0_20, %c0_21] : memref<1x384xf32, #tpu.memory_space<vmem>>, vector<1x384xf32>
    %46 = vector.broadcast %45 : vector<1x384xf32> to vector<8x384xf32>
    %47 = arith.mulf %44, %46 : vector<8x384xf32>
    %48 = vector.extract_strided_slice %47 {offsets = [0, 365], sizes = [8, 19], strides = [1, 1]} : vector<8x384xf32> to vector<8x19xf32>
    %49 = vector.extract_strided_slice %47 {offsets = [0, 0], sizes = [8, 365], strides = [1, 1]} : vector<8x384xf32> to vector<8x365xf32>
    %50 = tpu.concatenate %48, %49 in 1 : vector<8x19xf32>, vector<8x365xf32> -> vector<8x384xf32>
    %c0_22 = arith.constant 0 : index
    %c0_23 = arith.constant 0 : index
    %51 = vector.load %arg10[%c0_22, %c0_23] : memref<72x384xf32, #tpu.memory_space<vmem>>, vector<8x384xf32>
    tpu.vector_store %arg10[%c0_22, %c0_23], %50 {strides = array<i32>} : memref<72x384xf32, #tpu.memory_space<vmem>>, vector<8x384xf32>,
    %52 = vector.extract_strided_slice %47 {offsets = [0, 366], sizes = [8, 18], strides = [1, 1]} : vector<8x384xf32> to vector<8x18xf32>
    %53 = vector.extract_strided_slice %47 {offsets = [0, 0], sizes = [8, 366], strides = [1, 1]} : vector<8x384xf32> to vector<8x366xf32>
    %54 = tpu.concatenate %52, %53 in 1 : vector<8x18xf32>, vector<8x366xf32> -> vector<8x384xf32>
    %c8_24 = arith.constant 8 : index
    %c0_25 = arith.constant 0 : index
    %55 = vector.load %arg10[%c8_24, %c0_25] : memref<72x384xf32, #tpu.memory_space<vmem>>, vector<8x384xf32>
    tpu.vector_store %arg10[%c8_24, %c0_25], %54 {strides = array<i32>} : memref<72x384xf32, #tpu.memory_space<vmem>>, vector<8x384xf32>,
    %56 = vector.extract_strided_slice %47 {offsets = [0, 367], sizes = [8, 17], strides = [1, 1]} : vector<8x384xf32> to vector<8x17xf32>
    %57 = vector.extract_strided_slice %47 {offsets = [0, 0], sizes = [8, 367], strides = [1, 1]} : vector<8x384xf32> to vector<8x367xf32>
    %58 = tpu.concatenate %56, %57 in 1 : vector<8x17xf32>, vector<8x367xf32> -> vector<8x384xf32>
    %c16_26 = arith.constant 16 : index
    %c0_27 = arith.constant 0 : index
    %59 = vector.load %arg10[%c16_26, %c0_27] : memref<72x384xf32, #tpu.memory_space<vmem>>, vector<8x384xf32>
    tpu.vector_store %arg10[%c16_26, %c0_27], %58 {strides = array<i32>} : memref<72x384xf32, #tpu.memory_space<vmem>>, vector<8x384xf32>,
    %60 = vector.extract_strided_slice %47 {offsets = [0, 383], sizes = [8, 1], strides = [1, 1]} : vector<8x384xf32> to vector<8x1xf32>
    %61 = vector.extract_strided_slice %47 {offsets = [0, 0], sizes = [8, 383], strides = [1, 1]} : vector<8x384xf32> to vector<8x383xf32>
    %62 = tpu.concatenate %60, %61 in 1 : vector<8x1xf32>, vector<8x383xf32> -> vector<8x384xf32>
    %c24_28 = arith.constant 24 : index
    %c0_29 = arith.constant 0 : index
    %63 = vector.load %arg10[%c24_28, %c0_29] : memref<72x384xf32, #tpu.memory_space<vmem>>, vector<8x384xf32>
    tpu.vector_store %arg10[%c24_28, %c0_29], %62 {strides = array<i32>} : memref<72x384xf32, #tpu.memory_space<vmem>>, vector<8x384xf32>,
    %c32_30 = arith.constant 32 : index
    %c0_31 = arith.constant 0 : index
    %64 = vector.load %arg10[%c32_30, %c0_31] : memref<72x384xf32, #tpu.memory_space<vmem>>, vector<8x384xf32>
    tpu.vector_store %arg10[%c32_30, %c0_31], %47 {strides = array<i32>} : memref<72x384xf32, #tpu.memory_space<vmem>>, vector<8x384xf32>,
    %65 = vector.extract_strided_slice %47 {offsets = [0, 1], sizes = [8, 383], strides = [1, 1]} : vector<8x384xf32> to vector<8x383xf32>
    %66 = vector.extract_strided_slice %47 {offsets = [0, 0], sizes = [8, 1], strides = [1, 1]} : vector<8x384xf32> to vector<8x1xf32>
    %67 = tpu.concatenate %65, %66 in 1 : vector<8x383xf32>, vector<8x1xf32> -> vector<8x384xf32>
    %c40_32 = arith.constant 40 : index
    %c0_33 = arith.constant 0 : index
    %68 = vector.load %arg10[%c40_32, %c0_33] : memref<72x384xf32, #tpu.memory_space<vmem>>, vector<8x384xf32>
    tpu.vector_store %arg10[%c40_32, %c0_33], %67 {strides = array<i32>} : memref<72x384xf32, #tpu.memory_space<vmem>>, vector<8x384xf32>,
    %69 = vector.extract_strided_slice %47 {offsets = [0, 17], sizes = [8, 367], strides = [1, 1]} : vector<8x384xf32> to vector<8x367xf32>
    %70 = vector.extract_strided_slice %47 {offsets = [0, 0], sizes = [8, 17], strides = [1, 1]} : vector<8x384xf32> to vector<8x17xf32>
    %71 = tpu.concatenate %69, %70 in 1 : vector<8x367xf32>, vector<8x17xf32> -> vector<8x384xf32>
    %c48_34 = arith.constant 48 : index
    %c0_35 = arith.constant 0 : index
    %72 = vector.load %arg10[%c48_34, %c0_35] : memref<72x384xf32, #tpu.memory_space<vmem>>, vector<8x384xf32>
    tpu.vector_store %arg10[%c48_34, %c0_35], %71 {strides = array<i32>} : memref<72x384xf32, #tpu.memory_space<vmem>>, vector<8x384xf32>,
    %73 = vector.extract_strided_slice %47 {offsets = [0, 18], sizes = [8, 366], strides = [1, 1]} : vector<8x384xf32> to vector<8x366xf32>
    %74 = vector.extract_strided_slice %47 {offsets = [0, 0], sizes = [8, 18], strides = [1, 1]} : vector<8x384xf32> to vector<8x18xf32>
    %75 = tpu.concatenate %73, %74 in 1 : vector<8x366xf32>, vector<8x18xf32> -> vector<8x384xf32>
    %c56_36 = arith.constant 56 : index
    %c0_37 = arith.constant 0 : index
    %76 = vector.load %arg10[%c56_36, %c0_37] : memref<72x384xf32, #tpu.memory_space<vmem>>, vector<8x384xf32>
    tpu.vector_store %arg10[%c56_36, %c0_37], %75 {strides = array<i32>} : memref<72x384xf32, #tpu.memory_space<vmem>>, vector<8x384xf32>,
    %77 = vector.extract_strided_slice %47 {offsets = [0, 19], sizes = [8, 365], strides = [1, 1]} : vector<8x384xf32> to vector<8x365xf32>
    %78 = vector.extract_strided_slice %47 {offsets = [0, 0], sizes = [8, 19], strides = [1, 1]} : vector<8x384xf32> to vector<8x19xf32>
    %79 = tpu.concatenate %77, %78 in 1 : vector<8x365xf32>, vector<8x19xf32> -> vector<8x384xf32>
    %c64_38 = arith.constant 64 : index
    %c0_39 = arith.constant 0 : index
    %80 = vector.load %arg10[%c64_38, %c0_39] : memref<72x384xf32, #tpu.memory_space<vmem>>, vector<8x384xf32>
    tpu.vector_store %arg10[%c64_38, %c0_39], %79 {strides = array<i32>} : memref<72x384xf32, #tpu.memory_space<vmem>>, vector<8x384xf32>,
    %c0_40 = arith.constant 0 : index
    %c0_41 = arith.constant 0 : index
    %81 = vector.load %arg3[%c0_40, %c0_41] : memref<8x72xf32, #tpu.memory_space<vmem>>, vector<8x72xf32>
    %c0_42 = arith.constant 0 : index
    %c0_43 = arith.constant 0 : index
    %82 = vector.load %arg10[%c0_42, %c0_43] : memref<72x384xf32, #tpu.memory_space<vmem>>, vector<72x384xf32>
    %cst_44 = arith.constant dense<0.000000e+00> : vector<8x384xf32>
    %83 = tpu.matmul %81, %82, %cst_44 {dimension_numbers = #tpu.dot_dimension_numbers<[1], [0], [0], [1], [0, 0, 1, 1], [], []>} : vector<8x72xf32>, vector<72x384xf32>, vector<8x384xf32> -> vector<8x384xf32>
    %84 = vector.extract_strided_slice %0 {offsets = [0, 19], sizes = [8, 365], strides = [1, 1]} : vector<8x384xf32> to vector<8x365xf32>
    %85 = vector.extract_strided_slice %0 {offsets = [0, 0], sizes = [8, 19], strides = [1, 1]} : vector<8x384xf32> to vector<8x19xf32>
    %86 = tpu.concatenate %84, %85 in 1 : vector<8x365xf32>, vector<8x19xf32> -> vector<8x384xf32>
    %c0_45 = arith.constant 0 : index
    %c0_46 = arith.constant 0 : index
    %87 = vector.load %arg6[%c0_45, %c0_46] : memref<8x1xf32, #tpu.memory_space<vmem>>, vector<8x1xf32>
    %88 = vector.broadcast %87 : vector<8x1xf32> to vector<8x384xf32>
    %89 = arith.mulf %83, %88 : vector<8x384xf32>
    %c0_47 = arith.constant 0 : index
    %c0_48 = arith.constant 0 : index
    %90 = vector.load %arg7[%c0_47, %c0_48] : memref<8x1xf32, #tpu.memory_space<vmem>>, vector<8x1xf32>
    %91 = vector.broadcast %90 : vector<8x1xf32> to vector<8x384xf32>
    %92 = arith.addf %89, %91 : vector<8x384xf32>
    %93 = arith.addf %92, %86 : vector<8x384xf32>
    %cst_49 = arith.constant 0.000000e+00 : f32
    %94 = vector.broadcast %cst_49 : f32 to vector<8x384xf32>
    %95 = arith.maximumf %93, %94 : vector<8x384xf32>
    %c0_50 = arith.constant 0 : index
    %c0_51 = arith.constant 0 : index
    %96 = vector.load %arg9[%c0_50, %c0_51] : memref<8x384xf32, #tpu.memory_space<vmem>>, vector<8x384xf32>
    tpu.vector_store %arg9[%c0_50, %c0_51], %95 {strides = array<i32>} : memref<8x384xf32, #tpu.memory_space<vmem>>, vector<8x384xf32>,
    return
  }
  func.func @transform_0(%arg0: i32) -> (i32, i32) {
    %c0_i32 = arith.constant 0 : i32
    %c0_i32_0 = arith.constant 0 : i32
    return %c0_i32, %arg0 : i32, i32
  }
  func.func @transform_1(%arg0: i32) -> (i32, i32) {
    %c0_i32 = arith.constant 0 : i32
    %c0_i32_0 = arith.constant 0 : i32
    %c0_i32_1 = arith.constant 0 : i32
    return %c0_i32, %c0_i32_0 : i32, i32
  }
  func.func @transform_2(%arg0: i32) -> (i32, i32) {
    %c0_i32 = arith.constant 0 : i32
    %c0_i32_0 = arith.constant 0 : i32
    %c0_i32_1 = arith.constant 0 : i32
    return %c0_i32, %c0_i32_0 : i32, i32
  }
  func.func @transform_3(%arg0: i32) -> (i32, i32) {
    %c0_i32 = arith.constant 0 : i32
    %c0_i32_0 = arith.constant 0 : i32
    %c0_i32_1 = arith.constant 0 : i32
    return %c0_i32, %c0_i32_0 : i32, i32
  }
  func.func @transform_4(%arg0: i32) -> (i32, i32) {
    %c0_i32 = arith.constant 0 : i32
    %c0_i32_0 = arith.constant 0 : i32
    %c0_i32_1 = arith.constant 0 : i32
    return %c0_i32, %c0_i32_0 : i32, i32
  }
  func.func @transform_5(%arg0: i32) -> (i32, i32) {
    %c0_i32 = arith.constant 0 : i32
    %c0_i32_0 = arith.constant 0 : i32
    %c0_i32_1 = arith.constant 0 : i32
    return %c0_i32, %c0_i32_0 : i32, i32
  }
  func.func @transform_6(%arg0: i32) -> (i32, i32) {
    %c0_i32 = arith.constant 0 : i32
    %c0_i32_0 = arith.constant 0 : i32
    %c0_i32_1 = arith.constant 0 : i32
    return %c0_i32, %c0_i32_0 : i32, i32
  }
  func.func @transform_7(%arg0: i32) -> (i32, i32) {
    %c0_i32 = arith.constant 0 : i32
    %c0_i32_0 = arith.constant 0 : i32
    %c0_i32_1 = arith.constant 0 : i32
    return %c0_i32, %c0_i32_0 : i32, i32
  }
  func.func @transform_8(%arg0: i32) -> (i32, i32) {
    %c0_i32 = arith.constant 0 : i32
    %c0_i32_0 = arith.constant 0 : i32
    return %c0_i32, %arg0 : i32, i32
  }
}

</mosaic_0001>

<bundles_post_ra>
// kernel: tpu_custom_call.1
= control target key start
LH: loop header
LB: loop body
LE: loop exit
PB: predicated region body
PF: predicated region fallthrough
CT: control target
= control target key end

     0   :  { %13 = vsyncpa [#allocation4], 0  ;;  %s1678_s0 = inlined_call_operand.hbm [shape: f32[8,768], index: 0, kind: input, shape index: {}]   ;;  %s1679_s1 = inlined_call_operand.vmem [shape: f32[8,72], index: 1, kind: input, shape index: {}]   ;;  %s1680_s2 = inlined_call_operand.vmem [shape: f32[8,72], index: 2, kind: input, shape index: {}]   ;;  %s1681_s3 = inlined_call_operand.vmem [shape: f32[8,1], index: 3, kind: input, shape index: {}]   ;;  %s1682_s4 = inlined_call_operand.vmem [shape: f32[8,1], index: 4, kind: input, shape index: {}]   ;;  %s1683_s5 = inlined_call_operand.vmem [shape: f32[8,1], index: 5, kind: input, shape index: {}]   ;;  %s1684_s6 = inlined_call_operand.vmem [shape: f32[8,1], index: 6, kind: input, shape index: {}]   ;;  %s1685_s7 = inlined_call_operand.vmem [shape: f32[1,384], index: 7, kind: input, shape index: {}]   ;;  %s1686_s8 = inlined_call_operand.hbm [shape: f32[8,768], index: 8, kind: output, shape index: {}]  }
   0x1   :  { %15 = vsyncpa [#allocation4 + $0x1], 0 }
   0x2   :  { %16 = vsyncpa [#allocation5], 0 }
   0x3   :  { %18 = vsyncpa [#allocation5 + $0x1], 0  ;;  %s1337_s27 = smov 0   ;;  %s1339_s28 = smov 0  }
   0x4   :  { %s1341_s29 = smov 0   ;;  %s1343_s30 = smov 0  }
   0x5 LB: > { %1690 = sst [smem:[#allocation9_spill]] %s1268_s29  ;;  %s1358_s9 = sadd.s32 4294967295, %s1272_s30   ;;  %s1272_s30 = sphi %s1343_s30, %s1706_s30   ;;  %s1268_s29 = sphi %s1341_s29, %s1703_s29   ;;  %s1264_s28 = sphi %s1339_s28, %s1705_s28   ;;  %s1260_s27 = sphi %s1337_s27, %s1704_s27  }
   0x6   : > { %s1038_s10 = sadd.s32 4294967294, %s1272_s30   ;;  %s1362_s11 = sadd.s32 1, %s1272_s30  }
   0x7   : > { %s31_s12 = sadd.s32 1, %s1268_s29  ;;  %s28_s13 = ssub.s32 %s1272_s30, %s1362_s11 }
   0x8   : > { %p38_p0 = scmp.ne.s32.totalorder %s1268_s29, %s1264_s28  ;;  %p29_p1 = scmp.eq.s32.totalorder %s28_s13, 0 }
   0x9   : > { %p39_p2 = scmp.eq.s32.totalorder %s1272_s30, 0  ;;  %p44_p3 = scmp.ne.s32.totalorder %s1264_s28, %s1260_s27 }
   0xa   : > { %p45_p4 = scmp.eq.s32.totalorder %s1358_s9, 0  ;;  %p215_p7 = scmp.eq.s32.totalorder %s1358_s9, 1 }
   0xb   : > { %s1374_s14 = scalar_select %p29_p1, %s1268_s29, %s31_s12  }
   0xc   : > { %p40_p5 = por %p39_p2, %p38_p0  ;;  %p1376_p6 = por %p45_p4, %p44_p3 }
   0xd   : > { %1691 = sst [smem:[#allocation10_spill]] %s1374_s14  ;;  %p221_p8 = scmp.eq.s32.totalorder %s1038_s10, 1 }
   0xe   : > { %s1692_s15 = scalar_select %p1376_p6, 1, 0 }
   0xf   : > { %p1128_p10 = scmp.lt.s32.totalorder %s1272_s30, 2  ;;  %p1383_p11 = por %p215_p7, %p38_p0 }
  0x10   : > { %p1387_p12 = por %p221_p8, %p44_p3  ;;  %s262_s18 = sand.u32 1, %s1268_s29  }
  0x11   : > { %s1693_s16 = scalar_select %p1383_p11, 1, 0 }
  0x12   : > { %s1694_s17 = scalar_select %p1387_p12, 1, 0 }
  0x13   : > { %s1050_s19 = smul.u32 384, %s1272_s30  ;;  %p1398_p13 = pnand %p1128_p10, %p40_p5 }
  0x14   : > { %s1114_s20 = smul.u32 24, %s262_s18  ;;  %s263_s10 = scalar_lea.sflag [#allocation4], %s262_s18 }
  0x15   : > { %s1396_s23 = scalar_lea.hbm %s1678_s0, %s1050_s19  ;;  %p1182_p3 = pneg %p1398_p13 }
  0x16   : > { %s266_s25 = scalar_lea.vmem [#allocation3], %s1114_s20  ;;  %s1180_s12 = scalar_lea.hbm %s1396_s23, 384 }
  0x17   : > { %s274_s26 = sshll.u32 %s266_s25, 4  ;;  %p1181_p2 = scmp.ne.s32.totalorder %s1396_s23, %s1180_s12  ;;  %s275_s26 = int_to_ptr.vmem [resolvable:$true] %s274_s26 }
  0x18   : > { %s1185_s21 = scalar_lea.hbm %s1678_s0, 768  ;;  %p1186_p5 = scmp.lt.s32.totalorder %s1396_s23, %s1678_s0 }
  0x19   : > { %p1183_p4 = pnand %p1182_p3, %p1181_p2  ;;  %p1187_p8 = scmp.lt.s32.totalorder %s1185_s21, %s1180_s12 }
  0x1b   : > { %p1184_p7 = pneg %p1183_p4  ;;  %p1188_p10 = por %p1187_p8, %p1186_p5 }
  0x1d   : > { %p1189_p9 = pnand %p1188_p10, %p1184_p7 }
  0x1f   : > { %1192 = shalt.err (!%p1189_p9)
}
  0x20   : > { %s1193_s20 = scalar_lea.vmem %s275_s26, 384  ;;  %s1274_s18 = smov [#allocation3]  }
  0x21   : > { %p1194_p0 = scmp.ne.s32.totalorder %s275_s26, %s1193_s20  ;;  %s1198_s25 = sshll.u32 %s1274_s18, 4  ;;  %s1199_s25 = int_to_ptr.vmem [resolvable:$false] %s1198_s25 }
  0x22   : > { %s1200_s29 = scalar_lea.vmem %s1199_s25, 768  ;;  %p1201_p2 = scmp.lt.s32.totalorder %s275_s26, %s1199_s25 }
  0x23   : > { %p1196_p1 = pnand %p1194_p0, %p1182_p3  ;;  %p1202_p4 = scmp.lt.s32.totalorder %s1200_s29, %s1193_s20 }
  0x25   : > { %p1197_p12 = pneg %p1196_p1  ;;  %p1203_p11 = por %p1202_p4, %p1201_p2 }
  0x27   : > { %p1204_p6 = pnand %p1203_p11, %p1197_p12 }
  0x29   : > { %1207 = shalt.err (!%p1204_p6)
}
  0x2a   : > { %1123 = dma.hbm_to_vmem [thread:$0]  (!%p1398_p13), %s1396_s23, 384, %s275_s26, %s263_s10  }
  0x2b   : > { %p1696_p9 = scmp.lt.s32.totalorder %s1272_s30, 3  ;;  %p1697_p7 = scmp.ge.s32.totalorder %s1272_s30, 1 }
  0x2d   : > { %p280_p5 = pnand %p1697_p7, %p1696_p9 }
  0x2e   : > { %s1423_s14 = sand.u32 (!%p280_p5), 1, %s1264_s28   ;;  %p1698_p6 = scmp.ne.s32.totalorder (!%p280_p5), %s1692_s15, 0 }
  0x2f   : > { %283 = sbr.rel (%p280_p5) target bundleno = 797 (0x31d), region = 52  ;;  %s286_s12 = scalar_lea.sflag (!%p280_p5), [#allocation4], %s1423_s14 }
  0x30   : > { %s1115_s29 = smul.u32 (!%p280_p5), 24, %s1423_s14 }
  0x32   : > { %s289_s13 = scalar_lea.vmem (!%p280_p5), [#allocation3], %s1115_s29 }
  0x34   : > { %1251 = dma.done.wait (%p1698_p6), %s286_s12, 384  }
  0x35   : > { %1253 = vsyncadd (%p1698_p6), %s286_s12, 4294966912  ;;  %v1275_v0 = vmov 0.0   ;;  %v1435_v1 = vld [vmem:[%s289_s13 + $0x8] sm:$0xff]  ;;  %v1437_v2 = vld [vmem:[%s289_s13] sm:$0xff]  ;;  %s1276_s23 = smov 90   ;;  %s1277_s15 = smov 91   ;;  %v336_v7 = vlaneseq }
  0x36   : > { %1072 = vmatprep.subr.mxu1 %v1275_v0  ;;  %532 = vmatprep.mubr.f32.mxu0 %v1275_v0  ;;  %v1441_v3 = vld [vmem:[%s289_s13 + $0x10] sm:$0xff]  ;;  %s1278_s24 = smov 92   ;;  %s1279_s26 = smov 108   ;;  %vm1282_vm0 = vmmov 0   ;;  %v1284_v4 = vmov 0   ;;  %v609_v5 = vld [vmem:[%s1681_s3] sm:$0xff] }
  0x37   : > { %425 = vrot.lane.b32.xlu0 %v1435_v1, %s1276_s23  ;;  %423 = vrot.lane.b32.xlu1 %v1437_v2, %s1276_s23  ;;  %s1280_s10 = smov 109   ;;  %s1281_s19 = smov 110   ;;  %v618_v6 = vld [vmem:[%s1682_s4] sm:$0xff]  ;;  %v1483_v8 = vand.u32 127, %v336_v7  ;;  %vm464_vm9 = vcmask 588800   ;;  %v633_v58 = vshrl.u32 %v336_v7, 7 }
  0x38   : > { %1090 = vmatprep.mubr.msk.f32.mxu1 %vm1282_vm0, %v1275_v0  ;;  %s1283_s21 = smov 126   ;;  %1178 = vset.pattern.permute.xlu0 %v1284_v4  ;;  %s1285_s22 = smov 127   ;;  %v436_v57 = vld [vmem:[%s1679_s1] sm:$0xff] }
  0x39   : > { %1179 = vset.pattern.permute.xlu1 %v1284_v4  ;;  %vm429_vm1 = vcmp.lt.s32.totalorder %v1483_v8, 90  ;;  %vm416_vm2 = vcmp.lt.s32.totalorder %v1483_v8, 91  ;;  %vm403_vm3 = vcmp.lt.s32.totalorder %v1483_v8, 92  ;;  %vm390_vm4 = vcmp.lt.s32.totalorder %v1483_v8, 108  ;;  %v630_v62 = vld [vmem:[%s1685_s7] sm:$0x7] }
  0x3a   : > { %vm377_vm5 = vcmp.lt.s32.totalorder %v1483_v8, 109  ;;  %vm364_vm6 = vcmp.lt.s32.totalorder %v1483_v8, 110  ;;  %vm351_vm7 = vcmp.lt.s32.totalorder %v1483_v8, 126  ;;  %vm338_vm8 = vcmp.lt.s32.totalorder %v1483_v8, 127  ;;  %s1288_s20 = smov 17   ;;  %s1289_s18 = smov 18  }
  0x3b   : > { %427 = vrot.lane.b32.xlu0 %v1441_v3, %s1276_s23  ;;  %412 = vrot.lane.b32.xlu1 %v1435_v1, %s1277_s15  ;;  %v642_v60 = vsub.s32 2, %v633_v58  ;;  %v634_v7 = vsub.s32 0, %v633_v58  ;;  %s1290_s25 = smov 19   ;;  %vm723_vm10 = vcmp.lt.s32.totalorder %v1483_v8, 111  ;;  %vm695_vm11 = vcmp.lt.s32.totalorder %v1483_v8, 1  ;;  %p1699_p12 = scmp.ne.s32.totalorder %s1693_s16, 0 }
  0x3c   : > { %vm682_vm12 = vcmp.lt.s32.totalorder %v1483_v8, 17  ;;  %vm669_vm13 = vcmp.lt.s32.totalorder %v1483_v8, 18  ;;  %vm656_vm14 = vcmp.lt.s32.totalorder %v1483_v8, 19 }
  0x3f   : > { %414 = vrot.lane.b32.xlu0 %v1441_v3, %s1277_s15  ;;  %410 = vrot.lane.b32.xlu1 %v1437_v2, %s1277_s15  ;;  %s1051_s15 = smul.u32 384, %s1358_s9  ;;  %s1291_s9 = smov [#allocation6]  }
  0x43   : > { %399 = vrot.lane.b32.xlu0 %v1435_v1, %s1278_s24  ;;  %401 = vrot.lane.b32.xlu1 %v1441_v3, %s1278_s24 }
  0x47   : > { %397 = vrot.lane.b32.xlu0 %v1437_v2, %s1278_s24  ;;  %386 = vrot.lane.b32.xlu1 %v1435_v1, %s1279_s26  ;;  %s321_s24 = scalar_lea.vmem [#allocation6], %s1115_s29  ;;  %s1212_s29 = sshll.u32 %s1291_s9, 4  ;;  %s1213_s29 = int_to_ptr.vmem [resolvable:$false] %s1212_s29 }
  0x48   : > { %s1214_s12 = scalar_lea.vmem %s1213_s29, 768 }
  0x4b   : > { %388 = vrot.lane.b32.xlu0 %v1441_v3, %s1279_s26  ;;  %384 = vrot.lane.b32.xlu1 %v1437_v2, %s1279_s26  ;;  %s1286_s26 = smov 111  }
  0x4f   : > { %373 = vrot.lane.b32.xlu0 %v1435_v1, %s1280_s10  ;;  %375 = vrot.lane.b32.xlu1 %v1441_v3, %s1280_s10 }
  0x53   : > { %371 = vrot.lane.b32.xlu0 %v1437_v2, %s1280_s10  ;;  %360 = vrot.lane.b32.xlu1 %v1435_v1, %s1281_s19 }
  0x57   : > { %362 = vrot.lane.b32.xlu0 %v1441_v3, %s1281_s19  ;;  %358 = vrot.lane.b32.xlu1 %v1437_v2, %s1281_s19 }
  0x5b   : > { %347 = vrot.lane.b32.xlu0 %v1435_v1, %s1283_s21  ;;  %349 = vrot.lane.b32.xlu1 %v1441_v3, %s1283_s21 }
  0x5f   : > { %345 = vrot.lane.b32.xlu0 %v1437_v2, %s1283_s21  ;;  %332 = vrot.lane.b32.xlu1 %v1435_v1, %s1285_s22  ;;  %s1287_s21 = smov 1  }
  0x63   : > { %334 = vrot.lane.b32.xlu0 %v1441_v3, %s1285_s22  ;;  %330 = vrot.lane.b32.xlu1 %v1437_v2, %s1285_s22 }
  0x67   : > { %612 = vperm.xlu0 %1178, %v609_v5   ;;  %621 = vperm.xlu1 %1179, %v618_v6  }
  0xa9   : > { %v426_v9 = vpop.permute.xlu0 %425  ;;  %v424_v10 = vpop.permute.xlu1 %423 }
  0xaa   : > { %v431_v15 = vsel %vm429_vm1, %v424_v10, %v426_v9 }
  0xad   : > { %v428_v11 = vpop.permute.xlu0 %427  ;;  %v413_v12 = vpop.permute.xlu1 %412 }
  0xae   : > { %v430_v13 = vsel %vm429_vm1, %v426_v9, %v428_v11  ;;  %v432_v14 = vsel %vm429_vm1, %v428_v11, %v424_v10 }
  0xaf   : > { %482 = vmatprep.subr.mxu0 %v430_v13  ;;  %1073 = vmatpush3.msra.mxu1 %v432_v14 }
  0xb0   : > { %483 = vmatpush1.msra.mxu0 %v431_v15  ;;  %1074 = vmatprep.subr.mxu1 %v1275_v0 }
  0xb1   : > { %v415_v16 = vpop.permute.xlu0 %414  ;;  %v411_v17 = vpop.permute.xlu1 %410 }
  0xb2   : > { %v417_v18 = vsel %vm416_vm2, %v413_v12, %v415_v16  ;;  %v419_v19 = vsel %vm416_vm2, %v415_v16, %v411_v17  ;;  %v418_v20 = vsel %vm416_vm2, %v411_v17, %v413_v12  ;;  %v635_v12 = vrot.slane %v630_v62, %v634_v7  ;;  %v754_v7 = vld [vmem:[%s1680_s2] sm:$0xff] }
  0xb3   : > { %484 = vmatprep.subr.mxu0 %v417_v18  ;;  %1075 = vmatpush3.msra.mxu1 %v419_v19  ;;  %v638_v18 = vsub.s32 1, %v633_v58 }
  0xb4   : > { %485 = vmatpush1.msra.mxu0 %v418_v20  ;;  %1076 = vmatprep.subr.mxu1 %v1275_v0 }
  0xb5   : > { %v400_v21 = vpop.permute.xlu0 %399  ;;  %v402_v22 = vpop.permute.xlu1 %401  ;;  %v639_v20 = vrot.slane %v630_v62, %v638_v18 }
  0xb6   : > { %v404_v23 = vsel %vm403_vm3, %v400_v21, %v402_v22 }
  0xb7   : > { %486 = vmatprep.subr.mxu0 %v404_v23  ;;  %v926_v23 = vld [vmem:[%s1683_s5] sm:$0xff] }
  0xb9   : > { %v398_v24 = vpop.permute.xlu0 %397  ;;  %v387_v25 = vpop.permute.xlu1 %386 }
  0xba   : > { %v405_v26 = vsel %vm403_vm3, %v398_v24, %v400_v21  ;;  %v406_v27 = vsel %vm403_vm3, %v402_v22, %v398_v24  ;;  %v935_v22 = vld [vmem:[%s1684_s6] sm:$0xff] }
  0xbb   : > { %487 = vmatpush1.msra.mxu0 %v405_v26  ;;  %1077 = vmatpush3.msra.mxu1 %v406_v27 }
  0xbc   : > { %1078 = vmatprep.subr.mxu1 %v1275_v0 }
  0xbd   : > { %v389_v28 = vpop.permute.xlu0 %388  ;;  %v385_v29 = vpop.permute.xlu1 %384 }
  0xbe   : > { %v391_v30 = vsel %vm390_vm4, %v387_v25, %v389_v28  ;;  %v393_v31 = vsel %vm390_vm4, %v389_v28, %v385_v29  ;;  %v392_v32 = vsel %vm390_vm4, %v385_v29, %v387_v25 }
  0xbf   : > { %488 = vmatprep.subr.mxu0 %v391_v30  ;;  %1079 = vmatpush3.msra.mxu1 %v393_v31 }
  0xc0   : > { %489 = vmatpush1.msra.mxu0 %v392_v32  ;;  %1080 = vmatprep.subr.mxu1 %v1275_v0 }
  0xc1   : > { %v374_v33 = vpop.permute.xlu0 %373  ;;  %v376_v34 = vpop.permute.xlu1 %375 }
  0xc2   : > { %v1496_v35 = vsel %vm377_vm5, %v374_v33, %v376_v34 }
  0xc3   : > { %490 = vmatprep.subr.mxu0 %v1496_v35 }
  0xc5   : > { %v372_v36 = vpop.permute.xlu0 %371  ;;  %v361_v37 = vpop.permute.xlu1 %360 }
  0xc6   : > { %v1501_v38 = vsel %vm377_vm5, %v372_v36, %v374_v33  ;;  %v1505_v39 = vsel %vm377_vm5, %v376_v34, %v372_v36 }
  0xc7   : > { %491 = vmatpush1.msra.mxu0 %v1501_v38  ;;  %1081 = vmatpush3.msra.mxu1 %v1505_v39 }
  0xc8   : > { %1082 = vmatprep.subr.mxu1 %v1275_v0 }
  0xc9   : > { %v363_v40 = vpop.permute.xlu0 %362  ;;  %v359_v41 = vpop.permute.xlu1 %358 }
  0xca   : > { %v365_v42 = vsel %vm364_vm6, %v361_v37, %v363_v40  ;;  %v367_v43 = vsel %vm364_vm6, %v363_v40, %v359_v41  ;;  %v366_v44 = vsel %vm364_vm6, %v359_v41, %v361_v37 }
  0xcb   : > { %492 = vmatprep.subr.mxu0 %v365_v42  ;;  %1083 = vmatpush3.msra.mxu1 %v367_v43 }
  0xcc   : > { %493 = vmatpush1.msra.mxu0 %v366_v44  ;;  %1084 = vmatprep.subr.mxu1 %v1275_v0 }
  0xcd   : > { %v348_v45 = vpop.permute.xlu0 %347  ;;  %v350_v46 = vpop.permute.xlu1 %349 }
  0xce   : > { %v352_v47 = vsel %vm351_vm7, %v348_v45, %v350_v46 }
  0xcf   : > { %494 = vmatprep.subr.mxu0 %v352_v47 }
  0xd1   : > { %v346_v48 = vpop.permute.xlu0 %345  ;;  %v333_v49 = vpop.permute.xlu1 %332 }
  0xd2   : > { %v353_v50 = vsel %vm351_vm7, %v346_v48, %v348_v45  ;;  %v354_v51 = vsel %vm351_vm7, %v350_v46, %v346_v48 }
  0xd3   : > { %495 = vmatpush1.msra.mxu0 %v353_v50  ;;  %1085 = vmatpush3.msra.mxu1 %v354_v51 }
  0xd4   : > { %1086 = vmatprep.subr.mxu1 %v1275_v0 }
  0xd5   : > { %v335_v52 = vpop.permute.xlu0 %334  ;;  %v331_v53 = vpop.permute.xlu1 %330 }
  0xd6   : > { %v339_v54 = vsel %vm338_vm8, %v333_v49, %v335_v52  ;;  %v341_v55 = vsel %vm338_vm8, %v335_v52, %v331_v53  ;;  %v340_v56 = vsel %vm338_vm8, %v331_v53, %v333_v49 }
  0xd7   : > { %496 = vmatprep.subr.mxu0 %v339_v54  ;;  %1087 = vmatpush3.msra.mxu1 %v341_v55 }
  0xd8   : > { %497 = vmatpush1.msra.mxu0 %v340_v56  ;;  %1088 = vmatprep.subr.mxu1 %v1275_v0 }
  0xd9   : > { %498 = vmatprep.subr.mxu0 %v1435_v1  ;;  %1089 = vmatpush3.msra.mxu1 %v1441_v3  ;;  %v643_v3 = vrot.slane %v630_v62, %v642_v60 }
  0xda   : > { %499 = vmatpush1.msra.mxu0 %v1437_v2  ;;  %1091 = vmatmul.mubr.msk.f32.vlgmr.msra.gmra.mxu1 %vm464_vm9, %v436_v57 }
  0xdb   : > { %1043 = vmatmul.mubr.msk.f32.vlgmr.msra.gmra.mxu0 %vm464_vm9, %v436_v57  ;;  %1093 = vmatprep.subr.mxu1 %v1275_v0 }
  0xdc   : > { %1111 = vmatprep.mubr.msk.f32.mxu1 %vm1282_vm0, %v1275_v0  ;;  %849 = vmatprep.mubr.f32.mxu0 %v1275_v0 }
  0xe2   : > { %v613_v59 = vpop.permute.xlu0 %612  ;;  %v622_v63 = vpop.permute.xlu1 %621 }
 0x19a   : > { %v605_v61 = vpop.f32.mrf.mxu1 }
 0x19b   : > { %v617_v1 = vmul.f32 %v613_v59, %v605_v61  ;;  %v534_v5 = vpop.f32.mrf.mxu0 }
 0x19c   : > { %v1092_v2 = vpop.f32.mrf.mxu1  ;;  %v615_v9 = vmul.f32 %v613_v59, %v534_v5 }
 0x19d   : > { %v626_v4 = vadd.f32 %v622_v63, %v617_v1  ;;  %v536_v14 = vpop.f32.mrf.mxu0 }
 0x19e   : > { %v624_v11 = vadd.f32 %v622_v63, %v615_v9  ;;  %v616_v16 = vmul.f32 %v613_v59, %v536_v14 }
 0x19f   : > { %v629_v6 = vmax.f32 %v626_v4, 0.0 }
 0x1a0   : > { %v627_v13 = vmax.f32 %v624_v11, 0.0  ;;  %v625_v17 = vadd.f32 %v622_v63, %v616_v16 }
 0x1a1   : > { %v1544_v10 = vmul.f32 %v643_v3, %v629_v6 }
 0x1a2   : > { %v1555_v15 = vmul.f32 %v635_v12, %v627_v13  ;;  %v628_v19 = vmax.f32 %v625_v17, 0.0 }
 0x1a3   : > { %734 = vrot.lane.b32.xlu1 %v1544_v10, %s1281_s19  ;;  %746 = vrot.lane.b32.xlu0 %v1544_v10, %s1280_s10 }
 0x1a4   : > { %v1566_v21 = vmul.f32 %v639_v20, %v628_v19 }
 0x1a7   : > { %709 = vrot.lane.b32.xlu1 %v1544_v10, %s1285_s22  ;;  %721 = vrot.lane.b32.xlu0 %v1544_v10, %s1286_s26 }
 0x1ab   : > { %693 = vrot.lane.b32.xlu1 %v1544_v10, %s1287_s21  ;;  %680 = vrot.lane.b32.xlu0 %v1544_v10, %s1288_s20 }
 0x1af   : > { %730 = vrot.lane.b32.xlu0 %v1555_v15, %s1281_s19  ;;  %742 = vrot.lane.b32.xlu1 %v1555_v15, %s1280_s10 }
 0x1b3   : > { %705 = vrot.lane.b32.xlu0 %v1555_v15, %s1285_s22  ;;  %717 = vrot.lane.b32.xlu1 %v1555_v15, %s1286_s26 }
 0x1b7   : > { %676 = vrot.lane.b32.xlu0 %v1555_v15, %s1288_s20  ;;  %689 = vrot.lane.b32.xlu1 %v1555_v15, %s1287_s21 }
 0x1bb   : > { %732 = vrot.lane.b32.xlu0 %v1566_v21, %s1281_s19  ;;  %663 = vrot.lane.b32.xlu1 %v1555_v15, %s1289_s18 }
 0x1bf   : > { %650 = vrot.lane.b32.xlu0 %v1555_v15, %s1290_s25  ;;  %744 = vrot.lane.b32.xlu1 %v1566_v21, %s1280_s10 }
 0x1c3   : > { %707 = vrot.lane.b32.xlu0 %v1566_v21, %s1285_s22  ;;  %719 = vrot.lane.b32.xlu1 %v1566_v21, %s1286_s26  ;;  %s968_s26 = sshll.u32 %s321_s24, 4  ;;  %s969_s26 = int_to_ptr.vmem [resolvable:$true] %s968_s26 }
 0x1c4   : > { %s1208_s19 = scalar_lea.vmem %s969_s26, 384  ;;  %p1215_p1 = scmp.lt.s32.totalorder %s969_s26, %s1213_s29 }
 0x1c5   : > { %p1209_p11 = scmp.ne.s32.totalorder %s969_s26, %s1208_s19  ;;  %p1216_p3 = scmp.lt.s32.totalorder %s1214_s12, %s1208_s19 }
 0x1c7   : > { %691 = vrot.lane.b32.xlu0 %v1566_v21, %s1287_s21  ;;  %667 = vrot.lane.b32.xlu1 %v1544_v10, %s1289_s18  ;;  %p1210_p13 = pnand %p1209_p11, %p1699_p12  ;;  %p1217_p8 = por %p1216_p3, %p1215_p1 }
 0x1c9   : > { %p1211_p0 = pneg %p1210_p13 }
 0x1cb   : > { %665 = vrot.lane.b32.xlu0 %v1566_v21, %s1289_s18  ;;  %678 = vrot.lane.b32.xlu1 %v1566_v21, %s1288_s20  ;;  %s966_s18 = scalar_lea.hbm %s1686_s8, %s1051_s15  ;;  %p1218_p10 = pnand %p1217_p8, %p1211_p0 }
 0x1cf   : > { %654 = vrot.lane.b32.xlu0 %v1544_v10, %s1290_s25  ;;  %652 = vrot.lane.b32.xlu1 %v1566_v21, %s1290_s25  ;;  %s954_s25 = scalar_lea.sflag [#allocation5], %s1423_s14 }
 0x1d3   : > { %938 = vperm.xlu0 %1178, %v935_v22   ;;  %929 = vperm.xlu1 %1179, %v926_v23  }
 0x215   : > { %v735_v24 = vpop.permute.xlu1 %734  ;;  %v747_v25 = vpop.permute.xlu0 %746 }
 0x219   : > { %v710_v26 = vpop.permute.xlu1 %709  ;;  %v722_v27 = vpop.permute.xlu0 %721 }
 0x21d   : > { %v694_v28 = vpop.permute.xlu1 %693  ;;  %v1589_v29 = vpop.permute.xlu0 %680 }
 0x221   : > { %v731_v30 = vpop.permute.xlu0 %730  ;;  %v743_v31 = vpop.permute.xlu1 %742 }
 0x222   : > { %v750_v32 = vsel %vm377_vm5, %v747_v25, %v743_v31  ;;  %v738_v33 = vsel %vm364_vm6, %v735_v24, %v731_v30 }
 0x223   : > { %1094 = vmatpush3.msra.mxu1 %v750_v32 }
 0x224   : > { %1095 = vmatprep.subr.mxu1 %v1275_v0 }
 0x225   : > { %v706_v34 = vpop.permute.xlu0 %705  ;;  %1096 = vmatpush3.msra.mxu1 %v738_v33  ;;  %v718_v36 = vpop.permute.xlu1 %717 }
 0x226   : > { %v726_v37 = vsel %vm723_vm10, %v722_v27, %v718_v36  ;;  %1097 = vmatprep.subr.mxu1 %v1275_v0  ;;  %v713_v40 = vsel %vm338_vm8, %v710_v26, %v706_v34 }
 0x227   : > { %1098 = vmatpush3.msra.mxu1 %v726_v37 }
 0x228   : > { %1099 = vmatprep.subr.mxu1 %v1275_v0 }
 0x229   : > { %v677_v41 = vpop.permute.xlu0 %676  ;;  %1100 = vmatpush3.msra.mxu1 %v713_v40  ;;  %v690_v42 = vpop.permute.xlu1 %689 }
 0x22a   : > { %1101 = vmatprep.subr.mxu1 %v1275_v0  ;;  %v698_v61 = vsel %vm695_vm11, %v694_v28, %v690_v42  ;;  %v685_v3 = vsel %vm682_vm12, %v1589_v29, %v677_v41 }
 0x22b   : > { %1102 = vmatpush3.msra.mxu1 %v1544_v10 }
 0x22c   : > { %1103 = vmatprep.subr.mxu1 %v1275_v0 }
 0x22d   : > { %v733_v43 = vpop.permute.xlu0 %732  ;;  %v664_v44 = vpop.permute.xlu1 %663 }
 0x22e   : > { %v736_v49 = vsel %vm364_vm6, %v733_v43, %v735_v24  ;;  %v737_v50 = vsel %vm364_vm6, %v731_v30, %v733_v43 }
 0x231   : > { %v651_v45 = vpop.permute.xlu0 %650  ;;  %v745_v46 = vpop.permute.xlu1 %744 }
 0x232   : > { %v749_v47 = vsel %vm377_vm5, %v743_v31, %v745_v46  ;;  %v748_v48 = vsel %vm377_vm5, %v745_v46, %v747_v25 }
 0x233   : > { %799 = vmatprep.subr.mxu0 %v748_v48 }
 0x234   : > { %800 = vmatpush1.msra.mxu0 %v749_v47 }
 0x235   : > { %v708_v51 = vpop.permute.xlu0 %707  ;;  %801 = vmatprep.subr.mxu0 %v736_v49  ;;  %v720_v52 = vpop.permute.xlu1 %719 }
 0x236   : > { %v725_v53 = vsel %vm723_vm10, %v718_v36, %v720_v52  ;;  %802 = vmatpush1.msra.mxu0 %v737_v50  ;;  %v724_v54 = vsel %vm723_vm10, %v720_v52, %v722_v27  ;;  %v711_v55 = vsel %vm338_vm8, %v708_v51, %v710_v26  ;;  %v712_v56 = vsel %vm338_vm8, %v706_v34, %v708_v51 }
 0x237   : > { %803 = vmatprep.subr.mxu0 %v724_v54 }
 0x238   : > { %804 = vmatpush1.msra.mxu0 %v725_v53 }
 0x239   : > { %v692_v57 = vpop.permute.xlu0 %691  ;;  %805 = vmatprep.subr.mxu0 %v711_v55  ;;  %v668_v58 = vpop.permute.xlu1 %667 }
 0x23a   : > { %v696_v59 = vsel %vm695_vm11, %v692_v57, %v694_v28  ;;  %806 = vmatpush1.msra.mxu0 %v712_v56  ;;  %v697_v60 = vsel %vm695_vm11, %v690_v42, %v692_v57  ;;  %v672_v6 = vsel %vm669_vm13, %v668_v58, %v664_v44 }
 0x23b   : > { %807 = vmatprep.subr.mxu0 %v1566_v21  ;;  %1104 = vmatpush3.msra.mxu1 %v696_v59 }
 0x23c   : > { %808 = vmatpush1.msra.mxu0 %v1555_v15  ;;  %1105 = vmatprep.subr.mxu1 %v1275_v0 }
 0x23d   : > { %v666_v62 = vpop.permute.xlu0 %665  ;;  %809 = vmatprep.subr.mxu0 %v697_v60  ;;  %v679_v63 = vpop.permute.xlu1 %678 }
 0x23e   : > { %v683_v1 = vsel %vm682_vm12, %v679_v63, %v1589_v29  ;;  %810 = vmatpush1.msra.mxu0 %v698_v61  ;;  %v684_v2 = vsel %vm682_vm12, %v677_v41, %v679_v63  ;;  %v670_v4 = vsel %vm669_vm13, %v666_v62, %v668_v58  ;;  %v671_v5 = vsel %vm669_vm13, %v664_v44, %v666_v62 }
 0x23f   : > { %811 = vmatprep.subr.mxu0 %v684_v2  ;;  %1106 = vmatpush3.msra.mxu1 %v683_v1 }
 0x240   : > { %812 = vmatpush1.msra.mxu0 %v685_v3  ;;  %1107 = vmatprep.subr.mxu1 %v1275_v0 }
 0x241   : > { %v655_v9 = vpop.permute.xlu0 %654  ;;  %813 = vmatprep.subr.mxu0 %v671_v5  ;;  %1108 = vmatpush3.msra.mxu1 %v670_v4  ;;  %v653_v10 = vpop.permute.xlu1 %652 }
 0x242   : > { %v659_v11 = vsel %vm656_vm14, %v655_v9, %v651_v45  ;;  %v657_v12 = vsel %vm656_vm14, %v653_v10, %v655_v9  ;;  %814 = vmatpush1.msra.mxu0 %v672_v6  ;;  %1109 = vmatprep.subr.mxu1 %v1275_v0  ;;  %v658_v8 = vsel %vm656_vm14, %v651_v45, %v653_v10 }
 0x243   : > { %815 = vmatprep.subr.mxu0 %v658_v8  ;;  %1110 = vmatpush3.msra.mxu1 %v657_v12 }
 0x244   : > { %816 = vmatpush1.msra.mxu0 %v659_v11  ;;  %1112 = vmatmul.mubr.msk.f32.vlgmr.msra.gmra.mxu1 %vm464_vm9, %v754_v7 }
 0x245   : > { %1045 = vmatmul.mubr.msk.f32.vlgmr.msra.gmra.mxu0 %vm464_vm9, %v754_v7 }
 0x24e   : > { %v930_v13 = vpop.permute.xlu1 %929  ;;  %v939_v17 = vpop.permute.xlu0 %938 }
 0x304   : > { %v922_v14 = vpop.f32.mrf.mxu1 }
 0x305   : > { %v934_v15 = vmul.f32 %v930_v13, %v922_v14  ;;  %v851_v16 = vpop.f32.mrf.mxu0 }
 0x306   : > { %v932_v18 = vmul.f32 %v930_v13, %v851_v16  ;;  %v1113_v19 = vpop.f32.mrf.mxu1 }
 0x307   : > { %v943_v20 = vadd.f32 %v939_v17, %v934_v15  ;;  %v853_v21 = vpop.f32.mrf.mxu0 }
 0x308   : > { %v941_v0 = vadd.f32 %v939_v17, %v932_v18  ;;  %v933_v22 = vmul.f32 %v930_v13, %v853_v21 }
 0x309   : > { %v946_v23 = vadd.f32 %v943_v20, %v1505_v39 }
 0x30a   : > { %v944_v24 = vadd.f32 %v941_v0, %v1501_v38  ;;  %v942_v25 = vadd.f32 %v939_v17, %v933_v22 }
 0x30b   : > { %v949_v26 = vmax.f32 %v946_v23, 0.0 }
 0x30c   : > { %v947_v27 = vmax.f32 %v944_v24, 0.0  ;;  %v945_v28 = vadd.f32 %v942_v25, %v1496_v35 }
 0x30d   : > { %952 = vst [vmem:[%s321_s24 + $0x10] sm:$0xff] %v949_v26 }
 0x30e   : > { %950 = vst [vmem:[%s321_s24] sm:$0xff] %v947_v27  ;;  %v948_v29 = vmax.f32 %v945_v28, 0.0 }
 0x310   : > { %951 = vst [vmem:[%s321_s24 + $0x8] sm:$0xff] %v948_v29 }
 0x311   : > { %1221 = shalt.err (!%p1218_p10)
}
 0x312   : > { %s1222_s10 = scalar_lea.hbm %s966_s18, 384  ;;  %s1226_s13 = scalar_lea.hbm %s1686_s8, 768 }
 0x313   : > { %p1223_p2 = scmp.ne.s32.totalorder %s966_s18, %s1222_s10  ;;  %p1227_p7 = scmp.lt.s32.totalorder %s966_s18, %s1686_s8 }
 0x314   : > { %p1228_p5 = scmp.lt.s32.totalorder %s1226_s13, %s1222_s10 }
 0x315   : > { %p1224_p4 = pnand %p1223_p2, %p1699_p12 }
 0x316   : > { %p1229_p6 = por %p1228_p5, %p1227_p7 }
 0x317   : > { %p1225_p9 = pneg %p1224_p4 }
 0x319   : > { %p1230_p11 = pnand %p1229_p6, %p1225_p9 }
 0x31b   : > { %1233 = shalt.err (!%p1230_p11)
}
 0x31c   : > { %1118 = dma.vmem_to_hbm [thread:$0]  (%p1699_p12), %s969_s26, 384, %s966_s18, %s954_s25  }
 0x31d PF: > { %s980_s24 = sand.u32 1, %s1260_s27   ;;  %p1700_p13 = scmp.ne.s32.totalorder %s1694_s17, 0 }
 0x31e   : > { %p1701_p0 = scmp.ge.s32.totalorder %s1272_s30, 2  ;;  %s981_s21 = scalar_lea.sflag [#allocation5], %s980_s24 }
 0x320   : > { %p1125_p1 = pnand %p1701_p0, %p1700_p13 }
 0x322   : > { %p1126_p3 = pneg %p1125_p1 }
 0x324   : > { %1255 = dma.done.wait (%p1126_p3), %s981_s21, 384  }
 0x325   : > { %1257 = vsyncadd (%p1126_p3), %s981_s21, 4294966912  ;;  %s1702_s20 = sld [smem:[#allocation9_spill]]  ;;  %p21_p8 = scmp.ge.s32.totalorder %s1362_s11, 4  }
 0x326   : > { %s1703_s29 = sld [smem:[#allocation10_spill]]  ;;  %s1704_s27 = smov %s1264_s28 }
 0x327   : > { %s1706_s30 = smov %s1362_s11  ;;  %23 = sbr.rel (!%p21_p8) target bundleno = 5 (0x5), region = 97 }
 0x32b   : > { %s1705_s28 = smov %s1702_s20 }
 0x32c   :  { %986 = vsyncpa [#allocation4], 1 }
 0x32d   :  { %988 = vsyncpa [#allocation4 + $0x1], 1 }
 0x32e   :  { %989 = vsyncpa [#allocation5], 1 }
 0x32f   :  { %991 = vsyncpa [#allocation5 + $0x1], 1 }

// kernel: tpu_custom_call.1
= control target key start
LH: loop header
LB: loop body
LE: loop exit
PB: predicated region body
PF: predicated region fallthrough
CT: control target
= control target key end

     0   :  { %13 = vsyncpa [#allocation4], 0  ;;  %s1678_s0 = inlined_call_operand.hbm [shape: f32[8,768], index: 0, kind: input, shape index: {}]   ;;  %s1679_s1 = inlined_call_operand.vmem [shape: f32[8,72], index: 1, kind: input, shape index: {}]   ;;  %s1680_s2 = inlined_call_operand.vmem [shape: f32[8,72], index: 2, kind: input, shape index: {}]   ;;  %s1681_s3 = inlined_call_operand.vmem [shape: f32[8,1], index: 3, kind: input, shape index: {}]   ;;  %s1682_s4 = inlined_call_operand.vmem [shape: f32[8,1], index: 4, kind: input, shape index: {}]   ;;  %s1683_s5 = inlined_call_operand.vmem [shape: f32[8,1], index: 5, kind: input, shape index: {}]   ;;  %s1684_s6 = inlined_call_operand.vmem [shape: f32[8,1], index: 6, kind: input, shape index: {}]   ;;  %s1685_s7 = inlined_call_operand.vmem [shape: f32[1,384], index: 7, kind: input, shape index: {}]   ;;  %s1686_s8 = inlined_call_operand.hbm [shape: f32[8,768], index: 8, kind: output, shape index: {}]  }
   0x1   :  { %15 = vsyncpa [#allocation4 + $0x1], 0 }
   0x2   :  { %16 = vsyncpa [#allocation5], 0 }
   0x3   :  { %18 = vsyncpa [#allocation5 + $0x1], 0  ;;  %s1337_s27 = smov 0   ;;  %s1339_s28 = smov 0  }
   0x4   :  { %s1341_s29 = smov 0   ;;  %s1343_s30 = smov 0  }
   0x5 LB: > { %1690 = sst [smem:[#allocation9_spill]] %s1268_s29  ;;  %s1358_s9 = sadd.s32 4294967295, %s1272_s30   ;;  %s1272_s30 = sphi %s1343_s30, %s1706_s30   ;;  %s1268_s29 = sphi %s1341_s29, %s1703_s29   ;;  %s1264_s28 = sphi %s1339_s28, %s1705_s28   ;;  %s1260_s27 = sphi %s1337_s27, %s1704_s27  }
   0x6   : > { %s1038_s10 = sadd.s32 4294967294, %s1272_s30   ;;  %s1362_s11 = sadd.s32 1, %s1272_s30  }
   0x7   : > { %s31_s12 = sadd.s32 1, %s1268_s29  ;;  %s28_s13 = ssub.s32 %s1272_s30, %s1362_s11 }
   0x8   : > { %p38_p0 = scmp.ne.s32.totalorder %s1268_s29, %s1264_s28  ;;  %p29_p1 = scmp.eq.s32.totalorder %s28_s13, 0 }
   0x9   : > { %p39_p2 = scmp.eq.s32.totalorder %s1272_s30, 0  ;;  %p44_p3 = scmp.ne.s32.totalorder %s1264_s28, %s1260_s27 }
   0xa   : > { %p45_p4 = scmp.eq.s32.totalorder %s1358_s9, 0  ;;  %p215_p7 = scmp.eq.s32.totalorder %s1358_s9, 1 }
   0xb   : > { %s1374_s14 = scalar_select %p29_p1, %s1268_s29, %s31_s12  }
   0xc   : > { %p40_p5 = por %p39_p2, %p38_p0  ;;  %p1376_p6 = por %p45_p4, %p44_p3 }
   0xd   : > { %1691 = sst [smem:[#allocation10_spill]] %s1374_s14  ;;  %p221_p8 = scmp.eq.s32.totalorder %s1038_s10, 1 }
   0xe   : > { %s1692_s15 = scalar_select %p1376_p6, 1, 0 }
   0xf   : > { %p1128_p10 = scmp.lt.s32.totalorder %s1272_s30, 2  ;;  %p1383_p11 = por %p215_p7, %p38_p0 }
  0x10   : > { %p1387_p12 = por %p221_p8, %p44_p3  ;;  %s262_s18 = sand.u32 1, %s1268_s29  }
  0x11   : > { %s1693_s16 = scalar_select %p1383_p11, 1, 0 }
  0x12   : > { %s1694_s17 = scalar_select %p1387_p12, 1, 0 }
  0x13   : > { %s1050_s19 = smul.u32 384, %s1272_s30  ;;  %p1398_p13 = pnand %p1128_p10, %p40_p5 }
  0x14   : > { %s1114_s20 = smul.u32 24, %s262_s18  ;;  %s263_s10 = scalar_lea.sflag [#allocation4], %s262_s18 }
  0x15   : > { %s1396_s23 = scalar_lea.hbm %s1678_s0, %s1050_s19  ;;  %p1182_p3 = pneg %p1398_p13 }
  0x16   : > { %s266_s25 = scalar_lea.vmem [#allocation3], %s1114_s20  ;;  %s1180_s12 = scalar_lea.hbm %s1396_s23, 384 }
  0x17   : > { %s274_s26 = sshll.u32 %s266_s25, 4  ;;  %p1181_p2 = scmp.ne.s32.totalorder %s1396_s23, %s1180_s12  ;;  %s275_s26 = int_to_ptr.vmem [resolvable:$true] %s274_s26 }
  0x18   : > { %s1185_s21 = scalar_lea.hbm %s1678_s0, 768  ;;  %p1186_p5 = scmp.lt.s32.totalorder %s1396_s23, %s1678_s0 }
  0x19   : > { %p1183_p4 = pnand %p1182_p3, %p1181_p2  ;;  %p1187_p8 = scmp.lt.s32.totalorder %s1185_s21, %s1180_s12 }
  0x1b   : > { %p1184_p7 = pneg %p1183_p4  ;;  %p1188_p10 = por %p1187_p8, %p1186_p5 }
  0x1d   : > { %p1189_p9 = pnand %p1188_p10, %p1184_p7 }
  0x1f   : > { %1192 = shalt.err (!%p1189_p9)
}
  0x20   : > { %s1193_s20 = scalar_lea.vmem %s275_s26, 384  ;;  %s1274_s18 = smov [#allocation3]  }
  0x21   : > { %p1194_p0 = scmp.ne.s32.totalorder %s275_s26, %s1193_s20  ;;  %s1198_s25 = sshll.u32 %s1274_s18, 4  ;;  %s1199_s25 = int_to_ptr.vmem [resolvable:$false] %s1198_s25 }
  0x22   : > { %s1200_s29 = scalar_lea.vmem %s1199_s25, 768  ;;  %p1201_p2 = scmp.lt.s32.totalorder %s275_s26, %s1199_s25 }
  0x23   : > { %p1196_p1 = pnand %p1194_p0, %p1182_p3  ;;  %p1202_p4 = scmp.lt.s32.totalorder %s1200_s29, %s1193_s20 }
  0x25   : > { %p1197_p12 = pneg %p1196_p1  ;;  %p1203_p11 = por %p1202_p4, %p1201_p2 }
  0x27   : > { %p1204_p6 = pnand %p1203_p11, %p1197_p12 }
  0x29   : > { %1207 = shalt.err (!%p1204_p6)
}
  0x2a   : > { %1123 = dma.hbm_to_vmem [thread:$0]  (!%p1398_p13), %s1396_s23, 384, %s275_s26, %s263_s10  }
  0x2b   : > { %p1696_p9 = scmp.lt.s32.totalorder %s1272_s30, 3  ;;  %p1697_p7 = scmp.ge.s32.totalorder %s1272_s30, 1 }
  0x2d   : > { %p280_p5 = pnand %p1697_p7, %p1696_p9 }
  0x2e   : > { %s1423_s14 = sand.u32 (!%p280_p5), 1, %s1264_s28   ;;  %p1698_p6 = scmp.ne.s32.totalorder (!%p280_p5), %s1692_s15, 0 }
  0x2f   : > { %283 = sbr.rel (%p280_p5) target bundleno = 797 (0x31d), region = 52  ;;  %s286_s12 = scalar_lea.sflag (!%p280_p5), [#allocation4], %s1423_s14 }
  0x30   : > { %s1115_s29 = smul.u32 (!%p280_p5), 24, %s1423_s14 }
  0x32   : > { %s289_s13 = scalar_lea.vmem (!%p280_p5), [#allocation3], %s1115_s29 }
  0x34   : > { %1251 = dma.done.wait (%p1698_p6), %s286_s12, 384  }
  0x35   : > { %1253 = vsyncadd (%p1698_p6), %s286_s12, 4294966912  ;;  %v1275_v0 = vmov 0.0   ;;  %v1435_v1 = vld [vmem:[%s289_s13 + $0x8] sm:$0xff]  ;;  %v1437_v2 = vld [vmem:[%s289_s13] sm:$0xff]  ;;  %s1276_s23 = smov 90   ;;  %s1277_s15 = smov 91   ;;  %v336_v7 = vlaneseq }
  0x36   : > { %1072 = vmatprep.subr.mxu1 %v1275_v0  ;;  %532 = vmatprep.mubr.f32.mxu0 %v1275_v0  ;;  %v1441_v3 = vld [vmem:[%s289_s13 + $0x10] sm:$0xff]  ;;  %s1278_s24 = smov 92   ;;  %s1279_s26 = smov 108   ;;  %vm1282_vm0 = vmmov 0   ;;  %v1284_v4 = vmov 0   ;;  %v609_v5 = vld [vmem:[%s1681_s3] sm:$0xff] }
  0x37   : > { %425 = vrot.lane.b32.xlu0 %v1435_v1, %s1276_s23  ;;  %423 = vrot.lane.b32.xlu1 %v1437_v2, %s1276_s23  ;;  %s1280_s10 = smov 109   ;;  %s1281_s19 = smov 110   ;;  %v618_v6 = vld [vmem:[%s1682_s4] sm:$0xff]  ;;  %v1483_v8 = vand.u32 127, %v336_v7  ;;  %vm464_vm9 = vcmask 588800   ;;  %v633_v58 = vshrl.u32 %v336_v7, 7 }
  0x38   : > { %1090 = vmatprep.mubr.msk.f32.mxu1 %vm1282_vm0, %v1275_v0  ;;  %s1283_s21 = smov 126   ;;  %1178 = vset.pattern.permute.xlu0 %v1284_v4  ;;  %s1285_s22 = smov 127   ;;  %v436_v57 = vld [vmem:[%s1679_s1] sm:$0xff] }
  0x39   : > { %1179 = vset.pattern.permute.xlu1 %v1284_v4  ;;  %vm429_vm1 = vcmp.lt.s32.totalorder %v1483_v8, 90  ;;  %vm416_vm2 = vcmp.lt.s32.totalorder %v1483_v8, 91  ;;  %vm403_vm3 = vcmp.lt.s32.totalorder %v1483_v8, 92  ;;  %vm390_vm4 = vcmp.lt.s32.totalorder %v1483_v8, 108  ;;  %v630_v62 = vld [vmem:[%s1685_s7] sm:$0x7] }
  0x3a   : > { %vm377_vm5 = vcmp.lt.s32.totalorder %v1483_v8, 109  ;;  %vm364_vm6 = vcmp.lt.s32.totalorder %v1483_v8, 110  ;;  %vm351_vm7 = vcmp.lt.s32.totalorder %v1483_v8, 126  ;;  %vm338_vm8 = vcmp.lt.s32.totalorder %v1483_v8, 127  ;;  %s1288_s20 = smov 17   ;;  %s1289_s18 = smov 18  }
  0x3b   : > { %427 = vrot.lane.b32.xlu0 %v1441_v3, %s1276_s23  ;;  %412 = vrot.lane.b32.xlu1 %v1435_v1, %s1277_s15  ;;  %v642_v60 = vsub.s32 2, %v633_v58  ;;  %v634_v7 = vsub.s32 0, %v633_v58  ;;  %s1290_s25 = smov 19   ;;  %vm723_vm10 = vcmp.lt.s32.totalorder %v1483_v8, 111  ;;  %vm695_vm11 = vcmp.lt.s32.totalorder %v1483_v8, 1  ;;  %p1699_p12 = scmp.ne.s32.totalorder %s1693_s16, 0 }
  0x3c   : > { %vm682_vm12 = vcmp.lt.s32.totalorder %v1483_v8, 17  ;;  %vm669_vm13 = vcmp.lt.s32.totalorder %v1483_v8, 18  ;;  %vm656_vm14 = vcmp.lt.s32.totalorder %v1483_v8, 19 }
  0x3f   : > { %414 = vrot.lane.b32.xlu0 %v1441_v3, %s1277_s15  ;;  %410 = vrot.lane.b32.xlu1 %v1437_v2, %s1277_s15  ;;  %s1051_s15 = smul.u32 384, %s1358_s9  ;;  %s1291_s9 = smov [#allocation6]  }
  0x43   : > { %399 = vrot.lane.b32.xlu0 %v1435_v1, %s1278_s24  ;;  %401 = vrot.lane.b32.xlu1 %v1441_v3, %s1278_s24 }
  0x47   : > { %397 = vrot.lane.b32.xlu0 %v1437_v2, %s1278_s24  ;;  %386 = vrot.lane.b32.xlu1 %v1435_v1, %s1279_s26  ;;  %s321_s24 = scalar_lea.vmem [#allocation6], %s1115_s29  ;;  %s1212_s29 = sshll.u32 %s1291_s9, 4  ;;  %s1213_s29 = int_to_ptr.vmem [resolvable:$false] %s1212_s29 }
  0x48   : > { %s1214_s12 = scalar_lea.vmem %s1213_s29, 768 }
  0x4b   : > { %388 = vrot.lane.b32.xlu0 %v1441_v3, %s1279_s26  ;;  %384 = vrot.lane.b32.xlu1 %v1437_v2, %s1279_s26  ;;  %s1286_s26 = smov 111  }
  0x4f   : > { %373 = vrot.lane.b32.xlu0 %v1435_v1, %s1280_s10  ;;  %375 = vrot.lane.b32.xlu1 %v1441_v3, %s1280_s10 }
  0x53   : > { %371 = vrot.lane.b32.xlu0 %v1437_v2, %s1280_s10  ;;  %360 = vrot.lane.b32.xlu1 %v1435_v1, %s1281_s19 }
  0x57   : > { %362 = vrot.lane.b32.xlu0 %v1441_v3, %s1281_s19  ;;  %358 = vrot.lane.b32.xlu1 %v1437_v2, %s1281_s19 }
  0x5b   : > { %347 = vrot.lane.b32.xlu0 %v1435_v1, %s1283_s21  ;;  %349 = vrot.lane.b32.xlu1 %v1441_v3, %s1283_s21 }
  0x5f   : > { %345 = vrot.lane.b32.xlu0 %v1437_v2, %s1283_s21  ;;  %332 = vrot.lane.b32.xlu1 %v1435_v1, %s1285_s22  ;;  %s1287_s21 = smov 1  }
  0x63   : > { %334 = vrot.lane.b32.xlu0 %v1441_v3, %s1285_s22  ;;  %330 = vrot.lane.b32.xlu1 %v1437_v2, %s1285_s22 }
  0x67   : > { %612 = vperm.xlu0 %1178, %v609_v5   ;;  %621 = vperm.xlu1 %1179, %v618_v6  }
  0xa9   : > { %v426_v9 = vpop.permute.xlu0 %425  ;;  %v424_v10 = vpop.permute.xlu1 %423 }
  0xaa   : > { %v431_v15 = vsel %vm429_vm1, %v424_v10, %v426_v9 }
  0xad   : > { %v428_v11 = vpop.permute.xlu0 %427  ;;  %v413_v12 = vpop.permute.xlu1 %412 }
  0xae   : > { %v430_v13 = vsel %vm429_vm1, %v426_v9, %v428_v11  ;;  %v432_v14 = vsel %vm429_vm1, %v428_v11, %v424_v10 }
  0xaf   : > { %482 = vmatprep.subr.mxu0 %v430_v13  ;;  %1073 = vmatpush3.msra.mxu1 %v432_v14 }
  0xb0   : > { %483 = vmatpush1.msra.mxu0 %v431_v15  ;;  %1074 = vmatprep.subr.mxu1 %v1275_v0 }
  0xb1   : > { %v415_v16 = vpop.permute.xlu0 %414  ;;  %v411_v17 = vpop.permute.xlu1 %410 }
  0xb2   : > { %v417_v18 = vsel %vm416_vm2, %v413_v12, %v415_v16  ;;  %v419_v19 = vsel %vm416_vm2, %v415_v16, %v411_v17  ;;  %v418_v20 = vsel %vm416_vm2, %v411_v17, %v413_v12  ;;  %v635_v12 = vrot.slane %v630_v62, %v634_v7  ;;  %v754_v7 = vld [vmem:[%s1680_s2] sm:$0xff] }
  0xb3   : > { %484 = vmatprep.subr.mxu0 %v417_v18  ;;  %1075 = vmatpush3.msra.mxu1 %v419_v19  ;;  %v638_v18 = vsub.s32 1, %v633_v58 }
  0xb4   : > { %485 = vmatpush1.msra.mxu0 %v418_v20  ;;  %1076 = vmatprep.subr.mxu1 %v1275_v0 }
  0xb5   : > { %v400_v21 = vpop.permute.xlu0 %399  ;;  %v402_v22 = vpop.permute.xlu1 %401  ;;  %v639_v20 = vrot.slane %v630_v62, %v638_v18 }
  0xb6   : > { %v404_v23 = vsel %vm403_vm3, %v400_v21, %v402_v22 }
  0xb7   : > { %486 = vmatprep.subr.mxu0 %v404_v23  ;;  %v926_v23 = vld [vmem:[%s1683_s5] sm:$0xff] }
  0xb9   : > { %v398_v24 = vpop.permute.xlu0 %397  ;;  %v387_v25 = vpop.permute.xlu1 %386 }
  0xba   : > { %v405_v26 = vsel %vm403_vm3, %v398_v24, %v400_v21  ;;  %v406_v27 = vsel %vm403_vm3, %v402_v22, %v398_v24  ;;  %v935_v22 = vld [vmem:[%s1684_s6] sm:$0xff] }
  0xbb   : > { %487 = vmatpush1.msra.mxu0 %v405_v26  ;;  %1077 = vmatpush3.msra.mxu1 %v406_v27 }
  0xbc   : > { %1078 = vmatprep.subr.mxu1 %v1275_v0 }
  0xbd   : > { %v389_v28 = vpop.permute.xlu0 %388  ;;  %v385_v29 = vpop.permute.xlu1 %384 }
  0xbe   : > { %v391_v30 = vsel %vm390_vm4, %v387_v25, %v389_v28  ;;  %v393_v31 = vsel %vm390_vm4, %v389_v28, %v385_v29  ;;  %v392_v32 = vsel %vm390_vm4, %v385_v29, %v387_v25 }
  0xbf   : > { %488 = vmatprep.subr.mxu0 %v391_v30  ;;  %1079 = vmatpush3.msra.mxu1 %v393_v31 }
  0xc0   : > { %489 = vmatpush1.msra.mxu0 %v392_v32  ;;  %1080 = vmatprep.subr.mxu1 %v1275_v0 }
  0xc1   : > { %v374_v33 = vpop.permute.xlu0 %373  ;;  %v376_v34 = vpop.permute.xlu1 %375 }
  0xc2   : > { %v1496_v35 = vsel %vm377_vm5, %v374_v33, %v376_v34 }
  0xc3   : > { %490 = vmatprep.subr.mxu0 %v1496_v35 }
  0xc5   : > { %v372_v36 = vpop.permute.xlu0 %371  ;;  %v361_v37 = vpop.permute.xlu1 %360 }
  0xc6   : > { %v1501_v38 = vsel %vm377_vm5, %v372_v36, %v374_v33  ;;  %v1505_v39 = vsel %vm377_vm5, %v376_v34, %v372_v36 }
  0xc7   : > { %491 = vmatpush1.msra.mxu0 %v1501_v38  ;;  %1081 = vmatpush3.msra.mxu1 %v1505_v39 }
  0xc8   : > { %1082 = vmatprep.subr.mxu1 %v1275_v0 }
  0xc9   : > { %v363_v40 = vpop.permute.xlu0 %362  ;;  %v359_v41 = vpop.permute.xlu1 %358 }
  0xca   : > { %v365_v42 = vsel %vm364_vm6, %v361_v37, %v363_v40  ;;  %v367_v43 = vsel %vm364_vm6, %v363_v40, %v359_v41  ;;  %v366_v44 = vsel %vm364_vm6, %v359_v41, %v361_v37 }
  0xcb   : > { %492 = vmatprep.subr.mxu0 %v365_v42  ;;  %1083 = vmatpush3.msra.mxu1 %v367_v43 }
  0xcc   : > { %493 = vmatpush1.msra.mxu0 %v366_v44  ;;  %1084 = vmatprep.subr.mxu1 %v1275_v0 }
  0xcd   : > { %v348_v45 = vpop.permute.xlu0 %347  ;;  %v350_v46 = vpop.permute.xlu1 %349 }
  0xce   : > { %v352_v47 = vsel %vm351_vm7, %v348_v45, %v350_v46 }
  0xcf   : > { %494 = vmatprep.subr.mxu0 %v352_v47 }
  0xd1   : > { %v346_v48 = vpop.permute.xlu0 %345  ;;  %v333_v49 = vpop.permute.xlu1 %332 }
  0xd2   : > { %v353_v50 = vsel %vm351_vm7, %v346_v48, %v348_v45  ;;  %v354_v51 = vsel %vm351_vm7, %v350_v46, %v346_v48 }
  0xd3   : > { %495 = vmatpush1.msra.mxu0 %v353_v50  ;;  %1085 = vmatpush3.msra.mxu1 %v354_v51 }
  0xd4   : > { %1086 = vmatprep.subr.mxu1 %v1275_v0 }
  0xd5   : > { %v335_v52 = vpop.permute.xlu0 %334  ;;  %v331_v53 = vpop.permute.xlu1 %330 }
  0xd6   : > { %v339_v54 = vsel %vm338_vm8, %v333_v49, %v335_v52  ;;  %v341_v55 = vsel %vm338_vm8, %v335_v52, %v331_v53  ;;  %v340_v56 = vsel %vm338_vm8, %v331_v53, %v333_v49 }
  0xd7   : > { %496 = vmatprep.subr.mxu0 %v339_v54  ;;  %1087 = vmatpush3.msra.mxu1 %v341_v55 }
  0xd8   : > { %497 = vmatpush1.msra.mxu0 %v340_v56  ;;  %1088 = vmatprep.subr.mxu1 %v1275_v0 }
  0xd9   : > { %498 = vmatprep.subr.mxu0 %v1435_v1  ;;  %1089 = vmatpush3.msra.mxu1 %v1441_v3  ;;  %v643_v3 = vrot.slane %v630_v62, %v642_v60 }
  0xda   : > { %499 = vmatpush1.msra.mxu0 %v1437_v2  ;;  %1091 = vmatmul.mubr.msk.f32.vlgmr.msra.gmra.mxu1 %vm464_vm9, %v436_v57 }
  0xdb   : > { %1043 = vmatmul.mubr.msk.f32.vlgmr.msra.gmra.mxu0 %vm464_vm9, %v436_v57  ;;  %1093 = vmatprep.subr.mxu1 %v1275_v0 }
  0xdc   : > { %1111 = vmatprep.mubr.msk.f32.mxu1 %vm1282_vm0, %v1275_v0  ;;  %849 = vmatprep.mubr.f32.mxu0 %v1275_v0 }
  0xe2   : > { %v613_v59 = vpop.permute.xlu0 %612  ;;  %v622_v63 = vpop.permute.xlu1 %621 }
 0x19a   : > { %v605_v61 = vpop.f32.mrf.mxu1 }
 0x19b   : > { %v617_v1 = vmul.f32 %v613_v59, %v605_v61  ;;  %v534_v5 = vpop.f32.mrf.mxu0 }
 0x19c   : > { %v1092_v2 = vpop.f32.mrf.mxu1  ;;  %v615_v9 = vmul.f32 %v613_v59, %v534_v5 }
 0x19d   : > { %v626_v4 = vadd.f32 %v622_v63, %v617_v1  ;;  %v536_v14 = vpop.f32.mrf.mxu0 }
 0x19e   : > { %v624_v11 = vadd.f32 %v622_v63, %v615_v9  ;;  %v616_v16 = vmul.f32 %v613_v59, %v536_v14 }
 0x19f   : > { %v629_v6 = vmax.f32 %v626_v4, 0.0 }
 0x1a0   : > { %v627_v13 = vmax.f32 %v624_v11, 0.0  ;;  %v625_v17 = vadd.f32 %v622_v63, %v616_v16 }
 0x1a1   : > { %v1544_v10 = vmul.f32 %v643_v3, %v629_v6 }
 0x1a2   : > { %v1555_v15 = vmul.f32 %v635_v12, %v627_v13  ;;  %v628_v19 = vmax.f32 %v625_v17, 0.0 }
 0x1a3   : > { %734 = vrot.lane.b32.xlu1 %v1544_v10, %s1281_s19  ;;  %746 = vrot.lane.b32.xlu0 %v1544_v10, %s1280_s10 }
 0x1a4   : > { %v1566_v21 = vmul.f32 %v639_v20, %v628_v19 }
 0x1a7   : > { %709 = vrot.lane.b32.xlu1 %v1544_v10, %s1285_s22  ;;  %721 = vrot.lane.b32.xlu0 %v1544_v10, %s1286_s26 }
 0x1ab   : > { %693 = vrot.lane.b32.xlu1 %v1544_v10, %s1287_s21  ;;  %680 = vrot.lane.b32.xlu0 %v1544_v10, %s1288_s20 }
 0x1af   : > { %730 = vrot.lane.b32.xlu0 %v1555_v15, %s1281_s19  ;;  %742 = vrot.lane.b32.xlu1 %v1555_v15, %s1280_s10 }
 0x1b3   : > { %705 = vrot.lane.b32.xlu0 %v1555_v15, %s1285_s22  ;;  %717 = vrot.lane.b32.xlu1 %v1555_v15, %s1286_s26 }
 0x1b7   : > { %676 = vrot.lane.b32.xlu0 %v1555_v15, %s1288_s20  ;;  %689 = vrot.lane.b32.xlu1 %v1555_v15, %s1287_s21 }
 0x1bb   : > { %732 = vrot.lane.b32.xlu0 %v1566_v21, %s1281_s19  ;;  %663 = vrot.lane.b32.xlu1 %v1555_v15, %s1289_s18 }
 0x1bf   : > { %650 = vrot.lane.b32.xlu0 %v1555_v15, %s1290_s25  ;;  %744 = vrot.lane.b32.xlu1 %v1566_v21, %s1280_s10 }
 0x1c3   : > { %707 = vrot.lane.b32.xlu0 %v1566_v21, %s1285_s22  ;;  %719 = vrot.lane.b32.xlu1 %v1566_v21, %s1286_s26  ;;  %s968_s26 = sshll.u32 %s321_s24, 4  ;;  %s969_s26 = int_to_ptr.vmem [resolvable:$true] %s968_s26 }
 0x1c4   : > { %s1208_s19 = scalar_lea.vmem %s969_s26, 384  ;;  %p1215_p1 = scmp.lt.s32.totalorder %s969_s26, %s1213_s29 }
 0x1c5   : > { %p1209_p11 = scmp.ne.s32.totalorder %s969_s26, %s1208_s19  ;;  %p1216_p3 = scmp.lt.s32.totalorder %s1214_s12, %s1208_s19 }
 0x1c7   : > { %691 = vrot.lane.b32.xlu0 %v1566_v21, %s1287_s21  ;;  %667 = vrot.lane.b32.xlu1 %v1544_v10, %s1289_s18  ;;  %p1210_p13 = pnand %p1209_p11, %p1699_p12  ;;  %p1217_p8 = por %p1216_p3, %p1215_p1 }
 0x1c9   : > { %p1211_p0 = pneg %p1210_p13 }
 0x1cb   : > { %665 = vrot.lane.b32.xlu0 %v1566_v21, %s1289_s18  ;;  %678 = vrot.lane.b32.xlu1 %v1566_v21, %s1288_s20  ;;  %s966_s18 = scalar_lea.hbm %s1686_s8, %s1051_s15  ;;  %p1218_p10 = pnand %p1217_p8, %p1211_p0 }
 0x1cf   : > { %654 = vrot.lane.b32.xlu0 %v1544_v10, %s1290_s25  ;;  %652 = vrot.lane.b32.xlu1 %v1566_v21, %s1290_s25  ;;  %s954_s25 = scalar_lea.sflag [#allocation5], %s1423_s14 }
 0x1d3   : > { %938 = vperm.xlu0 %1178, %v935_v22   ;;  %929 = vperm.xlu1 %1179, %v926_v23  }
 0x215   : > { %v735_v24 = vpop.permute.xlu1 %734  ;;  %v747_v25 = vpop.permute.xlu0 %746 }
 0x219   : > { %v710_v26 = vpop.permute.xlu1 %709  ;;  %v722_v27 = vpop.permute.xlu0 %721 }
 0x21d   : > { %v694_v28 = vpop.permute.xlu1 %693  ;;  %v1589_v29 = vpop.permute.xlu0 %680 }
 0x221   : > { %v731_v30 = vpop.permute.xlu0 %730  ;;  %v743_v31 = vpop.permute.xlu1 %742 }
 0x222   : > { %v750_v32 = vsel %vm377_vm5, %v747_v25, %v743_v31  ;;  %v738_v33 = vsel %vm364_vm6, %v735_v24, %v731_v30 }
 0x223   : > { %1094 = vmatpush3.msra.mxu1 %v750_v32 }
 0x224   : > { %1095 = vmatprep.subr.mxu1 %v1275_v0 }
 0x225   : > { %v706_v34 = vpop.permute.xlu0 %705  ;;  %1096 = vmatpush3.msra.mxu1 %v738_v33  ;;  %v718_v36 = vpop.permute.xlu1 %717 }
 0x226   : > { %v726_v37 = vsel %vm723_vm10, %v722_v27, %v718_v36  ;;  %1097 = vmatprep.subr.mxu1 %v1275_v0  ;;  %v713_v40 = vsel %vm338_vm8, %v710_v26, %v706_v34 }
 0x227   : > { %1098 = vmatpush3.msra.mxu1 %v726_v37 }
 0x228   : > { %1099 = vmatprep.subr.mxu1 %v1275_v0 }
 0x229   : > { %v677_v41 = vpop.permute.xlu0 %676  ;;  %1100 = vmatpush3.msra.mxu1 %v713_v40  ;;  %v690_v42 = vpop.permute.xlu1 %689 }
 0x22a   : > { %1101 = vmatprep.subr.mxu1 %v1275_v0  ;;  %v698_v61 = vsel %vm695_vm11, %v694_v28, %v690_v42  ;;  %v685_v3 = vsel %vm682_vm12, %v1589_v29, %v677_v41 }
 0x22b   : > { %1102 = vmatpush3.msra.mxu1 %v1544_v10 }
 0x22c   : > { %1103 = vmatprep.subr.mxu1 %v1275_v0 }
 0x22d   : > { %v733_v43 = vpop.permute.xlu0 %732  ;;  %v664_v44 = vpop.permute.xlu1 %663 }
 0x22e   : > { %v736_v49 = vsel %vm364_vm6, %v733_v43, %v735_v24  ;;  %v737_v50 = vsel %vm364_vm6, %v731_v30, %v733_v43 }
 0x231   : > { %v651_v45 = vpop.permute.xlu0 %650  ;;  %v745_v46 = vpop.permute.xlu1 %744 }
 0x232   : > { %v749_v47 = vsel %vm377_vm5, %v743_v31, %v745_v46  ;;  %v748_v48 = vsel %vm377_vm5, %v745_v46, %v747_v25 }
 0x233   : > { %799 = vmatprep.subr.mxu0 %v748_v48 }
 0x234   : > { %800 = vmatpush1.msra.mxu0 %v749_v47 }
 0x235   : > { %v708_v51 = vpop.permute.xlu0 %707  ;;  %801 = vmatprep.subr.mxu0 %v736_v49  ;;  %v720_v52 = vpop.permute.xlu1 %719 }
 0x236   : > { %v725_v53 = vsel %vm723_vm10, %v718_v36, %v720_v52  ;;  %802 = vmatpush1.msra.mxu0 %v737_v50  ;;  %v724_v54 = vsel %vm723_vm10, %v720_v52, %v722_v27  ;;  %v711_v55 = vsel %vm338_vm8, %v708_v51, %v710_v26  ;;  %v712_v56 = vsel %vm338_vm8, %v706_v34, %v708_v51 }
 0x237   : > { %803 = vmatprep.subr.mxu0 %v724_v54 }
 0x238   : > { %804 = vmatpush1.msra.mxu0 %v725_v53 }
 0x239   : > { %v692_v57 = vpop.permute.xlu0 %691  ;;  %805 = vmatprep.subr.mxu0 %v711_v55  ;;  %v668_v58 = vpop.permute.xlu1 %667 }
 0x23a   : > { %v696_v59 = vsel %vm695_vm11, %v692_v57, %v694_v28  ;;  %806 = vmatpush1.msra.mxu0 %v712_v56  ;;  %v697_v60 = vsel %vm695_vm11, %v690_v42, %v692_v57  ;;  %v672_v6 = vsel %vm669_vm13, %v668_v58, %v664_v44 }
 0x23b   : > { %807 = vmatprep.subr.mxu0 %v1566_v21  ;;  %1104 = vmatpush3.msra.mxu1 %v696_v59 }
 0x23c   : > { %808 = vmatpush1.msra.mxu0 %v1555_v15  ;;  %1105 = vmatprep.subr.mxu1 %v1275_v0 }
 0x23d   : > { %v666_v62 = vpop.permute.xlu0 %665  ;;  %809 = vmatprep.subr.mxu0 %v697_v60  ;;  %v679_v63 = vpop.permute.xlu1 %678 }
 0x23e   : > { %v683_v1 = vsel %vm682_vm12, %v679_v63, %v1589_v29  ;;  %810 = vmatpush1.msra.mxu0 %v698_v61  ;;  %v684_v2 = vsel %vm682_vm12, %v677_v41, %v679_v63  ;;  %v670_v4 = vsel %vm669_vm13, %v666_v62, %v668_v58  ;;  %v671_v5 = vsel %vm669_vm13, %v664_v44, %v666_v62 }
 0x23f   : > { %811 = vmatprep.subr.mxu0 %v684_v2  ;;  %1106 = vmatpush3.msra.mxu1 %v683_v1 }
 0x240   : > { %812 = vmatpush1.msra.mxu0 %v685_v3  ;;  %1107 = vmatprep.subr.mxu1 %v1275_v0 }
 0x241   : > { %v655_v9 = vpop.permute.xlu0 %654  ;;  %813 = vmatprep.subr.mxu0 %v671_v5  ;;  %1108 = vmatpush3.msra.mxu1 %v670_v4  ;;  %v653_v10 = vpop.permute.xlu1 %652 }
 0x242   : > { %v659_v11 = vsel %vm656_vm14, %v655_v9, %v651_v45  ;;  %v657_v12 = vsel %vm656_vm14, %v653_v10, %v655_v9  ;;  %814 = vmatpush1.msra.mxu0 %v672_v6  ;;  %1109 = vmatprep.subr.mxu1 %v1275_v0  ;;  %v658_v8 = vsel %vm656_vm14, %v651_v45, %v653_v10 }
 0x243   : > { %815 = vmatprep.subr.mxu0 %v658_v8  ;;  %1110 = vmatpush3.msra.mxu1 %v657_v12 }
 0x244   : > { %816 = vmatpush1.msra.mxu0 %v659_v11  ;;  %1112 = vmatmul.mubr.msk.f32.vlgmr.msra.gmra.mxu1 %vm464_vm9, %v754_v7 }
 0x245   : > { %1045 = vmatmul.mubr.msk.f32.vlgmr.msra.gmra.mxu0 %vm464_vm9, %v754_v7 }
 0x24e   : > { %v930_v13 = vpop.permute.xlu1 %929  ;;  %v939_v17 = vpop.permute.xlu0 %938 }
 0x304   : > { %v922_v14 = vpop.f32.mrf.mxu1 }
 0x305   : > { %v934_v15 = vmul.f32 %v930_v13, %v922_v14  ;;  %v851_v16 = vpop.f32.mrf.mxu0 }
 0x306   : > { %v932_v18 = vmul.f32 %v930_v13, %v851_v16  ;;  %v1113_v19 = vpop.f32.mrf.mxu1 }
 0x307   : > { %v943_v20 = vadd.f32 %v939_v17, %v934_v15  ;;  %v853_v21 = vpop.f32.mrf.mxu0 }
 0x308   : > { %v941_v0 = vadd.f32 %v939_v17, %v932_v18  ;;  %v933_v22 = vmul.f32 %v930_v13, %v853_v21 }
 0x309   : > { %v946_v23 = vadd.f32 %v943_v20, %v1505_v39 }
 0x30a   : > { %v944_v24 = vadd.f32 %v941_v0, %v1501_v38  ;;  %v942_v25 = vadd.f32 %v939_v17, %v933_v22 }
 0x30b   : > { %v949_v26 = vmax.f32 %v946_v23, 0.0 }
 0x30c   : > { %v947_v27 = vmax.f32 %v944_v24, 0.0  ;;  %v945_v28 = vadd.f32 %v942_v25, %v1496_v35 }
 0x30d   : > { %952 = vst [vmem:[%s321_s24 + $0x10] sm:$0xff] %v949_v26 }
 0x30e   : > { %950 = vst [vmem:[%s321_s24] sm:$0xff] %v947_v27  ;;  %v948_v29 = vmax.f32 %v945_v28, 0.0 }
 0x310   : > { %951 = vst [vmem:[%s321_s24 + $0x8] sm:$0xff] %v948_v29 }
 0x311   : > { %1221 = shalt.err (!%p1218_p10)
}
 0x312   : > { %s1222_s10 = scalar_lea.hbm %s966_s18, 384  ;;  %s1226_s13 = scalar_lea.hbm %s1686_s8, 768 }
 0x313   : > { %p1223_p2 = scmp.ne.s32.totalorder %s966_s18, %s1222_s10  ;;  %p1227_p7 = scmp.lt.s32.totalorder %s966_s18, %s1686_s8 }
 0x314   : > { %p1228_p5 = scmp.lt.s32.totalorder %s1226_s13, %s1222_s10 }
 0x315   : > { %p1224_p4 = pnand %p1223_p2, %p1699_p12 }
 0x316   : > { %p1229_p6 = por %p1228_p5, %p1227_p7 }
 0x317   : > { %p1225_p9 = pneg %p1224_p4 }
 0x319   : > { %p1230_p11 = pnand %p1229_p6, %p1225_p9 }
 0x31b   : > { %1233 = shalt.err (!%p1230_p11)
}
 0x31c   : > { %1118 = dma.vmem_to_hbm [thread:$0]  (%p1699_p12), %s969_s26, 384, %s966_s18, %s954_s25  }
 0x31d PF: > { %s980_s24 = sand.u32 1, %s1260_s27   ;;  %p1700_p13 = scmp.ne.s32.totalorder %s1694_s17, 0 }
 0x31e   : > { %p1701_p0 = scmp.ge.s32.totalorder %s1272_s30, 2  ;;  %s981_s21 = scalar_lea.sflag [#allocation5], %s980_s24 }
 0x320   : > { %p1125_p1 = pnand %p1701_p0, %p1700_p13 }
 0x322   : > { %p1126_p3 = pneg %p1125_p1 }
 0x324   : > { %1255 = dma.done.wait (%p1126_p3), %s981_s21, 384  }
 0x325   : > { %1257 = vsyncadd (%p1126_p3), %s981_s21, 4294966912  ;;  %s1702_s20 = sld [smem:[#allocation9_spill]]  ;;  %p21_p8 = scmp.ge.s32.totalorder %s1362_s11, 4  }
 0x326   : > { %s1703_s29 = sld [smem:[#allocation10_spill]]  ;;  %s1704_s27 = smov %s1264_s28 }
 0x327   : > { %s1706_s30 = smov %s1362_s11  ;;  %23 = sbr.rel (!%p21_p8) target bundleno = 5 (0x5), region = 97 }
 0x32b   : > { %s1705_s28 = smov %s1702_s20 }
 0x32c   :  { %986 = vsyncpa [#allocation4], 1 }
 0x32d   :  { %988 = vsyncpa [#allocation4 + $0x1], 1 }
 0x32e   :  { %989 = vsyncpa [#allocation5], 1 }
 0x32f   :  { %991 = vsyncpa [#allocation5 + $0x1], 1 }

// kernel: tpu_custom_call.1
= control target key start
LH: loop header
LB: loop body
LE: loop exit
PB: predicated region body
PF: predicated region fallthrough
CT: control target
= control target key end

     0   :  { %13 = vsyncpa [#allocation4], 0  ;;  %s1708_s0 = inlined_call_operand.hbm [shape: f32[8,768], index: 0, kind: input, shape index: {}]   ;;  %s1709_s1 = inlined_call_operand.vmem [shape: f32[8,72], index: 1, kind: input, shape index: {}]   ;;  %s1710_s2 = inlined_call_operand.vmem [shape: f32[8,72], index: 2, kind: input, shape index: {}]   ;;  %s1711_s3 = inlined_call_operand.vmem [shape: f32[8,1], index: 3, kind: input, shape index: {}]   ;;  %s1712_s4 = inlined_call_operand.vmem [shape: f32[8,1], index: 4, kind: input, shape index: {}]   ;;  %s1713_s5 = inlined_call_operand.vmem [shape: f32[8,1], index: 5, kind: input, shape index: {}]   ;;  %s1714_s6 = inlined_call_operand.vmem [shape: f32[8,1], index: 6, kind: input, shape index: {}]   ;;  %s1715_s7 = inlined_call_operand.vmem [shape: f32[1,384], index: 7, kind: input, shape index: {}]   ;;  %s1716_s8 = inlined_call_operand.hbm [shape: f32[8,768], index: 8, kind: output, shape index: {}]  }
   0x1   :  { %15 = vsyncpa [#allocation4 + $0x1], 0 }
   0x2   :  { %16 = vsyncpa [#allocation5], 0 }
   0x3   :  { %18 = vsyncpa [#allocation5 + $0x1], 0  ;;  %s1405_s27 = smov 0   ;;  %s1407_s28 = smov 0  }
   0x4   :  { %s1409_s29 = smov 0   ;;  %s1411_s30 = smov 0  }
   0x5 LB: > { %1720 = sst [smem:[#allocation9_spill]] %s1336_s29  ;;  %s1426_s9 = sadd.s32 4294967295, %s1340_s30   ;;  %s1340_s30 = sphi %s1411_s30, %s1736_s30   ;;  %s1336_s29 = sphi %s1409_s29, %s1733_s29   ;;  %s1332_s28 = sphi %s1407_s28, %s1735_s28   ;;  %s1328_s27 = sphi %s1405_s27, %s1734_s27  }
   0x6   : > { %s1106_s10 = sadd.s32 4294967294, %s1340_s30   ;;  %s1430_s11 = sadd.s32 1, %s1340_s30  }
   0x7   : > { %s31_s12 = sadd.s32 1, %s1336_s29  ;;  %s28_s13 = ssub.s32 %s1340_s30, %s1430_s11 }
   0x8   : > { %p38_p0 = scmp.ne.s32.totalorder %s1336_s29, %s1332_s28  ;;  %p29_p1 = scmp.eq.s32.totalorder %s28_s13, 0 }
   0x9   : > { %p39_p2 = scmp.eq.s32.totalorder %s1340_s30, 0  ;;  %p44_p3 = scmp.ne.s32.totalorder %s1332_s28, %s1328_s27 }
   0xa   : > { %p45_p4 = scmp.eq.s32.totalorder %s1426_s9, 0  ;;  %p215_p7 = scmp.eq.s32.totalorder %s1426_s9, 1 }
   0xb   : > { %s1442_s14 = scalar_select %p29_p1, %s1336_s29, %s31_s12  }
   0xc   : > { %p40_p5 = por %p39_p2, %p38_p0  ;;  %p1444_p6 = por %p45_p4, %p44_p3 }
   0xd   : > { %1721 = sst [smem:[#allocation10_spill]] %s1442_s14  ;;  %p221_p8 = scmp.eq.s32.totalorder %s1106_s10, 1 }
   0xe   : > { %s1722_s15 = scalar_select %p1444_p6, 1, 0 }
   0xf   : > { %p1196_p10 = scmp.lt.s32.totalorder %s1340_s30, 2  ;;  %p1451_p11 = por %p215_p7, %p38_p0 }
  0x10   : > { %p1455_p12 = por %p221_p8, %p44_p3  ;;  %s262_s18 = sand.u32 1, %s1336_s29  }
  0x11   : > { %s1723_s16 = scalar_select %p1451_p11, 1, 0 }
  0x12   : > { %s1724_s17 = scalar_select %p1455_p12, 1, 0 }
  0x13   : > { %s1118_s19 = smul.u32 384, %s1340_s30  ;;  %p1466_p13 = pnand %p1196_p10, %p40_p5 }
  0x14   : > { %s1182_s20 = smul.u32 24, %s262_s18  ;;  %s263_s10 = scalar_lea.sflag [#allocation4], %s262_s18 }
  0x15   : > { %s1464_s23 = scalar_lea.hbm %s1708_s0, %s1118_s19  ;;  %p1250_p3 = pneg %p1466_p13 }
  0x16   : > { %s266_s25 = scalar_lea.vmem [#allocation3], %s1182_s20  ;;  %s1248_s12 = scalar_lea.hbm %s1464_s23, 384 }
  0x17   : > { %s274_s26 = sshll.u32 %s266_s25, 4  ;;  %p1249_p2 = scmp.ne.s32.totalorder %s1464_s23, %s1248_s12  ;;  %s275_s26 = int_to_ptr.vmem [resolvable:$true] %s274_s26 }
  0x18   : > { %s1253_s21 = scalar_lea.hbm %s1708_s0, 768  ;;  %p1254_p5 = scmp.lt.s32.totalorder %s1464_s23, %s1708_s0 }
  0x19   : > { %p1251_p4 = pnand %p1250_p3, %p1249_p2  ;;  %p1255_p8 = scmp.lt.s32.totalorder %s1253_s21, %s1248_s12 }
  0x1b   : > { %p1252_p7 = pneg %p1251_p4  ;;  %p1256_p10 = por %p1255_p8, %p1254_p5 }
  0x1d   : > { %p1257_p9 = pnand %p1256_p10, %p1252_p7 }
  0x1f   : > { %1260 = shalt.err (!%p1257_p9)
}
  0x20   : > { %s1261_s20 = scalar_lea.vmem %s275_s26, 384  ;;  %s1342_s18 = smov [#allocation3]  }
  0x21   : > { %p1262_p0 = scmp.ne.s32.totalorder %s275_s26, %s1261_s20  ;;  %s1266_s25 = sshll.u32 %s1342_s18, 4  ;;  %s1267_s25 = int_to_ptr.vmem [resolvable:$false] %s1266_s25 }
  0x22   : > { %s1268_s29 = scalar_lea.vmem %s1267_s25, 768  ;;  %p1269_p2 = scmp.lt.s32.totalorder %s275_s26, %s1267_s25 }
  0x23   : > { %p1264_p1 = pnand %p1262_p0, %p1250_p3  ;;  %p1270_p4 = scmp.lt.s32.totalorder %s1268_s29, %s1261_s20 }
  0x25   : > { %p1265_p12 = pneg %p1264_p1  ;;  %p1271_p11 = por %p1270_p4, %p1269_p2 }
  0x27   : > { %p1272_p6 = pnand %p1271_p11, %p1265_p12 }
  0x29   : > { %1275 = shalt.err (!%p1272_p6)
}
  0x2a   : > { %1191 = dma.hbm_to_vmem [thread:$0]  (!%p1466_p13), %s1464_s23, 384, %s275_s26, %s263_s10  }
  0x2b   : > { %p1726_p9 = scmp.lt.s32.totalorder %s1340_s30, 3  ;;  %p1727_p7 = scmp.ge.s32.totalorder %s1340_s30, 1 }
  0x2d   : > { %p280_p5 = pnand %p1727_p7, %p1726_p9 }
  0x2e   : > { %s1491_s14 = sand.u32 (!%p280_p5), 1, %s1332_s28   ;;  %p1728_p6 = scmp.ne.s32.totalorder (!%p280_p5), %s1722_s15, 0 }
  0x2f   : > { %283 = sbr.rel (%p280_p5) target bundleno = 797 (0x31d), region = 52  ;;  %s286_s12 = scalar_lea.sflag (!%p280_p5), [#allocation4], %s1491_s14 }
  0x30   : > { %s1183_s29 = smul.u32 (!%p280_p5), 24, %s1491_s14 }
  0x32   : > { %s289_s13 = scalar_lea.vmem (!%p280_p5), [#allocation3], %s1183_s29 }
  0x34   : > { %1319 = dma.done.wait (%p1728_p6), %s286_s12, 384  }
  0x35   : > { %1321 = vsyncadd (%p1728_p6), %s286_s12, 4294966912  ;;  %v1343_v0 = vmov 0.0   ;;  %v1503_v1 = vld [vmem:[%s289_s13 + $0x8] sm:$0xff]  ;;  %v1505_v2 = vld [vmem:[%s289_s13] sm:$0xff]  ;;  %s1344_s23 = smov 90   ;;  %s1345_s15 = smov 91   ;;  %v665_v56 = vlaneseq }
  0x36   : > { %1140 = vmatprep.subr.mxu1 %v1343_v0  ;;  %565 = vmatprep.mubr.f32.mxu0 %v1343_v0  ;;  %v1509_v3 = vld [vmem:[%s289_s13 + $0x10] sm:$0xff]  ;;  %s1346_s24 = smov 92   ;;  %s1347_s26 = smov 108   ;;  %vm1350_vm0 = vmmov 0   ;;  %v1352_v4 = vmov 0   ;;  %v642_v5 = vld [vmem:[%s1711_s3] sm:$0xff] }
  0x37   : > { %454 = vrot.lane.b32.xlu0 %v1503_v1, %s1344_s23  ;;  %452 = vrot.lane.b32.xlu1 %v1505_v2, %s1344_s23  ;;  %s1348_s10 = smov 109   ;;  %s1349_s19 = smov 110   ;;  %v651_v6 = vld [vmem:[%s1712_s4] sm:$0xff]  ;;  %vm458_vm1 = vcmask 736256   ;;  %vm441_vm2 = vcmask 744448   ;;  %vm424_vm3 = vcmask 752640  }
  0x38   : > { %1158 = vmatprep.mubr.msk.f32.mxu1 %vm1350_vm0, %v1343_v0  ;;  %s1351_s21 = smov 126   ;;  %1246 = vset.pattern.permute.xlu0 %v1352_v4  ;;  %s1353_s22 = smov 127   ;;  %vm407_vm4 = vcmask 883712   ;;  %vm390_vm5 = vcmask 891904   ;;  %vm373_vm6 = vcmask 900096   ;;  %vm356_vm7 = vcmask 1031168  }
  0x39   : > { %1247 = vset.pattern.permute.xlu1 %v1352_v4  ;;  %vm339_vm8 = vcmask 1039360   ;;  %v469_v55 = vld [vmem:[%s1709_s1] sm:$0xff]  ;;  %vm497_vm9 = vcmask 588800   ;;  %v666_v57 = vshrl.u32 %v665_v56, 7  ;;  %s1356_s20 = smov 17   ;;  %s1357_s18 = smov 18  }
  0x3a   : > { %v663_v61 = vld [vmem:[%s1715_s7] sm:$0x7]  ;;  %s1358_s25 = smov 19   ;;  %vm779_vm10 = vcmask 908288   ;;  %vm744_vm11 = vcmask 7168   ;;  %vm727_vm12 = vcmask 138240  }
  0x3b   : > { %456 = vrot.lane.b32.xlu0 %v1509_v3, %s1344_s23  ;;  %437 = vrot.lane.b32.xlu1 %v1503_v1, %s1345_s15  ;;  %v675_v59 = vsub.s32 2, %v666_v57  ;;  %vm710_vm13 = vcmask 146432   ;;  %vm693_vm14 = vcmask 154624   ;;  %p1729_p12 = scmp.ne.s32.totalorder %s1723_s16, 0 }
  0x3f   : > { %439 = vrot.lane.b32.xlu0 %v1509_v3, %s1345_s15  ;;  %435 = vrot.lane.b32.xlu1 %v1505_v2, %s1345_s15  ;;  %s1119_s15 = smul.u32 384, %s1426_s9  ;;  %s1359_s9 = smov [#allocation6]  }
  0x43   : > { %420 = vrot.lane.b32.xlu0 %v1503_v1, %s1346_s24  ;;  %422 = vrot.lane.b32.xlu1 %v1509_v3, %s1346_s24 }
  0x47   : > { %418 = vrot.lane.b32.xlu0 %v1505_v2, %s1346_s24  ;;  %403 = vrot.lane.b32.xlu1 %v1503_v1, %s1347_s26  ;;  %s321_s24 = scalar_lea.vmem [#allocation6], %s1183_s29  ;;  %s1280_s29 = sshll.u32 %s1359_s9, 4  ;;  %s1281_s29 = int_to_ptr.vmem [resolvable:$false] %s1280_s29 }
  0x48   : > { %s1282_s12 = scalar_lea.vmem %s1281_s29, 768 }
  0x4b   : > { %405 = vrot.lane.b32.xlu0 %v1509_v3, %s1347_s26  ;;  %401 = vrot.lane.b32.xlu1 %v1505_v2, %s1347_s26  ;;  %s1354_s26 = smov 111  }
  0x4f   : > { %386 = vrot.lane.b32.xlu0 %v1503_v1, %s1348_s10  ;;  %388 = vrot.lane.b32.xlu1 %v1509_v3, %s1348_s10 }
  0x53   : > { %384 = vrot.lane.b32.xlu0 %v1505_v2, %s1348_s10  ;;  %369 = vrot.lane.b32.xlu1 %v1503_v1, %s1349_s19 }
  0x57   : > { %371 = vrot.lane.b32.xlu0 %v1509_v3, %s1349_s19  ;;  %367 = vrot.lane.b32.xlu1 %v1505_v2, %s1349_s19 }
  0x5b   : > { %352 = vrot.lane.b32.xlu0 %v1503_v1, %s1351_s21  ;;  %354 = vrot.lane.b32.xlu1 %v1509_v3, %s1351_s21 }
  0x5f   : > { %350 = vrot.lane.b32.xlu0 %v1505_v2, %s1351_s21  ;;  %335 = vrot.lane.b32.xlu1 %v1503_v1, %s1353_s22  ;;  %s1355_s21 = smov 1  }
  0x63   : > { %337 = vrot.lane.b32.xlu0 %v1509_v3, %s1353_s22  ;;  %333 = vrot.lane.b32.xlu1 %v1505_v2, %s1353_s22 }
  0x67   : > { %645 = vperm.xlu0 %1246, %v642_v5   ;;  %654 = vperm.xlu1 %1247, %v651_v6  }
  0xa9   : > { %v455_v7 = vpop.permute.xlu0 %454  ;;  %v453_v8 = vpop.permute.xlu1 %452 }
  0xaa   : > { %v459_v13 = vsel %vm458_vm1, %v453_v8, %v455_v7 }
  0xad   : > { %v457_v9 = vpop.permute.xlu0 %456  ;;  %v438_v10 = vpop.permute.xlu1 %437 }
  0xae   : > { %v460_v11 = vsel %vm458_vm1, %v455_v7, %v457_v9  ;;  %v465_v12 = vsel %vm458_vm1, %v457_v9, %v453_v8  ;;  %v667_v8 = vsub.s32 0, %v666_v57 }
  0xaf   : > { %515 = vmatprep.subr.mxu0 %v460_v11  ;;  %1141 = vmatpush3.msra.mxu1 %v465_v12 }
  0xb0   : > { %516 = vmatpush1.msra.mxu0 %v459_v13  ;;  %1142 = vmatprep.subr.mxu1 %v1343_v0 }
  0xb1   : > { %v440_v14 = vpop.permute.xlu0 %439  ;;  %v436_v15 = vpop.permute.xlu1 %435 }
  0xb2   : > { %v443_v16 = vsel %vm441_vm2, %v438_v10, %v440_v14  ;;  %v448_v17 = vsel %vm441_vm2, %v440_v14, %v436_v15  ;;  %v442_v18 = vsel %vm441_vm2, %v436_v15, %v438_v10  ;;  %v668_v10 = vrot.slane %v663_v61, %v667_v8 }
  0xb3   : > { %517 = vmatprep.subr.mxu0 %v443_v16  ;;  %1143 = vmatpush3.msra.mxu1 %v448_v17  ;;  %v671_v16 = vsub.s32 1, %v666_v57 }
  0xb4   : > { %518 = vmatpush1.msra.mxu0 %v442_v18  ;;  %1144 = vmatprep.subr.mxu1 %v1343_v0 }
  0xb5   : > { %v421_v19 = vpop.permute.xlu0 %420  ;;  %v423_v20 = vpop.permute.xlu1 %422  ;;  %v672_v18 = vrot.slane %v663_v61, %v671_v16 }
  0xb6   : > { %v426_v21 = vsel %vm424_vm3, %v421_v19, %v423_v20 }
  0xb7   : > { %519 = vmatprep.subr.mxu0 %v426_v21  ;;  %v994_v21 = vld [vmem:[%s1713_s5] sm:$0xff] }
  0xb9   : > { %v419_v22 = vpop.permute.xlu0 %418  ;;  %v404_v23 = vpop.permute.xlu1 %403 }
  0xba   : > { %v425_v24 = vsel %vm424_vm3, %v419_v22, %v421_v19  ;;  %v431_v25 = vsel %vm424_vm3, %v423_v20, %v419_v22  ;;  %v1003_v20 = vld [vmem:[%s1714_s6] sm:$0xff] }
  0xbb   : > { %520 = vmatpush1.msra.mxu0 %v425_v24  ;;  %1145 = vmatpush3.msra.mxu1 %v431_v25 }
  0xbc   : > { %1146 = vmatprep.subr.mxu1 %v1343_v0 }
  0xbd   : > { %v406_v26 = vpop.permute.xlu0 %405  ;;  %v402_v27 = vpop.permute.xlu1 %401 }
  0xbe   : > { %v409_v28 = vsel %vm407_vm4, %v404_v23, %v406_v26  ;;  %v414_v29 = vsel %vm407_vm4, %v406_v26, %v402_v27  ;;  %v408_v30 = vsel %vm407_vm4, %v402_v27, %v404_v23 }
  0xbf   : > { %521 = vmatprep.subr.mxu0 %v409_v28  ;;  %1147 = vmatpush3.msra.mxu1 %v414_v29 }
  0xc0   : > { %522 = vmatpush1.msra.mxu0 %v408_v30  ;;  %1148 = vmatprep.subr.mxu1 %v1343_v0 }
  0xc1   : > { %v387_v31 = vpop.permute.xlu0 %386  ;;  %v389_v32 = vpop.permute.xlu1 %388 }
  0xc2   : > { %v1555_v33 = vsel %vm390_vm5, %v387_v31, %v389_v32 }
  0xc3   : > { %523 = vmatprep.subr.mxu0 %v1555_v33 }
  0xc5   : > { %v385_v34 = vpop.permute.xlu0 %384  ;;  %v370_v35 = vpop.permute.xlu1 %369 }
  0xc6   : > { %v1559_v36 = vsel %vm390_vm5, %v385_v34, %v387_v31  ;;  %v1562_v37 = vsel %vm390_vm5, %v389_v32, %v385_v34 }
  0xc7   : > { %524 = vmatpush1.msra.mxu0 %v1559_v36  ;;  %1149 = vmatpush3.msra.mxu1 %v1562_v37 }
  0xc8   : > { %1150 = vmatprep.subr.mxu1 %v1343_v0 }
  0xc9   : > { %v372_v38 = vpop.permute.xlu0 %371  ;;  %v368_v39 = vpop.permute.xlu1 %367 }
  0xca   : > { %v375_v40 = vsel %vm373_vm6, %v370_v35, %v372_v38  ;;  %v380_v41 = vsel %vm373_vm6, %v372_v38, %v368_v39  ;;  %v374_v42 = vsel %vm373_vm6, %v368_v39, %v370_v35 }
  0xcb   : > { %525 = vmatprep.subr.mxu0 %v375_v40  ;;  %1151 = vmatpush3.msra.mxu1 %v380_v41 }
  0xcc   : > { %526 = vmatpush1.msra.mxu0 %v374_v42  ;;  %1152 = vmatprep.subr.mxu1 %v1343_v0 }
  0xcd   : > { %v353_v43 = vpop.permute.xlu0 %352  ;;  %v355_v44 = vpop.permute.xlu1 %354 }
  0xce   : > { %v358_v45 = vsel %vm356_vm7, %v353_v43, %v355_v44 }
  0xcf   : > { %527 = vmatprep.subr.mxu0 %v358_v45 }
  0xd1   : > { %v351_v46 = vpop.permute.xlu0 %350  ;;  %v336_v47 = vpop.permute.xlu1 %335 }
  0xd2   : > { %v357_v48 = vsel %vm356_vm7, %v351_v46, %v353_v43  ;;  %v363_v49 = vsel %vm356_vm7, %v355_v44, %v351_v46 }
  0xd3   : > { %528 = vmatpush1.msra.mxu0 %v357_v48  ;;  %1153 = vmatpush3.msra.mxu1 %v363_v49 }
  0xd4   : > { %1154 = vmatprep.subr.mxu1 %v1343_v0 }
  0xd5   : > { %v338_v50 = vpop.permute.xlu0 %337  ;;  %v334_v51 = vpop.permute.xlu1 %333 }
  0xd6   : > { %v341_v52 = vsel %vm339_vm8, %v336_v47, %v338_v50  ;;  %v346_v53 = vsel %vm339_vm8, %v338_v50, %v334_v51  ;;  %v340_v54 = vsel %vm339_vm8, %v334_v51, %v336_v47 }
  0xd7   : > { %529 = vmatprep.subr.mxu0 %v341_v52  ;;  %1155 = vmatpush3.msra.mxu1 %v346_v53 }
  0xd8   : > { %530 = vmatpush1.msra.mxu0 %v340_v54  ;;  %1156 = vmatprep.subr.mxu1 %v1343_v0 }
  0xd9   : > { %531 = vmatprep.subr.mxu0 %v1503_v1  ;;  %1157 = vmatpush3.msra.mxu1 %v1509_v3 }
  0xda   : > { %532 = vmatpush1.msra.mxu0 %v1505_v2  ;;  %1159 = vmatmul.mubr.msk.f32.vlgmr.msra.gmra.mxu1 %vm497_vm9, %v469_v55  ;;  %v676_v2 = vrot.slane %v663_v61, %v675_v59 }
  0xdb   : > { %1111 = vmatmul.mubr.msk.f32.vlgmr.msra.gmra.mxu0 %vm497_vm9, %v469_v55  ;;  %1161 = vmatprep.subr.mxu1 %v1343_v0 }
  0xdc   : > { %1179 = vmatprep.mubr.msk.f32.mxu1 %vm1350_vm0, %v1343_v0  ;;  %917 = vmatprep.mubr.f32.mxu0 %v1343_v0 }
  0xe2   : > { %v646_v58 = vpop.permute.xlu0 %645  ;;  %v655_v62 = vpop.permute.xlu1 %654 }
 0x19a   : > { %v638_v60 = vpop.f32.mrf.mxu1 }
 0x19b   : > { %v650_v63 = vmul.f32 %v646_v58, %v638_v60  ;;  %v567_v4 = vpop.f32.mrf.mxu0 }
 0x19c   : > { %v1160_v1 = vpop.f32.mrf.mxu1  ;;  %v648_v6 = vmul.f32 %v646_v58, %v567_v4 }
 0x19d   : > { %v659_v3 = vadd.f32 %v655_v62, %v650_v63  ;;  %v569_v12 = vpop.f32.mrf.mxu0 }
 0x19e   : > { %v657_v9 = vadd.f32 %v655_v62, %v648_v6  ;;  %v649_v14 = vmul.f32 %v646_v58, %v569_v12 }
 0x19f   : > { %v662_v5 = vmax.f32 %v659_v3, 0.0 }
 0x1a0   : > { %v660_v11 = vmax.f32 %v657_v9, 0.0  ;;  %v658_v15 = vadd.f32 %v655_v62, %v649_v14 }
 0x1a1   : > { %v1591_v7 = vmul.f32 %v676_v2, %v662_v5 }
 0x1a2   : > { %v1602_v13 = vmul.f32 %v668_v10, %v660_v11  ;;  %v661_v17 = vmax.f32 %v658_v15, 0.0 }
 0x1a3   : > { %794 = vrot.lane.b32.xlu1 %v1591_v7, %s1349_s19  ;;  %810 = vrot.lane.b32.xlu0 %v1591_v7, %s1348_s10 }
 0x1a4   : > { %v1613_v19 = vmul.f32 %v672_v18, %v661_v17 }
 0x1a7   : > { %761 = vrot.lane.b32.xlu1 %v1591_v7, %s1353_s22  ;;  %777 = vrot.lane.b32.xlu0 %v1591_v7, %s1354_s26 }
 0x1ab   : > { %737 = vrot.lane.b32.xlu1 %v1591_v7, %s1355_s21  ;;  %720 = vrot.lane.b32.xlu0 %v1591_v7, %s1356_s20 }
 0x1af   : > { %790 = vrot.lane.b32.xlu0 %v1602_v13, %s1349_s19  ;;  %806 = vrot.lane.b32.xlu1 %v1602_v13, %s1348_s10 }
 0x1b3   : > { %757 = vrot.lane.b32.xlu0 %v1602_v13, %s1353_s22  ;;  %773 = vrot.lane.b32.xlu1 %v1602_v13, %s1354_s26 }
 0x1b7   : > { %723 = vrot.lane.b32.xlu0 %v1602_v13, %s1356_s20  ;;  %740 = vrot.lane.b32.xlu1 %v1602_v13, %s1355_s21 }
 0x1bb   : > { %792 = vrot.lane.b32.xlu0 %v1613_v19, %s1349_s19  ;;  %706 = vrot.lane.b32.xlu1 %v1602_v13, %s1357_s18 }
 0x1bf   : > { %689 = vrot.lane.b32.xlu0 %v1602_v13, %s1358_s25  ;;  %808 = vrot.lane.b32.xlu1 %v1613_v19, %s1348_s10 }
 0x1c3   : > { %759 = vrot.lane.b32.xlu0 %v1613_v19, %s1353_s22  ;;  %775 = vrot.lane.b32.xlu1 %v1613_v19, %s1354_s26  ;;  %s1036_s26 = sshll.u32 %s321_s24, 4  ;;  %s1037_s26 = int_to_ptr.vmem [resolvable:$true] %s1036_s26 }
 0x1c4   : > { %s1276_s19 = scalar_lea.vmem %s1037_s26, 384  ;;  %p1283_p1 = scmp.lt.s32.totalorder %s1037_s26, %s1281_s29 }
 0x1c5   : > { %p1277_p11 = scmp.ne.s32.totalorder %s1037_s26, %s1276_s19  ;;  %p1284_p3 = scmp.lt.s32.totalorder %s1282_s12, %s1276_s19 }
 0x1c7   : > { %742 = vrot.lane.b32.xlu0 %v1613_v19, %s1355_s21  ;;  %703 = vrot.lane.b32.xlu1 %v1591_v7, %s1357_s18  ;;  %p1278_p13 = pnand %p1277_p11, %p1729_p12  ;;  %p1285_p8 = por %p1284_p3, %p1283_p1 }
 0x1c9   : > { %p1279_p0 = pneg %p1278_p13 }
 0x1cb   : > { %708 = vrot.lane.b32.xlu0 %v1613_v19, %s1357_s18  ;;  %725 = vrot.lane.b32.xlu1 %v1613_v19, %s1356_s20  ;;  %s1034_s18 = scalar_lea.hbm %s1716_s8, %s1119_s15  ;;  %p1286_p10 = pnand %p1285_p8, %p1279_p0 }
 0x1cf   : > { %684 = vrot.lane.b32.xlu0 %v1591_v7, %s1358_s25  ;;  %691 = vrot.lane.b32.xlu1 %v1613_v19, %s1358_s25  ;;  %s1022_s25 = scalar_lea.sflag [#allocation5], %s1491_s14 }
 0x1d3   : > { %1006 = vperm.xlu0 %1246, %v1003_v20   ;;  %997 = vperm.xlu1 %1247, %v994_v21  }
 0x215   : > { %v795_v22 = vpop.permute.xlu1 %794  ;;  %v811_v23 = vpop.permute.xlu0 %810 }
 0x219   : > { %v762_v24 = vpop.permute.xlu1 %761  ;;  %v778_v25 = vpop.permute.xlu0 %777 }
 0x21d   : > { %v738_v26 = vpop.permute.xlu1 %737  ;;  %v1636_v27 = vpop.permute.xlu0 %720 }
 0x221   : > { %v791_v28 = vpop.permute.xlu0 %790  ;;  %v807_v29 = vpop.permute.xlu1 %806 }
 0x222   : > { %v818_v30 = vsel %vm390_vm5, %v811_v23, %v807_v29  ;;  %v802_v31 = vsel %vm373_vm6, %v795_v22, %v791_v28 }
 0x223   : > { %1162 = vmatpush3.msra.mxu1 %v818_v30 }
 0x224   : > { %1163 = vmatprep.subr.mxu1 %v1343_v0 }
 0x225   : > { %v758_v32 = vpop.permute.xlu0 %757  ;;  %1164 = vmatpush3.msra.mxu1 %v802_v31  ;;  %v774_v34 = vpop.permute.xlu1 %773 }
 0x226   : > { %v786_v35 = vsel %vm779_vm10, %v778_v25, %v774_v34  ;;  %1165 = vmatprep.subr.mxu1 %v1343_v0  ;;  %v769_v38 = vsel %vm339_vm8, %v762_v24, %v758_v32 }
 0x227   : > { %1166 = vmatpush3.msra.mxu1 %v786_v35 }
 0x228   : > { %1167 = vmatprep.subr.mxu1 %v1343_v0 }
 0x229   : > { %v724_v39 = vpop.permute.xlu0 %723  ;;  %1168 = vmatpush3.msra.mxu1 %v769_v38  ;;  %v741_v40 = vpop.permute.xlu1 %740 }
 0x22a   : > { %1169 = vmatprep.subr.mxu1 %v1343_v0  ;;  %v750_v59 = vsel %vm744_vm11, %v738_v26, %v741_v40  ;;  %v733_v1 = vsel %vm727_vm12, %v1636_v27, %v724_v39 }
 0x22b   : > { %1170 = vmatpush3.msra.mxu1 %v1591_v7  ;;  %v822_v7 = vld [vmem:[%s1710_s2] sm:$0xff] }
 0x22c   : > { %1171 = vmatprep.subr.mxu1 %v1343_v0 }
 0x22d   : > { %v793_v41 = vpop.permute.xlu0 %792  ;;  %v707_v42 = vpop.permute.xlu1 %706 }
 0x22e   : > { %v797_v47 = vsel %vm373_vm6, %v793_v41, %v795_v22  ;;  %v796_v48 = vsel %vm373_vm6, %v791_v28, %v793_v41 }
 0x231   : > { %v690_v43 = vpop.permute.xlu0 %689  ;;  %v809_v44 = vpop.permute.xlu1 %808 }
 0x232   : > { %v812_v45 = vsel %vm390_vm5, %v807_v29, %v809_v44  ;;  %v813_v46 = vsel %vm390_vm5, %v809_v44, %v811_v23 }
 0x233   : > { %867 = vmatprep.subr.mxu0 %v813_v46 }
 0x234   : > { %868 = vmatpush1.msra.mxu0 %v812_v45 }
 0x235   : > { %v760_v49 = vpop.permute.xlu0 %759  ;;  %869 = vmatprep.subr.mxu0 %v797_v47  ;;  %v776_v50 = vpop.permute.xlu1 %775 }
 0x236   : > { %v780_v51 = vsel %vm779_vm10, %v774_v34, %v776_v50  ;;  %870 = vmatpush1.msra.mxu0 %v796_v48  ;;  %v781_v52 = vsel %vm779_vm10, %v776_v50, %v778_v25  ;;  %v764_v53 = vsel %vm339_vm8, %v760_v49, %v762_v24  ;;  %v763_v54 = vsel %vm339_vm8, %v758_v32, %v760_v49 }
 0x237   : > { %871 = vmatprep.subr.mxu0 %v781_v52 }
 0x238   : > { %872 = vmatpush1.msra.mxu0 %v780_v51 }
 0x239   : > { %v743_v55 = vpop.permute.xlu0 %742  ;;  %873 = vmatprep.subr.mxu0 %v764_v53  ;;  %v704_v56 = vpop.permute.xlu1 %703 }
 0x23a   : > { %v746_v57 = vsel %vm744_vm11, %v743_v55, %v738_v26  ;;  %874 = vmatpush1.msra.mxu0 %v763_v54  ;;  %v745_v58 = vsel %vm744_vm11, %v741_v40, %v743_v55  ;;  %v716_v4 = vsel %vm710_vm13, %v704_v56, %v707_v42 }
 0x23b   : > { %875 = vmatprep.subr.mxu0 %v1613_v19  ;;  %1172 = vmatpush3.msra.mxu1 %v746_v57 }
 0x23c   : > { %876 = vmatpush1.msra.mxu0 %v1602_v13  ;;  %1173 = vmatprep.subr.mxu1 %v1343_v0 }
 0x23d   : > { %v709_v60 = vpop.permute.xlu0 %708  ;;  %877 = vmatprep.subr.mxu0 %v745_v58  ;;  %v726_v61 = vpop.permute.xlu1 %725 }
 0x23e   : > { %v729_v62 = vsel %vm727_vm12, %v726_v61, %v1636_v27  ;;  %878 = vmatpush1.msra.mxu0 %v750_v59  ;;  %v728_v63 = vsel %vm727_vm12, %v724_v39, %v726_v61  ;;  %v712_v2 = vsel %vm710_vm13, %v709_v60, %v704_v56  ;;  %v711_v3 = vsel %vm710_vm13, %v707_v42, %v709_v60 }
 0x23f   : > { %879 = vmatprep.subr.mxu0 %v728_v63  ;;  %1174 = vmatpush3.msra.mxu1 %v729_v62 }
 0x240   : > { %880 = vmatpush1.msra.mxu0 %v733_v1  ;;  %1175 = vmatprep.subr.mxu1 %v1343_v0 }
 0x241   : > { %v685_v5 = vpop.permute.xlu0 %684  ;;  %881 = vmatprep.subr.mxu0 %v711_v3  ;;  %1176 = vmatpush3.msra.mxu1 %v712_v2  ;;  %v692_v6 = vpop.permute.xlu1 %691 }
 0x242   : > { %v699_v8 = vsel %vm693_vm14, %v685_v5, %v690_v43  ;;  %v695_v9 = vsel %vm693_vm14, %v692_v6, %v685_v5  ;;  %882 = vmatpush1.msra.mxu0 %v716_v4  ;;  %1177 = vmatprep.subr.mxu1 %v1343_v0  ;;  %v694_v10 = vsel %vm693_vm14, %v690_v43, %v692_v6 }
 0x243   : > { %883 = vmatprep.subr.mxu0 %v694_v10  ;;  %1178 = vmatpush3.msra.mxu1 %v695_v9 }
 0x244   : > { %884 = vmatpush1.msra.mxu0 %v699_v8  ;;  %1180 = vmatmul.mubr.msk.f32.vlgmr.msra.gmra.mxu1 %vm497_vm9, %v822_v7 }
 0x245   : > { %1113 = vmatmul.mubr.msk.f32.vlgmr.msra.gmra.mxu0 %vm497_vm9, %v822_v7 }
 0x24e   : > { %v998_v11 = vpop.permute.xlu1 %997  ;;  %v1007_v15 = vpop.permute.xlu0 %1006 }
 0x304   : > { %v990_v12 = vpop.f32.mrf.mxu1 }
 0x305   : > { %v1002_v13 = vmul.f32 %v998_v11, %v990_v12  ;;  %v919_v14 = vpop.f32.mrf.mxu0 }
 0x306   : > { %v1000_v16 = vmul.f32 %v998_v11, %v919_v14  ;;  %v1181_v17 = vpop.f32.mrf.mxu1 }
 0x307   : > { %v1011_v18 = vadd.f32 %v1007_v15, %v1002_v13  ;;  %v921_v19 = vpop.f32.mrf.mxu0 }
 0x308   : > { %v1009_v0 = vadd.f32 %v1007_v15, %v1000_v16  ;;  %v1001_v20 = vmul.f32 %v998_v11, %v921_v19 }
 0x309   : > { %v1014_v21 = vadd.f32 %v1011_v18, %v1562_v37 }
 0x30a   : > { %v1012_v22 = vadd.f32 %v1009_v0, %v1559_v36  ;;  %v1010_v23 = vadd.f32 %v1007_v15, %v1001_v20 }
 0x30b   : > { %v1017_v24 = vmax.f32 %v1014_v21, 0.0 }
 0x30c   : > { %v1015_v25 = vmax.f32 %v1012_v22, 0.0  ;;  %v1013_v26 = vadd.f32 %v1010_v23, %v1555_v33 }
 0x30d   : > { %1020 = vst [vmem:[%s321_s24 + $0x10] sm:$0xff] %v1017_v24 }
 0x30e   : > { %1018 = vst [vmem:[%s321_s24] sm:$0xff] %v1015_v25  ;;  %v1016_v27 = vmax.f32 %v1013_v26, 0.0 }
 0x310   : > { %1019 = vst [vmem:[%s321_s24 + $0x8] sm:$0xff] %v1016_v27 }
 0x311   : > { %1289 = shalt.err (!%p1286_p10)
}
 0x312   : > { %s1290_s10 = scalar_lea.hbm %s1034_s18, 384  ;;  %s1294_s13 = scalar_lea.hbm %s1716_s8, 768 }
 0x313   : > { %p1291_p2 = scmp.ne.s32.totalorder %s1034_s18, %s1290_s10  ;;  %p1295_p7 = scmp.lt.s32.totalorder %s1034_s18, %s1716_s8 }
 0x314   : > { %p1296_p5 = scmp.lt.s32.totalorder %s1294_s13, %s1290_s10 }
 0x315   : > { %p1292_p4 = pnand %p1291_p2, %p1729_p12 }
 0x316   : > { %p1297_p6 = por %p1296_p5, %p1295_p7 }
 0x317   : > { %p1293_p9 = pneg %p1292_p4 }
 0x319   : > { %p1298_p11 = pnand %p1297_p6, %p1293_p9 }
 0x31b   : > { %1301 = shalt.err (!%p1298_p11)
}
 0x31c   : > { %1186 = dma.vmem_to_hbm [thread:$0]  (%p1729_p12), %s1037_s26, 384, %s1034_s18, %s1022_s25  }
 0x31d PF: > { %s1048_s24 = sand.u32 1, %s1328_s27   ;;  %p1730_p13 = scmp.ne.s32.totalorder %s1724_s17, 0 }
 0x31e   : > { %p1731_p0 = scmp.ge.s32.totalorder %s1340_s30, 2  ;;  %s1049_s21 = scalar_lea.sflag [#allocation5], %s1048_s24 }
 0x320   : > { %p1193_p1 = pnand %p1731_p0, %p1730_p13 }
 0x322   : > { %p1194_p3 = pneg %p1193_p1 }
 0x324   : > { %1323 = dma.done.wait (%p1194_p3), %s1049_s21, 384  }
 0x325   : > { %1325 = vsyncadd (%p1194_p3), %s1049_s21, 4294966912  ;;  %s1732_s20 = sld [smem:[#allocation9_spill]]  ;;  %p21_p8 = scmp.ge.s32.totalorder %s1430_s11, 4  }
 0x326   : > { %s1733_s29 = sld [smem:[#allocation10_spill]]  ;;  %s1734_s27 = smov %s1332_s28 }
 0x327   : > { %s1736_s30 = smov %s1430_s11  ;;  %23 = sbr.rel (!%p21_p8) target bundleno = 5 (0x5), region = 97 }
 0x32b   : > { %s1735_s28 = smov %s1732_s20 }
 0x32c   :  { %1054 = vsyncpa [#allocation4], 1 }
 0x32d   :  { %1056 = vsyncpa [#allocation4 + $0x1], 1 }
 0x32e   :  { %1057 = vsyncpa [#allocation5], 1 }
 0x32f   :  { %1059 = vsyncpa [#allocation5 + $0x1], 1 }

// kernel: tpu_custom_call.1
= control target key start
LH: loop header
LB: loop body
LE: loop exit
PB: predicated region body
PF: predicated region fallthrough
CT: control target
= control target key end

     0   :  { %13 = vsyncpa [#allocation4], 0  ;;  %s1708_s0 = inlined_call_operand.hbm [shape: f32[8,768], index: 0, kind: input, shape index: {}]   ;;  %s1709_s1 = inlined_call_operand.vmem [shape: f32[8,72], index: 1, kind: input, shape index: {}]   ;;  %s1710_s2 = inlined_call_operand.vmem [shape: f32[8,72], index: 2, kind: input, shape index: {}]   ;;  %s1711_s3 = inlined_call_operand.vmem [shape: f32[8,1], index: 3, kind: input, shape index: {}]   ;;  %s1712_s4 = inlined_call_operand.vmem [shape: f32[8,1], index: 4, kind: input, shape index: {}]   ;;  %s1713_s5 = inlined_call_operand.vmem [shape: f32[8,1], index: 5, kind: input, shape index: {}]   ;;  %s1714_s6 = inlined_call_operand.vmem [shape: f32[8,1], index: 6, kind: input, shape index: {}]   ;;  %s1715_s7 = inlined_call_operand.vmem [shape: f32[1,384], index: 7, kind: input, shape index: {}]   ;;  %s1716_s8 = inlined_call_operand.hbm [shape: f32[8,768], index: 8, kind: output, shape index: {}]  }
   0x1   :  { %15 = vsyncpa [#allocation4 + $0x1], 0 }
   0x2   :  { %16 = vsyncpa [#allocation5], 0 }
   0x3   :  { %18 = vsyncpa [#allocation5 + $0x1], 0  ;;  %s1405_s27 = smov 0   ;;  %s1407_s28 = smov 0  }
   0x4   :  { %s1409_s29 = smov 0   ;;  %s1411_s30 = smov 0  }
   0x5 LB: > { %1720 = sst [smem:[#allocation9_spill]] %s1336_s29  ;;  %s1426_s9 = sadd.s32 4294967295, %s1340_s30   ;;  %s1340_s30 = sphi %s1411_s30, %s1736_s30   ;;  %s1336_s29 = sphi %s1409_s29, %s1733_s29   ;;  %s1332_s28 = sphi %s1407_s28, %s1735_s28   ;;  %s1328_s27 = sphi %s1405_s27, %s1734_s27  }
   0x6   : > { %s1106_s10 = sadd.s32 4294967294, %s1340_s30   ;;  %s1430_s11 = sadd.s32 1, %s1340_s30  }
   0x7   : > { %s31_s12 = sadd.s32 1, %s1336_s29  ;;  %s28_s13 = ssub.s32 %s1340_s30, %s1430_s11 }
   0x8   : > { %p38_p0 = scmp.ne.s32.totalorder %s1336_s29, %s1332_s28  ;;  %p29_p1 = scmp.eq.s32.totalorder %s28_s13, 0 }
   0x9   : > { %p39_p2 = scmp.eq.s32.totalorder %s1340_s30, 0  ;;  %p44_p3 = scmp.ne.s32.totalorder %s1332_s28, %s1328_s27 }
   0xa   : > { %p45_p4 = scmp.eq.s32.totalorder %s1426_s9, 0  ;;  %p215_p7 = scmp.eq.s32.totalorder %s1426_s9, 1 }
   0xb   : > { %s1442_s14 = scalar_select %p29_p1, %s1336_s29, %s31_s12  }
   0xc   : > { %p40_p5 = por %p39_p2, %p38_p0  ;;  %p1444_p6 = por %p45_p4, %p44_p3 }
   0xd   : > { %1721 = sst [smem:[#allocation10_spill]] %s1442_s14  ;;  %p221_p8 = scmp.eq.s32.totalorder %s1106_s10, 1 }
   0xe   : > { %s1722_s15 = scalar_select %p1444_p6, 1, 0 }
   0xf   : > { %p1196_p10 = scmp.lt.s32.totalorder %s1340_s30, 2  ;;  %p1451_p11 = por %p215_p7, %p38_p0 }
  0x10   : > { %p1455_p12 = por %p221_p8, %p44_p3  ;;  %s262_s18 = sand.u32 1, %s1336_s29  }
  0x11   : > { %s1723_s16 = scalar_select %p1451_p11, 1, 0 }
  0x12   : > { %s1724_s17 = scalar_select %p1455_p12, 1, 0 }
  0x13   : > { %s1118_s19 = smul.u32 384, %s1340_s30  ;;  %p1466_p13 = pnand %p1196_p10, %p40_p5 }
  0x14   : > { %s1182_s20 = smul.u32 24, %s262_s18  ;;  %s263_s10 = scalar_lea.sflag [#allocation4], %s262_s18 }
  0x15   : > { %s1464_s23 = scalar_lea.hbm %s1708_s0, %s1118_s19  ;;  %p1250_p3 = pneg %p1466_p13 }
  0x16   : > { %s266_s25 = scalar_lea.vmem [#allocation3], %s1182_s20  ;;  %s1248_s12 = scalar_lea.hbm %s1464_s23, 384 }
  0x17   : > { %s274_s26 = sshll.u32 %s266_s25, 4  ;;  %p1249_p2 = scmp.ne.s32.totalorder %s1464_s23, %s1248_s12  ;;  %s275_s26 = int_to_ptr.vmem [resolvable:$true] %s274_s26 }
  0x18   : > { %s1253_s21 = scalar_lea.hbm %s1708_s0, 768  ;;  %p1254_p5 = scmp.lt.s32.totalorder %s1464_s23, %s1708_s0 }
  0x19   : > { %p1251_p4 = pnand %p1250_p3, %p1249_p2  ;;  %p1255_p8 = scmp.lt.s32.totalorder %s1253_s21, %s1248_s12 }
  0x1b   : > { %p1252_p7 = pneg %p1251_p4  ;;  %p1256_p10 = por %p1255_p8, %p1254_p5 }
  0x1d   : > { %p1257_p9 = pnand %p1256_p10, %p1252_p7 }
  0x1f   : > { %1260 = shalt.err (!%p1257_p9)
}
  0x20   : > { %s1261_s20 = scalar_lea.vmem %s275_s26, 384  ;;  %s1342_s18 = smov [#allocation3]  }
  0x21   : > { %p1262_p0 = scmp.ne.s32.totalorder %s275_s26, %s1261_s20  ;;  %s1266_s25 = sshll.u32 %s1342_s18, 4  ;;  %s1267_s25 = int_to_ptr.vmem [resolvable:$false] %s1266_s25 }
  0x22   : > { %s1268_s29 = scalar_lea.vmem %s1267_s25, 768  ;;  %p1269_p2 = scmp.lt.s32.totalorder %s275_s26, %s1267_s25 }
  0x23   : > { %p1264_p1 = pnand %p1262_p0, %p1250_p3  ;;  %p1270_p4 = scmp.lt.s32.totalorder %s1268_s29, %s1261_s20 }
  0x25   : > { %p1265_p12 = pneg %p1264_p1  ;;  %p1271_p11 = por %p1270_p4, %p1269_p2 }
  0x27   : > { %p1272_p6 = pnand %p1271_p11, %p1265_p12 }
  0x29   : > { %1275 = shalt.err (!%p1272_p6)
}
  0x2a   : > { %1191 = dma.hbm_to_vmem [thread:$0]  (!%p1466_p13), %s1464_s23, 384, %s275_s26, %s263_s10  }
  0x2b   : > { %p1726_p9 = scmp.lt.s32.totalorder %s1340_s30, 3  ;;  %p1727_p7 = scmp.ge.s32.totalorder %s1340_s30, 1 }
  0x2d   : > { %p280_p5 = pnand %p1727_p7, %p1726_p9 }
  0x2e   : > { %s1491_s14 = sand.u32 (!%p280_p5), 1, %s1332_s28   ;;  %p1728_p6 = scmp.ne.s32.totalorder (!%p280_p5), %s1722_s15, 0 }
  0x2f   : > { %283 = sbr.rel (%p280_p5) target bundleno = 797 (0x31d), region = 52  ;;  %s286_s12 = scalar_lea.sflag (!%p280_p5), [#allocation4], %s1491_s14 }
  0x30   : > { %s1183_s29 = smul.u32 (!%p280_p5), 24, %s1491_s14 }
  0x32   : > { %s289_s13 = scalar_lea.vmem (!%p280_p5), [#allocation3], %s1183_s29 }
  0x34   : > { %1319 = dma.done.wait (%p1728_p6), %s286_s12, 384  }
  0x35   : > { %1321 = vsyncadd (%p1728_p6), %s286_s12, 4294966912  ;;  %v1343_v0 = vmov 0.0   ;;  %v1503_v1 = vld [vmem:[%s289_s13 + $0x8] sm:$0xff]  ;;  %v1505_v2 = vld [vmem:[%s289_s13] sm:$0xff]  ;;  %s1344_s23 = smov 90   ;;  %s1345_s15 = smov 91   ;;  %v665_v56 = vlaneseq }
  0x36   : > { %1140 = vmatprep.subr.mxu1 %v1343_v0  ;;  %565 = vmatprep.mubr.f32.mxu0 %v1343_v0  ;;  %v1509_v3 = vld [vmem:[%s289_s13 + $0x10] sm:$0xff]  ;;  %s1346_s24 = smov 92   ;;  %s1347_s26 = smov 108   ;;  %vm1350_vm0 = vmmov 0   ;;  %v1352_v4 = vmov 0   ;;  %v642_v5 = vld [vmem:[%s1711_s3] sm:$0xff] }
  0x37   : > { %454 = vrot.lane.b32.xlu0 %v1503_v1, %s1344_s23  ;;  %452 = vrot.lane.b32.xlu1 %v1505_v2, %s1344_s23  ;;  %s1348_s10 = smov 109   ;;  %s1349_s19 = smov 110   ;;  %v651_v6 = vld [vmem:[%s1712_s4] sm:$0xff]  ;;  %vm458_vm1 = vcmask 736256   ;;  %vm441_vm2 = vcmask 744448   ;;  %vm424_vm3 = vcmask 752640  }
  0x38   : > { %1158 = vmatprep.mubr.msk.f32.mxu1 %vm1350_vm0, %v1343_v0  ;;  %s1351_s21 = smov 126   ;;  %1246 = vset.pattern.permute.xlu0 %v1352_v4  ;;  %s1353_s22 = smov 127   ;;  %vm407_vm4 = vcmask 883712   ;;  %vm390_vm5 = vcmask 891904   ;;  %vm373_vm6 = vcmask 900096   ;;  %vm356_vm7 = vcmask 1031168  }
  0x39   : > { %1247 = vset.pattern.permute.xlu1 %v1352_v4  ;;  %vm339_vm8 = vcmask 1039360   ;;  %v469_v55 = vld [vmem:[%s1709_s1] sm:$0xff]  ;;  %vm497_vm9 = vcmask 588800   ;;  %v666_v57 = vshrl.u32 %v665_v56, 7  ;;  %s1356_s20 = smov 17   ;;  %s1357_s18 = smov 18  }
  0x3a   : > { %v663_v61 = vld [vmem:[%s1715_s7] sm:$0x7]  ;;  %s1358_s25 = smov 19   ;;  %vm779_vm10 = vcmask 908288   ;;  %vm744_vm11 = vcmask 7168   ;;  %vm727_vm12 = vcmask 138240  }
  0x3b   : > { %456 = vrot.lane.b32.xlu0 %v1509_v3, %s1344_s23  ;;  %437 = vrot.lane.b32.xlu1 %v1503_v1, %s1345_s15  ;;  %v675_v59 = vsub.s32 2, %v666_v57  ;;  %vm710_vm13 = vcmask 146432   ;;  %vm693_vm14 = vcmask 154624   ;;  %p1729_p12 = scmp.ne.s32.totalorder %s1723_s16, 0 }
  0x3f   : > { %439 = vrot.lane.b32.xlu0 %v1509_v3, %s1345_s15  ;;  %435 = vrot.lane.b32.xlu1 %v1505_v2, %s1345_s15  ;;  %s1119_s15 = smul.u32 384, %s1426_s9  ;;  %s1359_s9 = smov [#allocation6]  }
  0x43   : > { %420 = vrot.lane.b32.xlu0 %v1503_v1, %s1346_s24  ;;  %422 = vrot.lane.b32.xlu1 %v1509_v3, %s1346_s24 }
  0x47   : > { %418 = vrot.lane.b32.xlu0 %v1505_v2, %s1346_s24  ;;  %403 = vrot.lane.b32.xlu1 %v1503_v1, %s1347_s26  ;;  %s321_s24 = scalar_lea.vmem [#allocation6], %s1183_s29  ;;  %s1280_s29 = sshll.u32 %s1359_s9, 4  ;;  %s1281_s29 = int_to_ptr.vmem [resolvable:$false] %s1280_s29 }
  0x48   : > { %s1282_s12 = scalar_lea.vmem %s1281_s29, 768 }
  0x4b   : > { %405 = vrot.lane.b32.xlu0 %v1509_v3, %s1347_s26  ;;  %401 = vrot.lane.b32.xlu1 %v1505_v2, %s1347_s26  ;;  %s1354_s26 = smov 111  }
  0x4f   : > { %386 = vrot.lane.b32.xlu0 %v1503_v1, %s1348_s10  ;;  %388 = vrot.lane.b32.xlu1 %v1509_v3, %s1348_s10 }
  0x53   : > { %384 = vrot.lane.b32.xlu0 %v1505_v2, %s1348_s10  ;;  %369 = vrot.lane.b32.xlu1 %v1503_v1, %s1349_s19 }
  0x57   : > { %371 = vrot.lane.b32.xlu0 %v1509_v3, %s1349_s19  ;;  %367 = vrot.lane.b32.xlu1 %v1505_v2, %s1349_s19 }
  0x5b   : > { %352 = vrot.lane.b32.xlu0 %v1503_v1, %s1351_s21  ;;  %354 = vrot.lane.b32.xlu1 %v1509_v3, %s1351_s21 }
  0x5f   : > { %350 = vrot.lane.b32.xlu0 %v1505_v2, %s1351_s21  ;;  %335 = vrot.lane.b32.xlu1 %v1503_v1, %s1353_s22  ;;  %s1355_s21 = smov 1  }
  0x63   : > { %337 = vrot.lane.b32.xlu0 %v1509_v3, %s1353_s22  ;;  %333 = vrot.lane.b32.xlu1 %v1505_v2, %s1353_s22 }
  0x67   : > { %645 = vperm.xlu0 %1246, %v642_v5   ;;  %654 = vperm.xlu1 %1247, %v651_v6  }
  0xa9   : > { %v455_v7 = vpop.permute.xlu0 %454  ;;  %v453_v8 = vpop.permute.xlu1 %452 }
  0xaa   : > { %v459_v13 = vsel %vm458_vm1, %v453_v8, %v455_v7 }
  0xad   : > { %v457_v9 = vpop.permute.xlu0 %456  ;;  %v438_v10 = vpop.permute.xlu1 %437 }
  0xae   : > { %v460_v11 = vsel %vm458_vm1, %v455_v7, %v457_v9  ;;  %v465_v12 = vsel %vm458_vm1, %v457_v9, %v453_v8  ;;  %v667_v8 = vsub.s32 0, %v666_v57 }
  0xaf   : > { %515 = vmatprep.subr.mxu0 %v460_v11  ;;  %1141 = vmatpush3.msra.mxu1 %v465_v12 }
  0xb0   : > { %516 = vmatpush1.msra.mxu0 %v459_v13  ;;  %1142 = vmatprep.subr.mxu1 %v1343_v0 }
  0xb1   : > { %v440_v14 = vpop.permute.xlu0 %439  ;;  %v436_v15 = vpop.permute.xlu1 %435 }
  0xb2   : > { %v443_v16 = vsel %vm441_vm2, %v438_v10, %v440_v14  ;;  %v448_v17 = vsel %vm441_vm2, %v440_v14, %v436_v15  ;;  %v442_v18 = vsel %vm441_vm2, %v436_v15, %v438_v10  ;;  %v668_v10 = vrot.slane %v663_v61, %v667_v8 }
  0xb3   : > { %517 = vmatprep.subr.mxu0 %v443_v16  ;;  %1143 = vmatpush3.msra.mxu1 %v448_v17  ;;  %v671_v16 = vsub.s32 1, %v666_v57 }
  0xb4   : > { %518 = vmatpush1.msra.mxu0 %v442_v18  ;;  %1144 = vmatprep.subr.mxu1 %v1343_v0 }
  0xb5   : > { %v421_v19 = vpop.permute.xlu0 %420  ;;  %v423_v20 = vpop.permute.xlu1 %422  ;;  %v672_v18 = vrot.slane %v663_v61, %v671_v16 }
  0xb6   : > { %v426_v21 = vsel %vm424_vm3, %v421_v19, %v423_v20 }
  0xb7   : > { %519 = vmatprep.subr.mxu0 %v426_v21  ;;  %v994_v21 = vld [vmem:[%s1713_s5] sm:$0xff] }
  0xb9   : > { %v419_v22 = vpop.permute.xlu0 %418  ;;  %v404_v23 = vpop.permute.xlu1 %403 }
  0xba   : > { %v425_v24 = vsel %vm424_vm3, %v419_v22, %v421_v19  ;;  %v431_v25 = vsel %vm424_vm3, %v423_v20, %v419_v22  ;;  %v1003_v20 = vld [vmem:[%s1714_s6] sm:$0xff] }
  0xbb   : > { %520 = vmatpush1.msra.mxu0 %v425_v24  ;;  %1145 = vmatpush3.msra.mxu1 %v431_v25 }
  0xbc   : > { %1146 = vmatprep.subr.mxu1 %v1343_v0 }
  0xbd   : > { %v406_v26 = vpop.permute.xlu0 %405  ;;  %v402_v27 = vpop.permute.xlu1 %401 }
  0xbe   : > { %v409_v28 = vsel %vm407_vm4, %v404_v23, %v406_v26  ;;  %v414_v29 = vsel %vm407_vm4, %v406_v26, %v402_v27  ;;  %v408_v30 = vsel %vm407_vm4, %v402_v27, %v404_v23 }
  0xbf   : > { %521 = vmatprep.subr.mxu0 %v409_v28  ;;  %1147 = vmatpush3.msra.mxu1 %v414_v29 }
  0xc0   : > { %522 = vmatpush1.msra.mxu0 %v408_v30  ;;  %1148 = vmatprep.subr.mxu1 %v1343_v0 }
  0xc1   : > { %v387_v31 = vpop.permute.xlu0 %386  ;;  %v389_v32 = vpop.permute.xlu1 %388 }
  0xc2   : > { %v1555_v33 = vsel %vm390_vm5, %v387_v31, %v389_v32 }
  0xc3   : > { %523 = vmatprep.subr.mxu0 %v1555_v33 }
  0xc5   : > { %v385_v34 = vpop.permute.xlu0 %384  ;;  %v370_v35 = vpop.permute.xlu1 %369 }
  0xc6   : > { %v1559_v36 = vsel %vm390_vm5, %v385_v34, %v387_v31  ;;  %v1562_v37 = vsel %vm390_vm5, %v389_v32, %v385_v34 }
  0xc7   : > { %524 = vmatpush1.msra.mxu0 %v1559_v36  ;;  %1149 = vmatpush3.msra.mxu1 %v1562_v37 }
  0xc8   : > { %1150 = vmatprep.subr.mxu1 %v1343_v0 }
  0xc9   : > { %v372_v38 = vpop.permute.xlu0 %371  ;;  %v368_v39 = vpop.permute.xlu1 %367 }
  0xca   : > { %v375_v40 = vsel %vm373_vm6, %v370_v35, %v372_v38  ;;  %v380_v41 = vsel %vm373_vm6, %v372_v38, %v368_v39  ;;  %v374_v42 = vsel %vm373_vm6, %v368_v39, %v370_v35 }
  0xcb   : > { %525 = vmatprep.subr.mxu0 %v375_v40  ;;  %1151 = vmatpush3.msra.mxu1 %v380_v41 }
  0xcc   : > { %526 = vmatpush1.msra.mxu0 %v374_v42  ;;  %1152 = vmatprep.subr.mxu1 %v1343_v0 }
  0xcd   : > { %v353_v43 = vpop.permute.xlu0 %352  ;;  %v355_v44 = vpop.permute.xlu1 %354 }
  0xce   : > { %v358_v45 = vsel %vm356_vm7, %v353_v43, %v355_v44 }
  0xcf   : > { %527 = vmatprep.subr.mxu0 %v358_v45 }
  0xd1   : > { %v351_v46 = vpop.permute.xlu0 %350  ;;  %v336_v47 = vpop.permute.xlu1 %335 }
  0xd2   : > { %v357_v48 = vsel %vm356_vm7, %v351_v46, %v353_v43  ;;  %v363_v49 = vsel %vm356_vm7, %v355_v44, %v351_v46 }
  0xd3   : > { %528 = vmatpush1.msra.mxu0 %v357_v48  ;;  %1153 = vmatpush3.msra.mxu1 %v363_v49 }
  0xd4   : > { %1154 = vmatprep.subr.mxu1 %v1343_v0 }
  0xd5   : > { %v338_v50 = vpop.permute.xlu0 %337  ;;  %v334_v51 = vpop.permute.xlu1 %333 }
  0xd6   : > { %v341_v52 = vsel %vm339_vm8, %v336_v47, %v338_v50  ;;  %v346_v53 = vsel %vm339_vm8, %v338_v50, %v334_v51  ;;  %v340_v54 = vsel %vm339_vm8, %v334_v51, %v336_v47 }
  0xd7   : > { %529 = vmatprep.subr.mxu0 %v341_v52  ;;  %1155 = vmatpush3.msra.mxu1 %v346_v53 }
  0xd8   : > { %530 = vmatpush1.msra.mxu0 %v340_v54  ;;  %1156 = vmatprep.subr.mxu1 %v1343_v0 }
  0xd9   : > { %531 = vmatprep.subr.mxu0 %v1503_v1  ;;  %1157 = vmatpush3.msra.mxu1 %v1509_v3 }
  0xda   : > { %532 = vmatpush1.msra.mxu0 %v1505_v2  ;;  %1159 = vmatmul.mubr.msk.f32.vlgmr.msra.gmra.mxu1 %vm497_vm9, %v469_v55  ;;  %v676_v2 = vrot.slane %v663_v61, %v675_v59 }
  0xdb   : > { %1111 = vmatmul.mubr.msk.f32.vlgmr.msra.gmra.mxu0 %vm497_vm9, %v469_v55  ;;  %1161 = vmatprep.subr.mxu1 %v1343_v0 }
  0xdc   : > { %1179 = vmatprep.mubr.msk.f32.mxu1 %vm1350_vm0, %v1343_v0  ;;  %917 = vmatprep.mubr.f32.mxu0 %v1343_v0 }
  0xe2   : > { %v646_v58 = vpop.permute.xlu0 %645  ;;  %v655_v62 = vpop.permute.xlu1 %654 }
 0x19a   : > { %v638_v60 = vpop.f32.mrf.mxu1 }
 0x19b   : > { %v650_v63 = vmul.f32 %v646_v58, %v638_v60  ;;  %v567_v4 = vpop.f32.mrf.mxu0 }
 0x19c   : > { %v1160_v1 = vpop.f32.mrf.mxu1  ;;  %v648_v6 = vmul.f32 %v646_v58, %v567_v4 }
 0x19d   : > { %v659_v3 = vadd.f32 %v655_v62, %v650_v63  ;;  %v569_v12 = vpop.f32.mrf.mxu0 }
 0x19e   : > { %v657_v9 = vadd.f32 %v655_v62, %v648_v6  ;;  %v649_v14 = vmul.f32 %v646_v58, %v569_v12 }
 0x19f   : > { %v662_v5 = vmax.f32 %v659_v3, 0.0 }
 0x1a0   : > { %v660_v11 = vmax.f32 %v657_v9, 0.0  ;;  %v658_v15 = vadd.f32 %v655_v62, %v649_v14 }
 0x1a1   : > { %v1591_v7 = vmul.f32 %v676_v2, %v662_v5 }
 0x1a2   : > { %v1602_v13 = vmul.f32 %v668_v10, %v660_v11  ;;  %v661_v17 = vmax.f32 %v658_v15, 0.0 }
 0x1a3   : > { %794 = vrot.lane.b32.xlu1 %v1591_v7, %s1349_s19  ;;  %810 = vrot.lane.b32.xlu0 %v1591_v7, %s1348_s10 }
 0x1a4   : > { %v1613_v19 = vmul.f32 %v672_v18, %v661_v17 }
 0x1a7   : > { %761 = vrot.lane.b32.xlu1 %v1591_v7, %s1353_s22  ;;  %777 = vrot.lane.b32.xlu0 %v1591_v7, %s1354_s26 }
 0x1ab   : > { %737 = vrot.lane.b32.xlu1 %v1591_v7, %s1355_s21  ;;  %720 = vrot.lane.b32.xlu0 %v1591_v7, %s1356_s20 }
 0x1af   : > { %790 = vrot.lane.b32.xlu0 %v1602_v13, %s1349_s19  ;;  %806 = vrot.lane.b32.xlu1 %v1602_v13, %s1348_s10 }
 0x1b3   : > { %757 = vrot.lane.b32.xlu0 %v1602_v13, %s1353_s22  ;;  %773 = vrot.lane.b32.xlu1 %v1602_v13, %s1354_s26 }
 0x1b7   : > { %723 = vrot.lane.b32.xlu0 %v1602_v13, %s1356_s20  ;;  %740 = vrot.lane.b32.xlu1 %v1602_v13, %s1355_s21 }
 0x1bb   : > { %792 = vrot.lane.b32.xlu0 %v1613_v19, %s1349_s19  ;;  %706 = vrot.lane.b32.xlu1 %v1602_v13, %s1357_s18 }
 0x1bf   : > { %689 = vrot.lane.b32.xlu0 %v1602_v13, %s1358_s25  ;;  %808 = vrot.lane.b32.xlu1 %v1613_v19, %s1348_s10 }
 0x1c3   : > { %759 = vrot.lane.b32.xlu0 %v1613_v19, %s1353_s22  ;;  %775 = vrot.lane.b32.xlu1 %v1613_v19, %s1354_s26  ;;  %s1036_s26 = sshll.u32 %s321_s24, 4  ;;  %s1037_s26 = int_to_ptr.vmem [resolvable:$true] %s1036_s26 }
 0x1c4   : > { %s1276_s19 = scalar_lea.vmem %s1037_s26, 384  ;;  %p1283_p1 = scmp.lt.s32.totalorder %s1037_s26, %s1281_s29 }
 0x1c5   : > { %p1277_p11 = scmp.ne.s32.totalorder %s1037_s26, %s1276_s19  ;;  %p1284_p3 = scmp.lt.s32.totalorder %s1282_s12, %s1276_s19 }
 0x1c7   : > { %742 = vrot.lane.b32.xlu0 %v1613_v19, %s1355_s21  ;;  %703 = vrot.lane.b32.xlu1 %v1591_v7, %s1357_s18  ;;  %p1278_p13 = pnand %p1277_p11, %p1729_p12  ;;  %p1285_p8 = por %p1284_p3, %p1283_p1 }
 0x1c9   : > { %p1279_p0 = pneg %p1278_p13 }
 0x1cb   : > { %708 = vrot.lane.b32.xlu0 %v1613_v19, %s1357_s18  ;;  %725 = vrot.lane.b32.xlu1 %v1613_v19, %s1356_s20  ;;  %s1034_s18 = scalar_lea.hbm %s1716_s8, %s1119_s15  ;;  %p1286_p10 = pnand %p1285_p8, %p1279_p0 }
 0x1cf   : > { %684 = vrot.lane.b32.xlu0 %v1591_v7, %s1358_s25  ;;  %691 = vrot.lane.b32.xlu1 %v1613_v19, %s1358_s25  ;;  %s1022_s25 = scalar_lea.sflag [#allocation5], %s1491_s14 }
 0x1d3   : > { %1006 = vperm.xlu0 %1246, %v1003_v20   ;;  %997 = vperm.xlu1 %1247, %v994_v21  }
 0x215   : > { %v795_v22 = vpop.permute.xlu1 %794  ;;  %v811_v23 = vpop.permute.xlu0 %810 }
 0x219   : > { %v762_v24 = vpop.permute.xlu1 %761  ;;  %v778_v25 = vpop.permute.xlu0 %777 }
 0x21d   : > { %v738_v26 = vpop.permute.xlu1 %737  ;;  %v1636_v27 = vpop.permute.xlu0 %720 }
 0x221   : > { %v791_v28 = vpop.permute.xlu0 %790  ;;  %v807_v29 = vpop.permute.xlu1 %806 }
 0x222   : > { %v818_v30 = vsel %vm390_vm5, %v811_v23, %v807_v29  ;;  %v802_v31 = vsel %vm373_vm6, %v795_v22, %v791_v28 }
 0x223   : > { %1162 = vmatpush3.msra.mxu1 %v818_v30 }
 0x224   : > { %1163 = vmatprep.subr.mxu1 %v1343_v0 }
 0x225   : > { %v758_v32 = vpop.permute.xlu0 %757  ;;  %1164 = vmatpush3.msra.mxu1 %v802_v31  ;;  %v774_v34 = vpop.permute.xlu1 %773 }
 0x226   : > { %v786_v35 = vsel %vm779_vm10, %v778_v25, %v774_v34  ;;  %1165 = vmatprep.subr.mxu1 %v1343_v0  ;;  %v769_v38 = vsel %vm339_vm8, %v762_v24, %v758_v32 }
 0x227   : > { %1166 = vmatpush3.msra.mxu1 %v786_v35 }
 0x228   : > { %1167 = vmatprep.subr.mxu1 %v1343_v0 }
 0x229   : > { %v724_v39 = vpop.permute.xlu0 %723  ;;  %1168 = vmatpush3.msra.mxu1 %v769_v38  ;;  %v741_v40 = vpop.permute.xlu1 %740 }
 0x22a   : > { %1169 = vmatprep.subr.mxu1 %v1343_v0  ;;  %v750_v59 = vsel %vm744_vm11, %v738_v26, %v741_v40  ;;  %v733_v1 = vsel %vm727_vm12, %v1636_v27, %v724_v39 }
 0x22b   : > { %1170 = vmatpush3.msra.mxu1 %v1591_v7  ;;  %v822_v7 = vld [vmem:[%s1710_s2] sm:$0xff] }
 0x22c   : > { %1171 = vmatprep.subr.mxu1 %v1343_v0 }
 0x22d   : > { %v793_v41 = vpop.permute.xlu0 %792  ;;  %v707_v42 = vpop.permute.xlu1 %706 }
 0x22e   : > { %v797_v47 = vsel %vm373_vm6, %v793_v41, %v795_v22  ;;  %v796_v48 = vsel %vm373_vm6, %v791_v28, %v793_v41 }
 0x231   : > { %v690_v43 = vpop.permute.xlu0 %689  ;;  %v809_v44 = vpop.permute.xlu1 %808 }
 0x232   : > { %v812_v45 = vsel %vm390_vm5, %v807_v29, %v809_v44  ;;  %v813_v46 = vsel %vm390_vm5, %v809_v44, %v811_v23 }
 0x233   : > { %867 = vmatprep.subr.mxu0 %v813_v46 }
 0x234   : > { %868 = vmatpush1.msra.mxu0 %v812_v45 }
 0x235   : > { %v760_v49 = vpop.permute.xlu0 %759  ;;  %869 = vmatprep.subr.mxu0 %v797_v47  ;;  %v776_v50 = vpop.permute.xlu1 %775 }
 0x236   : > { %v780_v51 = vsel %vm779_vm10, %v774_v34, %v776_v50  ;;  %870 = vmatpush1.msra.mxu0 %v796_v48  ;;  %v781_v52 = vsel %vm779_vm10, %v776_v50, %v778_v25  ;;  %v764_v53 = vsel %vm339_vm8, %v760_v49, %v762_v24  ;;  %v763_v54 = vsel %vm339_vm8, %v758_v32, %v760_v49 }
 0x237   : > { %871 = vmatprep.subr.mxu0 %v781_v52 }
 0x238   : > { %872 = vmatpush1.msra.mxu0 %v780_v51 }
 0x239   : > { %v743_v55 = vpop.permute.xlu0 %742  ;;  %873 = vmatprep.subr.mxu0 %v764_v53  ;;  %v704_v56 = vpop.permute.xlu1 %703 }
 0x23a   : > { %v746_v57 = vsel %vm744_vm11, %v743_v55, %v738_v26  ;;  %874 = vmatpush1.msra.mxu0 %v763_v54  ;;  %v745_v58 = vsel %vm744_vm11, %v741_v40, %v743_v55  ;;  %v716_v4 = vsel %vm710_vm13, %v704_v56, %v707_v42 }
 0x23b   : > { %875 = vmatprep.subr.mxu0 %v1613_v19  ;;  %1172 = vmatpush3.msra.mxu1 %v746_v57 }
 0x23c   : > { %876 = vmatpush1.msra.mxu0 %v1602_v13  ;;  %1173 = vmatprep.subr.mxu1 %v1343_v0 }
 0x23d   : > { %v709_v60 = vpop.permute.xlu0 %708  ;;  %877 = vmatprep.subr.mxu0 %v745_v58  ;;  %v726_v61 = vpop.permute.xlu1 %725 }
 0x23e   : > { %v729_v62 = vsel %vm727_vm12, %v726_v61, %v1636_v27  ;;  %878 = vmatpush1.msra.mxu0 %v750_v59  ;;  %v728_v63 = vsel %vm727_vm12, %v724_v39, %v726_v61  ;;  %v712_v2 = vsel %vm710_vm13, %v709_v60, %v704_v56  ;;  %v711_v3 = vsel %vm710_vm13, %v707_v42, %v709_v60 }
 0x23f   : > { %879 = vmatprep.subr.mxu0 %v728_v63  ;;  %1174 = vmatpush3.msra.mxu1 %v729_v62 }
 0x240   : > { %880 = vmatpush1.msra.mxu0 %v733_v1  ;;  %1175 = vmatprep.subr.mxu1 %v1343_v0 }
 0x241   : > { %v685_v5 = vpop.permute.xlu0 %684  ;;  %881 = vmatprep.subr.mxu0 %v711_v3  ;;  %1176 = vmatpush3.msra.mxu1 %v712_v2  ;;  %v692_v6 = vpop.permute.xlu1 %691 }
 0x242   : > { %v699_v8 = vsel %vm693_vm14, %v685_v5, %v690_v43  ;;  %v695_v9 = vsel %vm693_vm14, %v692_v6, %v685_v5  ;;  %882 = vmatpush1.msra.mxu0 %v716_v4  ;;  %1177 = vmatprep.subr.mxu1 %v1343_v0  ;;  %v694_v10 = vsel %vm693_vm14, %v690_v43, %v692_v6 }
 0x243   : > { %883 = vmatprep.subr.mxu0 %v694_v10  ;;  %1178 = vmatpush3.msra.mxu1 %v695_v9 }
 0x244   : > { %884 = vmatpush1.msra.mxu0 %v699_v8  ;;  %1180 = vmatmul.mubr.msk.f32.vlgmr.msra.gmra.mxu1 %vm497_vm9, %v822_v7 }
 0x245   : > { %1113 = vmatmul.mubr.msk.f32.vlgmr.msra.gmra.mxu0 %vm497_vm9, %v822_v7 }
 0x24e   : > { %v998_v11 = vpop.permute.xlu1 %997  ;;  %v1007_v15 = vpop.permute.xlu0 %1006 }
 0x304   : > { %v990_v12 = vpop.f32.mrf.mxu1 }
 0x305   : > { %v1002_v13 = vmul.f32 %v998_v11, %v990_v12  ;;  %v919_v14 = vpop.f32.mrf.mxu0 }
 0x306   : > { %v1000_v16 = vmul.f32 %v998_v11, %v919_v14  ;;  %v1181_v17 = vpop.f32.mrf.mxu1 }
 0x307   : > { %v1011_v18 = vadd.f32 %v1007_v15, %v1002_v13  ;;  %v921_v19 = vpop.f32.mrf.mxu0 }
 0x308   : > { %v1009_v0 = vadd.f32 %v1007_v15, %v1000_v16  ;;  %v1001_v20 = vmul.f32 %v998_v11, %v921_v19 }
 0x309   : > { %v1014_v21 = vadd.f32 %v1011_v18, %v1562_v37 }
 0x30a   : > { %v1012_v22 = vadd.f32 %v1009_v0, %v1559_v36  ;;  %v1010_v23 = vadd.f32 %v1007_v15, %v1001_v20 }
 0x30b   : > { %v1017_v24 = vmax.f32 %v1014_v21, 0.0 }
 0x30c   : > { %v1015_v25 = vmax.f32 %v1012_v22, 0.0  ;;  %v1013_v26 = vadd.f32 %v1010_v23, %v1555_v33 }
 0x30d   : > { %1020 = vst [vmem:[%s321_s24 + $0x10] sm:$0xff] %v1017_v24 }
 0x30e   : > { %1018 = vst [vmem:[%s321_s24] sm:$0xff] %v1015_v25  ;;  %v1016_v27 = vmax.f32 %v1013_v26, 0.0 }
 0x310   : > { %1019 = vst [vmem:[%s321_s24 + $0x8] sm:$0xff] %v1016_v27 }
 0x311   : > { %1289 = shalt.err (!%p1286_p10)
}
 0x312   : > { %s1290_s10 = scalar_lea.hbm %s1034_s18, 384  ;;  %s1294_s13 = scalar_lea.hbm %s1716_s8, 768 }
 0x313   : > { %p1291_p2 = scmp.ne.s32.totalorder %s1034_s18, %s1290_s10  ;;  %p1295_p7 = scmp.lt.s32.totalorder %s1034_s18, %s1716_s8 }
 0x314   : > { %p1296_p5 = scmp.lt.s32.totalorder %s1294_s13, %s1290_s10 }
 0x315   : > { %p1292_p4 = pnand %p1291_p2, %p1729_p12 }
 0x316   : > { %p1297_p6 = por %p1296_p5, %p1295_p7 }
 0x317   : > { %p1293_p9 = pneg %p1292_p4 }
 0x319   : > { %p1298_p11 = pnand %p1297_p6, %p1293_p9 }
 0x31b   : > { %1301 = shalt.err (!%p1298_p11)
}
 0x31c   : > { %1186 = dma.vmem_to_hbm [thread:$0]  (%p1729_p12), %s1037_s26, 384, %s1034_s18, %s1022_s25  }
 0x31d PF: > { %s1048_s24 = sand.u32 1, %s1328_s27   ;;  %p1730_p13 = scmp.ne.s32.totalorder %s1724_s17, 0 }
 0x31e   : > { %p1731_p0 = scmp.ge.s32.totalorder %s1340_s30, 2  ;;  %s1049_s21 = scalar_lea.sflag [#allocation5], %s1048_s24 }
 0x320   : > { %p1193_p1 = pnand %p1731_p0, %p1730_p13 }
 0x322   : > { %p1194_p3 = pneg %p1193_p1 }
 0x324   : > { %1323 = dma.done.wait (%p1194_p3), %s1049_s21, 384  }
 0x325   : > { %1325 = vsyncadd (%p1194_p3), %s1049_s21, 4294966912  ;;  %s1732_s20 = sld [smem:[#allocation9_spill]]  ;;  %p21_p8 = scmp.ge.s32.totalorder %s1430_s11, 4  }
 0x326   : > { %s1733_s29 = sld [smem:[#allocation10_spill]]  ;;  %s1734_s27 = smov %s1332_s28 }
 0x327   : > { %s1736_s30 = smov %s1430_s11  ;;  %23 = sbr.rel (!%p21_p8) target bundleno = 5 (0x5), region = 97 }
 0x32b   : > { %s1735_s28 = smov %s1732_s20 }
 0x32c   :  { %1054 = vsyncpa [#allocation4], 1 }
 0x32d   :  { %1056 = vsyncpa [#allocation4 + $0x1], 1 }
 0x32e   :  { %1057 = vsyncpa [#allocation5], 1 }
 0x32f   :  { %1059 = vsyncpa [#allocation5 + $0x1], 1 }

</bundles_post_ra>
